<compile_context>
chip_gen: v5e
topology: v5e:2x2
jax: 0.10.0
libtpu: 0.0.40
codegen_flags: <defaults>
</compile_context>

<pallas_src>
import functools

import jax
import jax.numpy as jnp
import numpy as np
from jax import lax
from jax.experimental import pallas as pl
from jax.experimental.pallas import tpu as pltpu


def _bidir_lstm_kernel(HP, T, unroll,
                       x_ref,                      # VMEM (T, E)
                       wih_ref,                    # VMEM (E, 8*HP)  [fwd | rev]
                       whh_ref,                    # VMEM (HP, 8*HP) [fwd | rev]
                       b_ref,                      # VMEM (1, 8*HP)  [fwd | rev]
                       out_ref, hn_ref, cn_ref,    # VMEM (T, HP) (1, HP) (1, HP)
                       gin_scr, hs_r):             # VMEM (T, 8*HP), (T, HP)
    G4 = 4 * HP
    f32 = jnp.float32

    # ---- Hoisted input projection: one batched GEMM for both directions ----
    # gin[:, :G4]  = forward input gates (time order), gates [i, f, o, g]
    # gin[:, G4:]  = reverse input gates (time order), gates [i, f, o, g]
    gin_scr[...] = (jnp.dot(x_ref[...], wih_ref[...],
                            preferred_element_type=f32)
                    + b_ref[...])

    # ---- Interleaved forward/reverse recurrence ----
    # h/c rows: 0 = forward state, 1 = reverse state (carried in vregs).
    def step(s, carry):
        h, c = carry                                   # (2, HP) f32 each
        t_rev = T - 1 - s

        g_in_f = gin_scr[pl.ds(s, 1), :G4]             # (1, 4*HP) lane-aligned
        g_in_r = gin_scr[pl.ds(t_rev, 1), G4:]         # (1, 4*HP) lane-aligned

        # One matmul per step with a loop-invariant RHS (no MXU staging
        # thrash from alternating whh_f / whh_r).  The off-diagonal blocks
        # are redundant work but free at this tiny MXU utilization.
        gmm = jnp.dot(h, whh_ref[...], preferred_element_type=f32)   # (2, 8*HP)
        gate_f = g_in_f + gmm[0:1, :G4]
        gate_r = g_in_r + gmm[1:2, G4:]
        gates = jnp.concatenate([gate_f, gate_r], axis=0)            # (2, 4*HP)

        # Gate order [i, f, o, g]: one contiguous tanh-based sigmoid block
        # (single EUP stream) + one tanh for the cell candidate.
        sig = 0.5 * jnp.tanh(0.5 * gates[:, :3 * HP]) + 0.5
        i = sig[:, 0 * HP:1 * HP]
        f = sig[:, 1 * HP:2 * HP]
        o = sig[:, 2 * HP:3 * HP]
        g = jnp.tanh(gates[:, 3 * HP:4 * HP])

        c_new = f * c + i * g
        h_new = o * jnp.tanh(c_new)

        # Full-lane (1, HP) stores: forward straight into the output,
        # reverse into its scratch at the matching timestep.
        out_ref[pl.ds(s, 1), :] = h_new[0:1, :]
        hs_r[pl.ds(t_rev, 1), :] = h_new[1:2, :]
        return h_new, c_new

    zeros = jnp.zeros((2, HP), f32)
    h_fin, c_fin = lax.fori_loop(0, T, step, (zeros, zeros), unroll=unroll)

    # ---- Finalize ----
    out_ref[...] = out_ref[...] + hs_r[...]
    hn_ref[...] = h_fin[0:1, :] + h_fin[1:2, :]
    cn_ref[...] = c_fin[0:1, :] + c_fin[1:2, :]


def _prep_gate_cols(w, H, HP):
    """(K, 4H) PyTorch gate blocks [i,f,g,o] -> (K, 4*HP): reordered to
    [i,f,o,g] and per-gate zero-padded to HP lanes."""
    K = w.shape[0]
    w4 = w.reshape(K, 4, H)[:, (0, 1, 3, 2), :]      # [i,f,g,o] -> [i,f,o,g]
    w4 = jnp.pad(w4, ((0, 0), (0, 0), (0, HP - H)))
    return w4.reshape(K, 4 * HP)


@jax.jit
def basic_lstm_forward(ids, emb,
                       wih_f, whh_f, bih_f, bhh_f,
                       wih_r, whh_r, bih_r, bhh_r):
    """Mirrors BasicLSTM.forward with bidirectional=True.

    Returns (outputs, (cn, hn)) like the torch module:
      outputs: (T, H), cn: (H,), hn: (H,)
    """
    f32 = jnp.float32
    T = ids.shape[0]
    E = emb.shape[1]
    H = whh_f.shape[1]
    HP = ((H + 127) // 128) * 128         # pad hidden to a 128-lane multiple

    # Embedding gather in the wrapper (keeps the vocab table out of VMEM).
    x = emb.astype(f32)[ids.astype(jnp.int32)]                     # (T, E)

    # Weight prep: transpose, reorder gates, per-gate pad to HP, fuse dirs.
    wih_cat = jnp.concatenate(
        [_prep_gate_cols(wih_f.T.astype(f32), H, HP),
         _prep_gate_cols(wih_r.T.astype(f32), H, HP)], axis=1)     # (E, 8*HP)

    whh_f_p = jnp.pad(_prep_gate_cols(whh_f.T.astype(f32), H, HP),
                      ((0, HP - H), (0, 0)))                       # (HP, 4*HP)
    whh_r_p = jnp.pad(_prep_gate_cols(whh_r.T.astype(f32), H, HP),
                      ((0, HP - H), (0, 0)))
    whh_cat = jnp.concatenate([whh_f_p, whh_r_p], axis=1)          # (HP, 8*HP)

    b_cat = jnp.concatenate(
        [_prep_gate_cols((bih_f + bhh_f).astype(f32).reshape(1, 4 * H), H, HP),
         _prep_gate_cols((bih_r + bhh_r).astype(f32).reshape(1, 4 * H), H, HP)],
        axis=1)                                                    # (1, 8*HP)

    out_shape = (jax.ShapeDtypeStruct((T, HP), f32),   # outputs (padded)
                 jax.ShapeDtypeStruct((1, HP), f32),   # hn (summed over dirs)
                 jax.ShapeDtypeStruct((1, HP), f32))   # cn (summed over dirs)

    # Real VMEM working set (inputs + outputs + scratch), 2x headroom,
    # clamped to v7x's 64 MiB part.
    working_bytes = 4 * (T * E + E * 8 * HP + HP * 8 * HP + 8 * HP
                         + T * HP + 2 * HP + T * 8 * HP + T * HP)
    vmem_limit = int(min(max(2 * working_bytes, 2 * 1024 * 1024),
                         64 * 1024 * 1024))

    vmem = pl.BlockSpec(memory_space=pltpu.MemorySpace.VMEM)
    unroll = True if T <= 16 else 8

    out_p, hn_p, cn_p = pl.pallas_call(
        functools.partial(_bidir_lstm_kernel, HP, T, unroll),
        out_shape=out_shape,
        in_specs=[vmem] * 4,
        out_specs=(vmem, vmem, vmem),
        scratch_shapes=[
            pltpu.VMEM((T, 8 * HP), f32),   # precomputed input gates (both dirs)
            pltpu.VMEM((T, HP), f32),       # reverse-direction hidden states
        ],
        compiler_params=pltpu.CompilerParams(vmem_limit_bytes=vmem_limit),
    )(x, wih_cat, whh_cat, b_cat)

    outputs = out_p[:, :H]
    hn = hn_p[0, :H]
    cn = cn_p[0, :H]
    # torch returns (outputs, (cn.squeeze(0), hn.squeeze(0)))
    return outputs, (cn, hn)


def _reference_forward(ids, emb,
                       wih_f, whh_f, bih_f, bhh_f,
                       wih_r, whh_r, bih_r, bhh_r):
    """Pure-JAX reference matching torch.nn.LSTM(bidirectional=True)."""
    x = emb[ids]  # (T, E)

    def run(x_seq, wih, whh, bih, bhh):
        H = whh.shape[1]

        def step(carry, xt):
            h, c = carry
            gates = xt @ wih.T + h @ whh.T + bih + bhh
            i, f, g, o = jnp.split(gates, 4)
            i = jax.nn.sigmoid(i)
            f = jax.nn.sigmoid(f)
            g = jnp.tanh(g)
            o = jax.nn.sigmoid(o)
            c = f * c + i * g
            h = o * jnp.tanh(c)
            return (h, c), h

        (h, c), hs = lax.scan(step, (jnp.zeros(H), jnp.zeros(H)), x_seq)
        return hs, h, c

    hs_f, h_f, c_f = run(x, wih_f, whh_f, bih_f, bhh_f)
    hs_r, h_r, c_r = run(x[::-1], wih_r, whh_r, bih_r, bhh_r)
    hs_r = hs_r[::-1]
    return hs_f + hs_r, (c_f + c_r, h_f + h_r)


if __name__ == "__main__":
    # Small shapes consistent with the module's forward.
    vocab, embed_dim, hidden, seq = 32, 16, 32, 8

    key = jax.random.PRNGKey(0)
    keys = jax.random.split(key, 11)
    k_scale = 1.0 / np.sqrt(hidden)

    ids = jax.random.randint(keys[0], (seq,), 0, vocab, dtype=jnp.int32)
    emb = jax.random.normal(keys[1], (vocab, embed_dim), jnp.float32)

    uni = functools.partial(jax.random.uniform,
                            minval=-k_scale, maxval=k_scale, dtype=jnp.float32)
    wih_f = uni(keys[2], (4 * hidden, embed_dim))
    whh_f = uni(keys[3], (4 * hidden, hidden))
    bih_f = uni(keys[4], (4 * hidden,))
    bhh_f = uni(keys[5], (4 * hidden,))
    wih_r = uni(keys[6], (4 * hidden, embed_dim))
    whh_r = uni(keys[7], (4 * hidden, hidden))
    bih_r = uni(keys[8], (4 * hidden,))
    bhh_r = uni(keys[9], (4 * hidden,))

    args = (ids, emb, wih_f, whh_f, bih_f, bhh_f, wih_r, whh_r, bih_r, bhh_r)

    outputs, (cn, hn) = basic_lstm_forward(*args)
    jax.block_until_ready((outputs, cn, hn))

    ref_out, (ref_cn, ref_hn) = _reference_forward(*args)
    np.testing.assert_allclose(np.asarray(outputs), np.asarray(ref_out),
                               rtol=1e-4, atol=1e-5)
    np.testing.assert_allclose(np.asarray(cn), np.asarray(ref_cn),
                               rtol=1e-4, atol=1e-5)
    np.testing.assert_allclose(np.asarray(hn), np.asarray(ref_hn),
                               rtol=1e-4, atol=1e-5)

    print("KERNEL_OK")
</pallas_src>

<mosaic_0001>
module attributes {stable_mosaic.version = 11 : i64} {
  func.func @_bidir_lstm_kernel(%arg0: memref<8x16xf32, #tpu.memory_space<vmem>>, %arg1: memref<16x1024xf32, #tpu.memory_space<vmem>>, %arg2: memref<128x1024xf32, #tpu.memory_space<vmem>>, %arg3: memref<1x1024xf32, #tpu.memory_space<vmem>>, %arg4: memref<8x128xf32, #tpu.memory_space<vmem>>, %arg5: memref<1x128xf32, #tpu.memory_space<vmem>>, %arg6: memref<1x128xf32, #tpu.memory_space<vmem>>, %arg7: memref<8x1024xf32, #tpu.memory_space<vmem>>, %arg8: memref<8x128xf32, #tpu.memory_space<vmem>>) attributes {dimension_semantics = [], scalar_prefetch = 0 : i64, scratch_operands = 2 : i64, tpu.core_type = #tpu.core_type<tc>} {
    %c0 = arith.constant 0 : index
    %c0_0 = arith.constant 0 : index
    %0 = vector.load %arg0[%c0, %c0_0] : memref<8x16xf32, #tpu.memory_space<vmem>>, vector<8x16xf32>
    %c0_1 = arith.constant 0 : index
    %c0_2 = arith.constant 0 : index
    %1 = vector.load %arg1[%c0_1, %c0_2] : memref<16x1024xf32, #tpu.memory_space<vmem>>, vector<16x1024xf32>
    %cst = arith.constant dense<0.000000e+00> : vector<8x1024xf32>
    %2 = tpu.matmul %0, %1, %cst {dimension_numbers = #tpu.dot_dimension_numbers<[1], [0], [0], [1], [0, 0, 1, 1], [], []>} : vector<8x16xf32>, vector<16x1024xf32>, vector<8x1024xf32> -> vector<8x1024xf32>
    %c0_3 = arith.constant 0 : index
    %c0_4 = arith.constant 0 : index
    %3 = vector.load %arg3[%c0_3, %c0_4] : memref<1x1024xf32, #tpu.memory_space<vmem>>, vector<1x1024xf32>
    %4 = vector.broadcast %3 : vector<1x1024xf32> to vector<8x1024xf32>
    %5 = arith.addf %2, %4 : vector<8x1024xf32>
    %c0_5 = arith.constant 0 : index
    %c0_6 = arith.constant 0 : index
    %6 = vector.load %arg7[%c0_5, %c0_6] : memref<8x1024xf32, #tpu.memory_space<vmem>>, vector<8x1024xf32>
    tpu.vector_store %arg7[%c0_5, %c0_6], %5 {strides = array<i32>} : memref<8x1024xf32, #tpu.memory_space<vmem>>, vector<8x1024xf32>,
    %cst_7 = arith.constant 0.000000e+00 : f32
    %7 = vector.broadcast %cst_7 : f32 to vector<2x128xf32>
    %c0_i32 = arith.constant 0 : i32
    %c7_i32 = arith.constant 7 : i32
    %8 = arith.subi %c7_i32, %c0_i32 : i32
    %9 = arith.index_cast %c0_i32 : i32 to index
    %c0_8 = arith.constant 0 : index
    %10 = vector.load %arg7[%9, %c0_8] : memref<8x1024xf32, #tpu.memory_space<vmem>>, vector<1x512xf32>
    %11 = arith.index_cast %8 : i32 to index
    %c512 = arith.constant 512 : index
    %12 = vector.load %arg7[%11, %c512] : memref<8x1024xf32, #tpu.memory_space<vmem>>, vector<1x512xf32>
    %c0_9 = arith.constant 0 : index
    %c0_10 = arith.constant 0 : index
    %13 = vector.load %arg2[%c0_9, %c0_10] : memref<128x1024xf32, #tpu.memory_space<vmem>>, vector<128x1024xf32>
    %cst_11 = arith.constant dense<0.000000e+00> : vector<2x1024xf32>
    %14 = tpu.matmul %7, %13, %cst_11 {dimension_numbers = #tpu.dot_dimension_numbers<[1], [0], [0], [1], [0, 0, 1, 1], [], []>} : vector<2x128xf32>, vector<128x1024xf32>, vector<2x1024xf32> -> vector<2x1024xf32>
    %15 = vector.extract_strided_slice %14 {offsets = [0, 0], sizes = [1, 512], strides = [1, 1]} : vector<2x1024xf32> to vector<1x512xf32>
    %16 = arith.addf %10, %15 : vector<1x512xf32>
    %17 = vector.extract_strided_slice %14 {offsets = [1, 512], sizes = [1, 512], strides = [1, 1]} : vector<2x1024xf32> to vector<1x512xf32>
    %18 = arith.addf %12, %17 : vector<1x512xf32>
    %19 = tpu.concatenate %16, %18 in 0 : vector<1x512xf32>, vector<1x512xf32> -> vector<2x512xf32>
    %20 = vector.extract_strided_slice %19 {offsets = [0, 0], sizes = [2, 384], strides = [1, 1]} : vector<2x512xf32> to vector<2x384xf32>
    %cst_12 = arith.constant 5.000000e-01 : f32
    %21 = vector.broadcast %cst_12 : f32 to vector<2x384xf32>
    %22 = arith.mulf %21, %20 : vector<2x384xf32>
    %23 = math.tanh %22 : vector<2x384xf32>
    %cst_13 = arith.constant 5.000000e-01 : f32
    %24 = vector.broadcast %cst_13 : f32 to vector<2x384xf32>
    %25 = arith.mulf %24, %23 : vector<2x384xf32>
    %cst_14 = arith.constant 5.000000e-01 : f32
    %26 = vector.broadcast %cst_14 : f32 to vector<2x384xf32>
    %27 = arith.addf %25, %26 : vector<2x384xf32>
    %28 = vector.extract_strided_slice %27 {offsets = [0, 0], sizes = [2, 128], strides = [1, 1]} : vector<2x384xf32> to vector<2x128xf32>
    %29 = vector.extract_strided_slice %27 {offsets = [0, 128], sizes = [2, 128], strides = [1, 1]} : vector<2x384xf32> to vector<2x128xf32>
    %30 = vector.extract_strided_slice %27 {offsets = [0, 256], sizes = [2, 128], strides = [1, 1]} : vector<2x384xf32> to vector<2x128xf32>
    %31 = vector.extract_strided_slice %19 {offsets = [0, 384], sizes = [2, 128], strides = [1, 1]} : vector<2x512xf32> to vector<2x128xf32>
    %32 = math.tanh %31 : vector<2x128xf32>
    %33 = arith.mulf %29, %7 : vector<2x128xf32>
    %34 = arith.mulf %28, %32 : vector<2x128xf32>
    %35 = arith.addf %33, %34 : vector<2x128xf32>
    %36 = math.tanh %35 : vector<2x128xf32>
    %37 = arith.mulf %30, %36 : vector<2x128xf32>
    %38 = vector.extract_strided_slice %37 {offsets = [0, 0], sizes = [1, 128], strides = [1, 1]} : vector<2x128xf32> to vector<1x128xf32>
    %39 = arith.index_cast %c0_i32 : i32 to index
    %c0_15 = arith.constant 0 : index
    %40 = vector.load %arg4[%39, %c0_15] : memref<8x128xf32, #tpu.memory_space<vmem>>, vector<1x128xf32>
    tpu.vector_store %arg4[%39, %c0_15], %38 {strides = array<i32>} : memref<8x128xf32, #tpu.memory_space<vmem>>, vector<1x128xf32>,
    %41 = vector.extract_strided_slice %37 {offsets = [1, 0], sizes = [1, 128], strides = [1, 1]} : vector<2x128xf32> to vector<1x128xf32>
    %42 = arith.index_cast %8 : i32 to index
    %c0_16 = arith.constant 0 : index
    %43 = vector.load %arg8[%42, %c0_16] : memref<8x128xf32, #tpu.memory_space<vmem>>, vector<1x128xf32>
    tpu.vector_store %arg8[%42, %c0_16], %41 {strides = array<i32>} : memref<8x128xf32, #tpu.memory_space<vmem>>, vector<1x128xf32>,
    %c1_i32 = arith.constant 1 : i32
    %c7_i32_17 = arith.constant 7 : i32
    %44 = arith.subi %c7_i32_17, %c1_i32 : i32
    %45 = arith.index_cast %c1_i32 : i32 to index
    %c0_18 = arith.constant 0 : index
    %46 = vector.load %arg7[%45, %c0_18] : memref<8x1024xf32, #tpu.memory_space<vmem>>, vector<1x512xf32>
    %47 = arith.index_cast %44 : i32 to index
    %c512_19 = arith.constant 512 : index
    %48 = vector.load %arg7[%47, %c512_19] : memref<8x1024xf32, #tpu.memory_space<vmem>>, vector<1x512xf32>
    %c0_20 = arith.constant 0 : index
    %c0_21 = arith.constant 0 : index
    %49 = vector.load %arg2[%c0_20, %c0_21] : memref<128x1024xf32, #tpu.memory_space<vmem>>, vector<128x1024xf32>
    %cst_22 = arith.constant dense<0.000000e+00> : vector<2x1024xf32>
    %50 = tpu.matmul %37, %49, %cst_22 {dimension_numbers = #tpu.dot_dimension_numbers<[1], [0], [0], [1], [0, 0, 1, 1], [], []>} : vector<2x128xf32>, vector<128x1024xf32>, vector<2x1024xf32> -> vector<2x1024xf32>
    %51 = vector.extract_strided_slice %50 {offsets = [0, 0], sizes = [1, 512], strides = [1, 1]} : vector<2x1024xf32> to vector<1x512xf32>
    %52 = arith.addf %46, %51 : vector<1x512xf32>
    %53 = vector.extract_strided_slice %50 {offsets = [1, 512], sizes = [1, 512], strides = [1, 1]} : vector<2x1024xf32> to vector<1x512xf32>
    %54 = arith.addf %48, %53 : vector<1x512xf32>
    %55 = tpu.concatenate %52, %54 in 0 : vector<1x512xf32>, vector<1x512xf32> -> vector<2x512xf32>
    %56 = vector.extract_strided_slice %55 {offsets = [0, 0], sizes = [2, 384], strides = [1, 1]} : vector<2x512xf32> to vector<2x384xf32>
    %cst_23 = arith.constant 5.000000e-01 : f32
    %57 = vector.broadcast %cst_23 : f32 to vector<2x384xf32>
    %58 = arith.mulf %57, %56 : vector<2x384xf32>
    %59 = math.tanh %58 : vector<2x384xf32>
    %cst_24 = arith.constant 5.000000e-01 : f32
    %60 = vector.broadcast %cst_24 : f32 to vector<2x384xf32>
    %61 = arith.mulf %60, %59 : vector<2x384xf32>
    %cst_25 = arith.constant 5.000000e-01 : f32
    %62 = vector.broadcast %cst_25 : f32 to vector<2x384xf32>
    %63 = arith.addf %61, %62 : vector<2x384xf32>
    %64 = vector.extract_strided_slice %63 {offsets = [0, 0], sizes = [2, 128], strides = [1, 1]} : vector<2x384xf32> to vector<2x128xf32>
    %65 = vector.extract_strided_slice %63 {offsets = [0, 128], sizes = [2, 128], strides = [1, 1]} : vector<2x384xf32> to vector<2x128xf32>
    %66 = vector.extract_strided_slice %63 {offsets = [0, 256], sizes = [2, 128], strides = [1, 1]} : vector<2x384xf32> to vector<2x128xf32>
    %67 = vector.extract_strided_slice %55 {offsets = [0, 384], sizes = [2, 128], strides = [1, 1]} : vector<2x512xf32> to vector<2x128xf32>
    %68 = math.tanh %67 : vector<2x128xf32>
    %69 = arith.mulf %65, %35 : vector<2x128xf32>
    %70 = arith.mulf %64, %68 : vector<2x128xf32>
    %71 = arith.addf %69, %70 : vector<2x128xf32>
    %72 = math.tanh %71 : vector<2x128xf32>
    %73 = arith.mulf %66, %72 : vector<2x128xf32>
    %74 = vector.extract_strided_slice %73 {offsets = [0, 0], sizes = [1, 128], strides = [1, 1]} : vector<2x128xf32> to vector<1x128xf32>
    %75 = arith.index_cast %c1_i32 : i32 to index
    %c0_26 = arith.constant 0 : index
    %76 = vector.load %arg4[%75, %c0_26] : memref<8x128xf32, #tpu.memory_space<vmem>>, vector<1x128xf32>
    tpu.vector_store %arg4[%75, %c0_26], %74 {strides = array<i32>} : memref<8x128xf32, #tpu.memory_space<vmem>>, vector<1x128xf32>,
    %77 = vector.extract_strided_slice %73 {offsets = [1, 0], sizes = [1, 128], strides = [1, 1]} : vector<2x128xf32> to vector<1x128xf32>
    %78 = arith.index_cast %44 : i32 to index
    %c0_27 = arith.constant 0 : index
    %79 = vector.load %arg8[%78, %c0_27] : memref<8x128xf32, #tpu.memory_space<vmem>>, vector<1x128xf32>
    tpu.vector_store %arg8[%78, %c0_27], %77 {strides = array<i32>} : memref<8x128xf32, #tpu.memory_space<vmem>>, vector<1x128xf32>,
    %c2_i32 = arith.constant 2 : i32
    %c7_i32_28 = arith.constant 7 : i32
    %80 = arith.subi %c7_i32_28, %c2_i32 : i32
    %81 = arith.index_cast %c2_i32 : i32 to index
    %c0_29 = arith.constant 0 : index
    %82 = vector.load %arg7[%81, %c0_29] : memref<8x1024xf32, #tpu.memory_space<vmem>>, vector<1x512xf32>
    %83 = arith.index_cast %80 : i32 to index
    %c512_30 = arith.constant 512 : index
    %84 = vector.load %arg7[%83, %c512_30] : memref<8x1024xf32, #tpu.memory_space<vmem>>, vector<1x512xf32>
    %c0_31 = arith.constant 0 : index
    %c0_32 = arith.constant 0 : index
    %85 = vector.load %arg2[%c0_31, %c0_32] : memref<128x1024xf32, #tpu.memory_space<vmem>>, vector<128x1024xf32>
    %cst_33 = arith.constant dense<0.000000e+00> : vector<2x1024xf32>
    %86 = tpu.matmul %73, %85, %cst_33 {dimension_numbers = #tpu.dot_dimension_numbers<[1], [0], [0], [1], [0, 0, 1, 1], [], []>} : vector<2x128xf32>, vector<128x1024xf32>, vector<2x1024xf32> -> vector<2x1024xf32>
    %87 = vector.extract_strided_slice %86 {offsets = [0, 0], sizes = [1, 512], strides = [1, 1]} : vector<2x1024xf32> to vector<1x512xf32>
    %88 = arith.addf %82, %87 : vector<1x512xf32>
    %89 = vector.extract_strided_slice %86 {offsets = [1, 512], sizes = [1, 512], strides = [1, 1]} : vector<2x1024xf32> to vector<1x512xf32>
    %90 = arith.addf %84, %89 : vector<1x512xf32>
    %91 = tpu.concatenate %88, %90 in 0 : vector<1x512xf32>, vector<1x512xf32> -> vector<2x512xf32>
    %92 = vector.extract_strided_slice %91 {offsets = [0, 0], sizes = [2, 384], strides = [1, 1]} : vector<2x512xf32> to vector<2x384xf32>
    %cst_34 = arith.constant 5.000000e-01 : f32
    %93 = vector.broadcast %cst_34 : f32 to vector<2x384xf32>
    %94 = arith.mulf %93, %92 : vector<2x384xf32>
    %95 = math.tanh %94 : vector<2x384xf32>
    %cst_35 = arith.constant 5.000000e-01 : f32
    %96 = vector.broadcast %cst_35 : f32 to vector<2x384xf32>
    %97 = arith.mulf %96, %95 : vector<2x384xf32>
    %cst_36 = arith.constant 5.000000e-01 : f32
    %98 = vector.broadcast %cst_36 : f32 to vector<2x384xf32>
    %99 = arith.addf %97, %98 : vector<2x384xf32>
    %100 = vector.extract_strided_slice %99 {offsets = [0, 0], sizes = [2, 128], strides = [1, 1]} : vector<2x384xf32> to vector<2x128xf32>
    %101 = vector.extract_strided_slice %99 {offsets = [0, 128], sizes = [2, 128], strides = [1, 1]} : vector<2x384xf32> to vector<2x128xf32>
    %102 = vector.extract_strided_slice %99 {offsets = [0, 256], sizes = [2, 128], strides = [1, 1]} : vector<2x384xf32> to vector<2x128xf32>
    %103 = vector.extract_strided_slice %91 {offsets = [0, 384], sizes = [2, 128], strides = [1, 1]} : vector<2x512xf32> to vector<2x128xf32>
    %104 = math.tanh %103 : vector<2x128xf32>
    %105 = arith.mulf %101, %71 : vector<2x128xf32>
    %106 = arith.mulf %100, %104 : vector<2x128xf32>
    %107 = arith.addf %105, %106 : vector<2x128xf32>
    %108 = math.tanh %107 : vector<2x128xf32>
    %109 = arith.mulf %102, %108 : vector<2x128xf32>
    %110 = vector.extract_strided_slice %109 {offsets = [0, 0], sizes = [1, 128], strides = [1, 1]} : vector<2x128xf32> to vector<1x128xf32>
    %111 = arith.index_cast %c2_i32 : i32 to index
    %c0_37 = arith.constant 0 : index
    %112 = vector.load %arg4[%111, %c0_37] : memref<8x128xf32, #tpu.memory_space<vmem>>, vector<1x128xf32>
    tpu.vector_store %arg4[%111, %c0_37], %110 {strides = array<i32>} : memref<8x128xf32, #tpu.memory_space<vmem>>, vector<1x128xf32>,
    %113 = vector.extract_strided_slice %109 {offsets = [1, 0], sizes = [1, 128], strides = [1, 1]} : vector<2x128xf32> to vector<1x128xf32>
    %114 = arith.index_cast %80 : i32 to index
    %c0_38 = arith.constant 0 : index
    %115 = vector.load %arg8[%114, %c0_38] : memref<8x128xf32, #tpu.memory_space<vmem>>, vector<1x128xf32>
    tpu.vector_store %arg8[%114, %c0_38], %113 {strides = array<i32>} : memref<8x128xf32, #tpu.memory_space<vmem>>, vector<1x128xf32>,
    %c3_i32 = arith.constant 3 : i32
    %c7_i32_39 = arith.constant 7 : i32
    %116 = arith.subi %c7_i32_39, %c3_i32 : i32
    %117 = arith.index_cast %c3_i32 : i32 to index
    %c0_40 = arith.constant 0 : index
    %118 = vector.load %arg7[%117, %c0_40] : memref<8x1024xf32, #tpu.memory_space<vmem>>, vector<1x512xf32>
    %119 = arith.index_cast %116 : i32 to index
    %c512_41 = arith.constant 512 : index
    %120 = vector.load %arg7[%119, %c512_41] : memref<8x1024xf32, #tpu.memory_space<vmem>>, vector<1x512xf32>
    %c0_42 = arith.constant 0 : index
    %c0_43 = arith.constant 0 : index
    %121 = vector.load %arg2[%c0_42, %c0_43] : memref<128x1024xf32, #tpu.memory_space<vmem>>, vector<128x1024xf32>
    %cst_44 = arith.constant dense<0.000000e+00> : vector<2x1024xf32>
    %122 = tpu.matmul %109, %121, %cst_44 {dimension_numbers = #tpu.dot_dimension_numbers<[1], [0], [0], [1], [0, 0, 1, 1], [], []>} : vector<2x128xf32>, vector<128x1024xf32>, vector<2x1024xf32> -> vector<2x1024xf32>
    %123 = vector.extract_strided_slice %122 {offsets = [0, 0], sizes = [1, 512], strides = [1, 1]} : vector<2x1024xf32> to vector<1x512xf32>
    %124 = arith.addf %118, %123 : vector<1x512xf32>
    %125 = vector.extract_strided_slice %122 {offsets = [1, 512], sizes = [1, 512], strides = [1, 1]} : vector<2x1024xf32> to vector<1x512xf32>
    %126 = arith.addf %120, %125 : vector<1x512xf32>
    %127 = tpu.concatenate %124, %126 in 0 : vector<1x512xf32>, vector<1x512xf32> -> vector<2x512xf32>
    %128 = vector.extract_strided_slice %127 {offsets = [0, 0], sizes = [2, 384], strides = [1, 1]} : vector<2x512xf32> to vector<2x384xf32>
    %cst_45 = arith.constant 5.000000e-01 : f32
    %129 = vector.broadcast %cst_45 : f32 to vector<2x384xf32>
    %130 = arith.mulf %129, %128 : vector<2x384xf32>
    %131 = math.tanh %130 : vector<2x384xf32>
    %cst_46 = arith.constant 5.000000e-01 : f32
    %132 = vector.broadcast %cst_46 : f32 to vector<2x384xf32>
    %133 = arith.mulf %132, %131 : vector<2x384xf32>
    %cst_47 = arith.constant 5.000000e-01 : f32
    %134 = vector.broadcast %cst_47 : f32 to vector<2x384xf32>
    %135 = arith.addf %133, %134 : vector<2x384xf32>
    %136 = vector.extract_strided_slice %135 {offsets = [0, 0], sizes = [2, 128], strides = [1, 1]} : vector<2x384xf32> to vector<2x128xf32>
    %137 = vector.extract_strided_slice %135 {offsets = [0, 128], sizes = [2, 128], strides = [1, 1]} : vector<2x384xf32> to vector<2x128xf32>
    %138 = vector.extract_strided_slice %135 {offsets = [0, 256], sizes = [2, 128], strides = [1, 1]} : vector<2x384xf32> to vector<2x128xf32>
    %139 = vector.extract_strided_slice %127 {offsets = [0, 384], sizes = [2, 128], strides = [1, 1]} : vector<2x512xf32> to vector<2x128xf32>
    %140 = math.tanh %139 : vector<2x128xf32>
    %141 = arith.mulf %137, %107 : vector<2x128xf32>
    %142 = arith.mulf %136, %140 : vector<2x128xf32>
    %143 = arith.addf %141, %142 : vector<2x128xf32>
    %144 = math.tanh %143 : vector<2x128xf32>
    %145 = arith.mulf %138, %144 : vector<2x128xf32>
    %146 = vector.extract_strided_slice %145 {offsets = [0, 0], sizes = [1, 128], strides = [1, 1]} : vector<2x128xf32> to vector<1x128xf32>
    %147 = arith.index_cast %c3_i32 : i32 to index
    %c0_48 = arith.constant 0 : index
    %148 = vector.load %arg4[%147, %c0_48] : memref<8x128xf32, #tpu.memory_space<vmem>>, vector<1x128xf32>
    tpu.vector_store %arg4[%147, %c0_48], %146 {strides = array<i32>} : memref<8x128xf32, #tpu.memory_space<vmem>>, vector<1x128xf32>,
    %149 = vector.extract_strided_slice %145 {offsets = [1, 0], sizes = [1, 128], strides = [1, 1]} : vector<2x128xf32> to vector<1x128xf32>
    %150 = arith.index_cast %116 : i32 to index
    %c0_49 = arith.constant 0 : index
    %151 = vector.load %arg8[%150, %c0_49] : memref<8x128xf32, #tpu.memory_space<vmem>>, vector<1x128xf32>
    tpu.vector_store %arg8[%150, %c0_49], %149 {strides = array<i32>} : memref<8x128xf32, #tpu.memory_space<vmem>>, vector<1x128xf32>,
    %c4_i32 = arith.constant 4 : i32
    %c7_i32_50 = arith.constant 7 : i32
    %152 = arith.subi %c7_i32_50, %c4_i32 : i32
    %153 = arith.index_cast %c4_i32 : i32 to index
    %c0_51 = arith.constant 0 : index
    %154 = vector.load %arg7[%153, %c0_51] : memref<8x1024xf32, #tpu.memory_space<vmem>>, vector<1x512xf32>
    %155 = arith.index_cast %152 : i32 to index
    %c512_52 = arith.constant 512 : index
    %156 = vector.load %arg7[%155, %c512_52] : memref<8x1024xf32, #tpu.memory_space<vmem>>, vector<1x512xf32>
    %c0_53 = arith.constant 0 : index
    %c0_54 = arith.constant 0 : index
    %157 = vector.load %arg2[%c0_53, %c0_54] : memref<128x1024xf32, #tpu.memory_space<vmem>>, vector<128x1024xf32>
    %cst_55 = arith.constant dense<0.000000e+00> : vector<2x1024xf32>
    %158 = tpu.matmul %145, %157, %cst_55 {dimension_numbers = #tpu.dot_dimension_numbers<[1], [0], [0], [1], [0, 0, 1, 1], [], []>} : vector<2x128xf32>, vector<128x1024xf32>, vector<2x1024xf32> -> vector<2x1024xf32>
    %159 = vector.extract_strided_slice %158 {offsets = [0, 0], sizes = [1, 512], strides = [1, 1]} : vector<2x1024xf32> to vector<1x512xf32>
    %160 = arith.addf %154, %159 : vector<1x512xf32>
    %161 = vector.extract_strided_slice %158 {offsets = [1, 512], sizes = [1, 512], strides = [1, 1]} : vector<2x1024xf32> to vector<1x512xf32>
    %162 = arith.addf %156, %161 : vector<1x512xf32>
    %163 = tpu.concatenate %160, %162 in 0 : vector<1x512xf32>, vector<1x512xf32> -> vector<2x512xf32>
    %164 = vector.extract_strided_slice %163 {offsets = [0, 0], sizes = [2, 384], strides = [1, 1]} : vector<2x512xf32> to vector<2x384xf32>
    %cst_56 = arith.constant 5.000000e-01 : f32
    %165 = vector.broadcast %cst_56 : f32 to vector<2x384xf32>
    %166 = arith.mulf %165, %164 : vector<2x384xf32>
    %167 = math.tanh %166 : vector<2x384xf32>
    %cst_57 = arith.constant 5.000000e-01 : f32
    %168 = vector.broadcast %cst_57 : f32 to vector<2x384xf32>
    %169 = arith.mulf %168, %167 : vector<2x384xf32>
    %cst_58 = arith.constant 5.000000e-01 : f32
    %170 = vector.broadcast %cst_58 : f32 to vector<2x384xf32>
    %171 = arith.addf %169, %170 : vector<2x384xf32>
    %172 = vector.extract_strided_slice %171 {offsets = [0, 0], sizes = [2, 128], strides = [1, 1]} : vector<2x384xf32> to vector<2x128xf32>
    %173 = vector.extract_strided_slice %171 {offsets = [0, 128], sizes = [2, 128], strides = [1, 1]} : vector<2x384xf32> to vector<2x128xf32>
    %174 = vector.extract_strided_slice %171 {offsets = [0, 256], sizes = [2, 128], strides = [1, 1]} : vector<2x384xf32> to vector<2x128xf32>
    %175 = vector.extract_strided_slice %163 {offsets = [0, 384], sizes = [2, 128], strides = [1, 1]} : vector<2x512xf32> to vector<2x128xf32>
    %176 = math.tanh %175 : vector<2x128xf32>
    %177 = arith.mulf %173, %143 : vector<2x128xf32>
    %178 = arith.mulf %172, %176 : vector<2x128xf32>
    %179 = arith.addf %177, %178 : vector<2x128xf32>
    %180 = math.tanh %179 : vector<2x128xf32>
    %181 = arith.mulf %174, %180 : vector<2x128xf32>
    %182 = vector.extract_strided_slice %181 {offsets = [0, 0], sizes = [1, 128], strides = [1, 1]} : vector<2x128xf32> to vector<1x128xf32>
    %183 = arith.index_cast %c4_i32 : i32 to index
    %c0_59 = arith.constant 0 : index
    %184 = vector.load %arg4[%183, %c0_59] : memref<8x128xf32, #tpu.memory_space<vmem>>, vector<1x128xf32>
    tpu.vector_store %arg4[%183, %c0_59], %182 {strides = array<i32>} : memref<8x128xf32, #tpu.memory_space<vmem>>, vector<1x128xf32>,
    %185 = vector.extract_strided_slice %181 {offsets = [1, 0], sizes = [1, 128], strides = [1, 1]} : vector<2x128xf32> to vector<1x128xf32>
    %186 = arith.index_cast %152 : i32 to index
    %c0_60 = arith.constant 0 : index
    %187 = vector.load %arg8[%186, %c0_60] : memref<8x128xf32, #tpu.memory_space<vmem>>, vector<1x128xf32>
    tpu.vector_store %arg8[%186, %c0_60], %185 {strides = array<i32>} : memref<8x128xf32, #tpu.memory_space<vmem>>, vector<1x128xf32>,
    %c5_i32 = arith.constant 5 : i32
    %c7_i32_61 = arith.constant 7 : i32
    %188 = arith.subi %c7_i32_61, %c5_i32 : i32
    %189 = arith.index_cast %c5_i32 : i32 to index
    %c0_62 = arith.constant 0 : index
    %190 = vector.load %arg7[%189, %c0_62] : memref<8x1024xf32, #tpu.memory_space<vmem>>, vector<1x512xf32>
    %191 = arith.index_cast %188 : i32 to index
    %c512_63 = arith.constant 512 : index
    %192 = vector.load %arg7[%191, %c512_63] : memref<8x1024xf32, #tpu.memory_space<vmem>>, vector<1x512xf32>
    %c0_64 = arith.constant 0 : index
    %c0_65 = arith.constant 0 : index
    %193 = vector.load %arg2[%c0_64, %c0_65] : memref<128x1024xf32, #tpu.memory_space<vmem>>, vector<128x1024xf32>
    %cst_66 = arith.constant dense<0.000000e+00> : vector<2x1024xf32>
    %194 = tpu.matmul %181, %193, %cst_66 {dimension_numbers = #tpu.dot_dimension_numbers<[1], [0], [0], [1], [0, 0, 1, 1], [], []>} : vector<2x128xf32>, vector<128x1024xf32>, vector<2x1024xf32> -> vector<2x1024xf32>
    %195 = vector.extract_strided_slice %194 {offsets = [0, 0], sizes = [1, 512], strides = [1, 1]} : vector<2x1024xf32> to vector<1x512xf32>
    %196 = arith.addf %190, %195 : vector<1x512xf32>
    %197 = vector.extract_strided_slice %194 {offsets = [1, 512], sizes = [1, 512], strides = [1, 1]} : vector<2x1024xf32> to vector<1x512xf32>
    %198 = arith.addf %192, %197 : vector<1x512xf32>
    %199 = tpu.concatenate %196, %198 in 0 : vector<1x512xf32>, vector<1x512xf32> -> vector<2x512xf32>
    %200 = vector.extract_strided_slice %199 {offsets = [0, 0], sizes = [2, 384], strides = [1, 1]} : vector<2x512xf32> to vector<2x384xf32>
    %cst_67 = arith.constant 5.000000e-01 : f32
    %201 = vector.broadcast %cst_67 : f32 to vector<2x384xf32>
    %202 = arith.mulf %201, %200 : vector<2x384xf32>
    %203 = math.tanh %202 : vector<2x384xf32>
    %cst_68 = arith.constant 5.000000e-01 : f32
    %204 = vector.broadcast %cst_68 : f32 to vector<2x384xf32>
    %205 = arith.mulf %204, %203 : vector<2x384xf32>
    %cst_69 = arith.constant 5.000000e-01 : f32
    %206 = vector.broadcast %cst_69 : f32 to vector<2x384xf32>
    %207 = arith.addf %205, %206 : vector<2x384xf32>
    %208 = vector.extract_strided_slice %207 {offsets = [0, 0], sizes = [2, 128], strides = [1, 1]} : vector<2x384xf32> to vector<2x128xf32>
    %209 = vector.extract_strided_slice %207 {offsets = [0, 128], sizes = [2, 128], strides = [1, 1]} : vector<2x384xf32> to vector<2x128xf32>
    %210 = vector.extract_strided_slice %207 {offsets = [0, 256], sizes = [2, 128], strides = [1, 1]} : vector<2x384xf32> to vector<2x128xf32>
    %211 = vector.extract_strided_slice %199 {offsets = [0, 384], sizes = [2, 128], strides = [1, 1]} : vector<2x512xf32> to vector<2x128xf32>
    %212 = math.tanh %211 : vector<2x128xf32>
    %213 = arith.mulf %209, %179 : vector<2x128xf32>
    %214 = arith.mulf %208, %212 : vector<2x128xf32>
    %215 = arith.addf %213, %214 : vector<2x128xf32>
    %216 = math.tanh %215 : vector<2x128xf32>
    %217 = arith.mulf %210, %216 : vector<2x128xf32>
    %218 = vector.extract_strided_slice %217 {offsets = [0, 0], sizes = [1, 128], strides = [1, 1]} : vector<2x128xf32> to vector<1x128xf32>
    %219 = arith.index_cast %c5_i32 : i32 to index
    %c0_70 = arith.constant 0 : index
    %220 = vector.load %arg4[%219, %c0_70] : memref<8x128xf32, #tpu.memory_space<vmem>>, vector<1x128xf32>
    tpu.vector_store %arg4[%219, %c0_70], %218 {strides = array<i32>} : memref<8x128xf32, #tpu.memory_space<vmem>>, vector<1x128xf32>,
    %221 = vector.extract_strided_slice %217 {offsets = [1, 0], sizes = [1, 128], strides = [1, 1]} : vector<2x128xf32> to vector<1x128xf32>
    %222 = arith.index_cast %188 : i32 to index
    %c0_71 = arith.constant 0 : index
    %223 = vector.load %arg8[%222, %c0_71] : memref<8x128xf32, #tpu.memory_space<vmem>>, vector<1x128xf32>
    tpu.vector_store %arg8[%222, %c0_71], %221 {strides = array<i32>} : memref<8x128xf32, #tpu.memory_space<vmem>>, vector<1x128xf32>,
    %c6_i32 = arith.constant 6 : i32
    %c7_i32_72 = arith.constant 7 : i32
    %224 = arith.subi %c7_i32_72, %c6_i32 : i32
    %225 = arith.index_cast %c6_i32 : i32 to index
    %c0_73 = arith.constant 0 : index
    %226 = vector.load %arg7[%225, %c0_73] : memref<8x1024xf32, #tpu.memory_space<vmem>>, vector<1x512xf32>
    %227 = arith.index_cast %224 : i32 to index
    %c512_74 = arith.constant 512 : index
    %228 = vector.load %arg7[%227, %c512_74] : memref<8x1024xf32, #tpu.memory_space<vmem>>, vector<1x512xf32>
    %c0_75 = arith.constant 0 : index
    %c0_76 = arith.constant 0 : index
    %229 = vector.load %arg2[%c0_75, %c0_76] : memref<128x1024xf32, #tpu.memory_space<vmem>>, vector<128x1024xf32>
    %cst_77 = arith.constant dense<0.000000e+00> : vector<2x1024xf32>
    %230 = tpu.matmul %217, %229, %cst_77 {dimension_numbers = #tpu.dot_dimension_numbers<[1], [0], [0], [1], [0, 0, 1, 1], [], []>} : vector<2x128xf32>, vector<128x1024xf32>, vector<2x1024xf32> -> vector<2x1024xf32>
    %231 = vector.extract_strided_slice %230 {offsets = [0, 0], sizes = [1, 512], strides = [1, 1]} : vector<2x1024xf32> to vector<1x512xf32>
    %232 = arith.addf %226, %231 : vector<1x512xf32>
    %233 = vector.extract_strided_slice %230 {offsets = [1, 512], sizes = [1, 512], strides = [1, 1]} : vector<2x1024xf32> to vector<1x512xf32>
    %234 = arith.addf %228, %233 : vector<1x512xf32>
    %235 = tpu.concatenate %232, %234 in 0 : vector<1x512xf32>, vector<1x512xf32> -> vector<2x512xf32>
    %236 = vector.extract_strided_slice %235 {offsets = [0, 0], sizes = [2, 384], strides = [1, 1]} : vector<2x512xf32> to vector<2x384xf32>
    %cst_78 = arith.constant 5.000000e-01 : f32
    %237 = vector.broadcast %cst_78 : f32 to vector<2x384xf32>
    %238 = arith.mulf %237, %236 : vector<2x384xf32>
    %239 = math.tanh %238 : vector<2x384xf32>
    %cst_79 = arith.constant 5.000000e-01 : f32
    %240 = vector.broadcast %cst_79 : f32 to vector<2x384xf32>
    %241 = arith.mulf %240, %239 : vector<2x384xf32>
    %cst_80 = arith.constant 5.000000e-01 : f32
    %242 = vector.broadcast %cst_80 : f32 to vector<2x384xf32>
    %243 = arith.addf %241, %242 : vector<2x384xf32>
    %244 = vector.extract_strided_slice %243 {offsets = [0, 0], sizes = [2, 128], strides = [1, 1]} : vector<2x384xf32> to vector<2x128xf32>
    %245 = vector.extract_strided_slice %243 {offsets = [0, 128], sizes = [2, 128], strides = [1, 1]} : vector<2x384xf32> to vector<2x128xf32>
    %246 = vector.extract_strided_slice %243 {offsets = [0, 256], sizes = [2, 128], strides = [1, 1]} : vector<2x384xf32> to vector<2x128xf32>
    %247 = vector.extract_strided_slice %235 {offsets = [0, 384], sizes = [2, 128], strides = [1, 1]} : vector<2x512xf32> to vector<2x128xf32>
    %248 = math.tanh %247 : vector<2x128xf32>
    %249 = arith.mulf %245, %215 : vector<2x128xf32>
    %250 = arith.mulf %244, %248 : vector<2x128xf32>
    %251 = arith.addf %249, %250 : vector<2x128xf32>
    %252 = math.tanh %251 : vector<2x128xf32>
    %253 = arith.mulf %246, %252 : vector<2x128xf32>
    %254 = vector.extract_strided_slice %253 {offsets = [0, 0], sizes = [1, 128], strides = [1, 1]} : vector<2x128xf32> to vector<1x128xf32>
    %255 = arith.index_cast %c6_i32 : i32 to index
    %c0_81 = arith.constant 0 : index
    %256 = vector.load %arg4[%255, %c0_81] : memref<8x128xf32, #tpu.memory_space<vmem>>, vector<1x128xf32>
    tpu.vector_store %arg4[%255, %c0_81], %254 {strides = array<i32>} : memref<8x128xf32, #tpu.memory_space<vmem>>, vector<1x128xf32>,
    %257 = vector.extract_strided_slice %253 {offsets = [1, 0], sizes = [1, 128], strides = [1, 1]} : vector<2x128xf32> to vector<1x128xf32>
    %258 = arith.index_cast %224 : i32 to index
    %c0_82 = arith.constant 0 : index
    %259 = vector.load %arg8[%258, %c0_82] : memref<8x128xf32, #tpu.memory_space<vmem>>, vector<1x128xf32>
    tpu.vector_store %arg8[%258, %c0_82], %257 {strides = array<i32>} : memref<8x128xf32, #tpu.memory_space<vmem>>, vector<1x128xf32>,
    %c7_i32_83 = arith.constant 7 : i32
    %c7_i32_84 = arith.constant 7 : i32
    %260 = arith.subi %c7_i32_84, %c7_i32_83 : i32
    %261 = arith.index_cast %c7_i32_83 : i32 to index
    %c0_85 = arith.constant 0 : index
    %262 = vector.load %arg7[%261, %c0_85] : memref<8x1024xf32, #tpu.memory_space<vmem>>, vector<1x512xf32>
    %263 = arith.index_cast %260 : i32 to index
    %c512_86 = arith.constant 512 : index
    %264 = vector.load %arg7[%263, %c512_86] : memref<8x1024xf32, #tpu.memory_space<vmem>>, vector<1x512xf32>
    %c0_87 = arith.constant 0 : index
    %c0_88 = arith.constant 0 : index
    %265 = vector.load %arg2[%c0_87, %c0_88] : memref<128x1024xf32, #tpu.memory_space<vmem>>, vector<128x1024xf32>
    %cst_89 = arith.constant dense<0.000000e+00> : vector<2x1024xf32>
    %266 = tpu.matmul %253, %265, %cst_89 {dimension_numbers = #tpu.dot_dimension_numbers<[1], [0], [0], [1], [0, 0, 1, 1], [], []>} : vector<2x128xf32>, vector<128x1024xf32>, vector<2x1024xf32> -> vector<2x1024xf32>
    %267 = vector.extract_strided_slice %266 {offsets = [0, 0], sizes = [1, 512], strides = [1, 1]} : vector<2x1024xf32> to vector<1x512xf32>
    %268 = arith.addf %262, %267 : vector<1x512xf32>
    %269 = vector.extract_strided_slice %266 {offsets = [1, 512], sizes = [1, 512], strides = [1, 1]} : vector<2x1024xf32> to vector<1x512xf32>
    %270 = arith.addf %264, %269 : vector<1x512xf32>
    %271 = tpu.concatenate %268, %270 in 0 : vector<1x512xf32>, vector<1x512xf32> -> vector<2x512xf32>
    %272 = vector.extract_strided_slice %271 {offsets = [0, 0], sizes = [2, 384], strides = [1, 1]} : vector<2x512xf32> to vector<2x384xf32>
    %cst_90 = arith.constant 5.000000e-01 : f32
    %273 = vector.broadcast %cst_90 : f32 to vector<2x384xf32>
    %274 = arith.mulf %273, %272 : vector<2x384xf32>
    %275 = math.tanh %274 : vector<2x384xf32>
    %cst_91 = arith.constant 5.000000e-01 : f32
    %276 = vector.broadcast %cst_91 : f32 to vector<2x384xf32>
    %277 = arith.mulf %276, %275 : vector<2x384xf32>
    %cst_92 = arith.constant 5.000000e-01 : f32
    %278 = vector.broadcast %cst_92 : f32 to vector<2x384xf32>
    %279 = arith.addf %277, %278 : vector<2x384xf32>
    %280 = vector.extract_strided_slice %279 {offsets = [0, 0], sizes = [2, 128], strides = [1, 1]} : vector<2x384xf32> to vector<2x128xf32>
    %281 = vector.extract_strided_slice %279 {offsets = [0, 128], sizes = [2, 128], strides = [1, 1]} : vector<2x384xf32> to vector<2x128xf32>
    %282 = vector.extract_strided_slice %279 {offsets = [0, 256], sizes = [2, 128], strides = [1, 1]} : vector<2x384xf32> to vector<2x128xf32>
    %283 = vector.extract_strided_slice %271 {offsets = [0, 384], sizes = [2, 128], strides = [1, 1]} : vector<2x512xf32> to vector<2x128xf32>
    %284 = math.tanh %283 : vector<2x128xf32>
    %285 = arith.mulf %281, %251 : vector<2x128xf32>
    %286 = arith.mulf %280, %284 : vector<2x128xf32>
    %287 = arith.addf %285, %286 : vector<2x128xf32>
    %288 = math.tanh %287 : vector<2x128xf32>
    %289 = arith.mulf %282, %288 : vector<2x128xf32>
    %290 = vector.extract_strided_slice %289 {offsets = [0, 0], sizes = [1, 128], strides = [1, 1]} : vector<2x128xf32> to vector<1x128xf32>
    %291 = arith.index_cast %c7_i32_83 : i32 to index
    %c0_93 = arith.constant 0 : index
    %292 = vector.load %arg4[%291, %c0_93] : memref<8x128xf32, #tpu.memory_space<vmem>>, vector<1x128xf32>
    tpu.vector_store %arg4[%291, %c0_93], %290 {strides = array<i32>} : memref<8x128xf32, #tpu.memory_space<vmem>>, vector<1x128xf32>,
    %293 = vector.extract_strided_slice %289 {offsets = [1, 0], sizes = [1, 128], strides = [1, 1]} : vector<2x128xf32> to vector<1x128xf32>
    %294 = arith.index_cast %260 : i32 to index
    %c0_94 = arith.constant 0 : index
    %295 = vector.load %arg8[%294, %c0_94] : memref<8x128xf32, #tpu.memory_space<vmem>>, vector<1x128xf32>
    tpu.vector_store %arg8[%294, %c0_94], %293 {strides = array<i32>} : memref<8x128xf32, #tpu.memory_space<vmem>>, vector<1x128xf32>,
    %c8_i32 = arith.constant 8 : i32
    %c0_95 = arith.constant 0 : index
    %c0_96 = arith.constant 0 : index
    %296 = vector.load %arg4[%c0_95, %c0_96] : memref<8x128xf32, #tpu.memory_space<vmem>>, vector<8x128xf32>
    %c0_97 = arith.constant 0 : index
    %c0_98 = arith.constant 0 : index
    %297 = vector.load %arg8[%c0_97, %c0_98] : memref<8x128xf32, #tpu.memory_space<vmem>>, vector<8x128xf32>
    %298 = arith.addf %296, %297 : vector<8x128xf32>
    %c0_99 = arith.constant 0 : index
    %c0_100 = arith.constant 0 : index
    %299 = vector.load %arg4[%c0_99, %c0_100] : memref<8x128xf32, #tpu.memory_space<vmem>>, vector<8x128xf32>
    tpu.vector_store %arg4[%c0_99, %c0_100], %298 {strides = array<i32>} : memref<8x128xf32, #tpu.memory_space<vmem>>, vector<8x128xf32>,
    %300 = vector.extract_strided_slice %289 {offsets = [0, 0], sizes = [1, 128], strides = [1, 1]} : vector<2x128xf32> to vector<1x128xf32>
    %301 = vector.extract_strided_slice %289 {offsets = [1, 0], sizes = [1, 128], strides = [1, 1]} : vector<2x128xf32> to vector<1x128xf32>
    %302 = arith.addf %300, %301 : vector<1x128xf32>
    %c0_101 = arith.constant 0 : index
    %c0_102 = arith.constant 0 : index
    %303 = vector.load %arg5[%c0_101, %c0_102] : memref<1x128xf32, #tpu.memory_space<vmem>>, vector<1x128xf32>
    tpu.vector_store %arg5[%c0_101, %c0_102], %302 {strides = array<i32>} : memref<1x128xf32, #tpu.memory_space<vmem>>, vector<1x128xf32>,
    %304 = vector.extract_strided_slice %287 {offsets = [0, 0], sizes = [1, 128], strides = [1, 1]} : vector<2x128xf32> to vector<1x128xf32>
    %305 = vector.extract_strided_slice %287 {offsets = [1, 0], sizes = [1, 128], strides = [1, 1]} : vector<2x128xf32> to vector<1x128xf32>
    %306 = arith.addf %304, %305 : vector<1x128xf32>
    %c0_103 = arith.constant 0 : index
    %c0_104 = arith.constant 0 : index
    %307 = vector.load %arg6[%c0_103, %c0_104] : memref<1x128xf32, #tpu.memory_space<vmem>>, vector<1x128xf32>
    tpu.vector_store %arg6[%c0_103, %c0_104], %306 {strides = array<i32>} : memref<1x128xf32, #tpu.memory_space<vmem>>, vector<1x128xf32>,
    return
  }
}

</mosaic_0001>

<bundles_post_ra>
// kernel: basic_lstm_forward.1
= control target key start
LH: loop header
LB: loop body
LE: loop exit
PB: predicated region body
PF: predicated region fallthrough
CT: control target
= control target key end

     0   :  { %vm56_vm0 = vcmask 130048   ;;  %s7060_s0 = inlined_call_operand.vmem [shape: f32[8,16], index: 0, kind: input, shape index: {}]   ;;  %s7061_s1 = inlined_call_operand.vmem [shape: f32[16,1024], index: 1, kind: input, shape index: {}]   ;;  %s7062_s2 = inlined_call_operand.vmem [shape: f32[128,1024], index: 2, kind: input, shape index: {}]   ;;  %s7063_s3 = inlined_call_operand.vmem [shape: f32[1,1024], index: 3, kind: input, shape index: {}]   ;;  %s7064_s4 = inlined_call_operand.hbm [shape: f32[8,128], index: 4, kind: output, shape index: {0}]   ;;  %s7065_s5 = inlined_call_operand.vmem [shape: f32[1,128], index: 5, kind: output, shape index: {1}]   ;;  %s7066_s6 = inlined_call_operand.vmem [shape: f32[1,128], index: 6, kind: output, shape index: {2}]  }
   0x1   :  { %v32_v0 = vld [vmem:[%s7061_s1 + $0x50] sm:$0xff]  ;;  %v33_v1 = vld [vmem:[%s7061_s1 + $0x58] sm:$0xff]  ;;  %v30_v6 = vld [vmem:[%s7061_s1 + $0x40] sm:$0xff] }
   0x2   :  { %v24_v2 = vld [vmem:[%s7061_s1 + $0x10] sm:$0xff]  ;;  %114 = vmatpush.msra.mxu2 %v32_v0  ;;  %134 = vmatpush.msra.mxu3 %v33_v1  ;;  %v25_v3 = vld [vmem:[%s7061_s1 + $0x18] sm:$0xff]  ;;  %v31_v9 = vld [vmem:[%s7061_s1 + $0x48] sm:$0xff] }
   0x3   :  { %v36_v4 = vld [vmem:[%s7061_s1 + $0x70] sm:$0xff]  ;;  %v37_v5 = vld [vmem:[%s7061_s1 + $0x78] sm:$0xff]  ;;  %v3318_v10 = vld [vmem:[%s7060_s0] sm:$0xff]  ;;  %74 = vmatpush.msra.mxu0 %v30_v6  ;;  %94 = vmatpush.msra.mxu1 %v31_v9 }
   0x4   :  { %115 = vmatpush.msra.mxu2 %v24_v2  ;;  %135 = vmatpush.msra.mxu3 %v25_v3  ;;  %v28_v7 = vld [vmem:[%s7061_s1 + $0x30] sm:$0xff]  ;;  %v29_v8 = vld [vmem:[%s7061_s1 + $0x38] sm:$0xff]  ;;  %v22_v13 = vld [vmem:[%s7061_s1] sm:$0xff] }
   0x5   :  { %v3323_v11 = vld [vmem:[%s7062_s2 + $0x3d0] sm:$0xff]  ;;  %v3328_v12 = vld [vmem:[%s7062_s2 + $0x3d8] sm:$0xff]  ;;  %v23_v14 = vld [vmem:[%s7061_s1 + $0x8] sm:$0xff]  ;;  %3134 = vmatmul.msk.f32.vlgmr.msra.gmra.mxu2 %vm56_vm0, %v3318_v10  ;;  %3135 = vmatmul.msk.f32.vlgmr.msra.gmra.mxu3 %vm56_vm0, %v3318_v10 }
   0x6   :  { %194 = vmatpush.msrb.mxu2 %v36_v4  ;;  %214 = vmatpush.msrb.mxu3 %v37_v5  ;;  %v3343_v15 = vld [vmem:[%s7062_s2 + $0x390] sm:$0xff]  ;;  %v3348_v16 = vld [vmem:[%s7062_s2 + $0x398] sm:$0xff]  ;;  %v34_v17 = vld [vmem:[%s7061_s1 + $0x60] sm:$0xff] }
   0x7   :  { %v35_v18 = vld [vmem:[%s7061_s1 + $0x68] sm:$0xff]  ;;  %75 = vmatpush.msra.mxu0 %v22_v13  ;;  %95 = vmatpush.msra.mxu1 %v23_v14  ;;  %v3361_v19 = vld [vmem:[%s7062_s2 + $0x350] sm:$0xff]  ;;  %v3366_v20 = vld [vmem:[%s7062_s2 + $0x358] sm:$0xff] }
   0x8   :  { %195 = vmatpush.msrb.mxu2 %v28_v7  ;;  %215 = vmatpush.msrb.mxu3 %v29_v8  ;;  %v26_v21 = vld [vmem:[%s7061_s1 + $0x20] sm:$0xff]  ;;  %v27_v22 = vld [vmem:[%s7061_s1 + $0x28] sm:$0xff]  ;;  %v3391_v25 = vld [vmem:[%s7062_s2 + $0x310] sm:$0xff] }
   0x9   :  { %154 = vmatpush.msrb.mxu0 %v34_v17  ;;  %174 = vmatpush.msrb.mxu1 %v35_v18  ;;  %v3381_v23 = vld [vmem:[%s7062_s2 + $0x3c0] sm:$0xff]  ;;  %v3386_v24 = vld [vmem:[%s7062_s2 + $0x3c8] sm:$0xff]  ;;  %v3396_v26 = vld [vmem:[%s7062_s2 + $0x318] sm:$0xff] }
   0xa   :  { %399 = vmatpush.msra.mxu2 %v3323_v11  ;;  %419 = vmatpush.msra.mxu3 %v3328_v12  ;;  %v3405_v27 = vld [vmem:[%s7062_s2 + $0x380] sm:$0xff]  ;;  %v3410_v28 = vld [vmem:[%s7062_s2 + $0x388] sm:$0xff]  ;;  %v3417_v29 = vld [vmem:[%s7062_s2 + $0x2d0] sm:$0xff] }
   0xb   :  { %155 = vmatpush.msrb.mxu0 %v26_v21  ;;  %175 = vmatpush.msrb.mxu1 %v27_v22  ;;  %v3422_v30 = vld [vmem:[%s7062_s2 + $0x2d8] sm:$0xff]  ;;  %v3429_v31 = vld [vmem:[%s7062_s2 + $0x340] sm:$0xff]  ;;  %v3434_v32 = vld [vmem:[%s7062_s2 + $0x348] sm:$0xff]  ;;  %v7069_v22 = vmov 0.0  }
   0xc   :  { %400 = vmatpush.msra.mxu2 %v3343_v15  ;;  %420 = vmatpush.msra.mxu3 %v3348_v16  ;;  %v3441_v33 = vld [vmem:[%s7062_s2 + $0x290] sm:$0xff]  ;;  %v3446_v34 = vld [vmem:[%s7062_s2 + $0x298] sm:$0xff]  ;;  %v3453_v35 = vld [vmem:[%s7062_s2 + $0x300] sm:$0xff] }
   0xd   :  { %3132 = vmatmul.msk.f32.vlgmr.msra.gmra.mxu0 %vm56_vm0, %v3318_v10  ;;  %3133 = vmatmul.msk.f32.vlgmr.msra.gmra.mxu1 %vm56_vm0, %v3318_v10  ;;  %v3458_v36 = vld [vmem:[%s7062_s2 + $0x308] sm:$0xff]  ;;  %v3465_v37 = vld [vmem:[%s7062_s2 + $0x250] sm:$0xff]  ;;  %v3470_v38 = vld [vmem:[%s7062_s2 + $0x258] sm:$0xff] }
   0xe   :  { %401 = vmatpush.msra.mxu2 %v3361_v19  ;;  %421 = vmatpush.msra.mxu3 %v3366_v20  ;;  %v3477_v39 = vld [vmem:[%s7062_s2 + $0x2c0] sm:$0xff]  ;;  %v3482_v40 = vld [vmem:[%s7062_s2 + $0x2c8] sm:$0xff]  ;;  %v3489_v41 = vld [vmem:[%s7062_s2 + $0x210] sm:$0xff] }
   0xf   :  { %359 = vmatpush.msra.mxu0 %v3381_v23  ;;  %379 = vmatpush.msra.mxu1 %v3386_v24  ;;  %v3494_v42 = vld [vmem:[%s7062_s2 + $0x218] sm:$0xff]  ;;  %v3501_v43 = vld [vmem:[%s7062_s2 + $0x280] sm:$0xff]  ;;  %v3506_v44 = vld [vmem:[%s7062_s2 + $0x288] sm:$0xff] }
  0x10   :  { %402 = vmatpush.msra.mxu2 %v3391_v25  ;;  %422 = vmatpush.msra.mxu3 %v3396_v26  ;;  %v3513_v45 = vld [vmem:[%s7062_s2 + $0x1d0] sm:$0xff]  ;;  %v3518_v46 = vld [vmem:[%s7062_s2 + $0x1d8] sm:$0xff]  ;;  %v3525_v47 = vld [vmem:[%s7062_s2 + $0x240] sm:$0xff] }
  0x11   :  { %360 = vmatpush.msra.mxu0 %v3405_v27  ;;  %380 = vmatpush.msra.mxu1 %v3410_v28  ;;  %v3530_v48 = vld [vmem:[%s7062_s2 + $0x248] sm:$0xff]  ;;  %v3537_v49 = vld [vmem:[%s7062_s2 + $0x190] sm:$0xff]  ;;  %v3542_v50 = vld [vmem:[%s7062_s2 + $0x198] sm:$0xff] }
  0x12   :  { %403 = vmatpush.msra.mxu2 %v3417_v29  ;;  %423 = vmatpush.msra.mxu3 %v3422_v30  ;;  %v3549_v51 = vld [vmem:[%s7062_s2 + $0x200] sm:$0xff]  ;;  %v3554_v52 = vld [vmem:[%s7062_s2 + $0x208] sm:$0xff]  ;;  %v3561_v53 = vld [vmem:[%s7062_s2 + $0x150] sm:$0xff] }
  0x13   :  { %361 = vmatpush.msra.mxu0 %v3429_v31  ;;  %381 = vmatpush.msra.mxu1 %v3434_v32  ;;  %v3566_v54 = vld [vmem:[%s7062_s2 + $0x158] sm:$0xff]  ;;  %v3573_v55 = vld [vmem:[%s7062_s2 + $0x1c0] sm:$0xff]  ;;  %v3578_v56 = vld [vmem:[%s7062_s2 + $0x1c8] sm:$0xff] }
  0x14   :  { %404 = vmatpush.msra.mxu2 %v3441_v33  ;;  %424 = vmatpush.msra.mxu3 %v3446_v34  ;;  %v3585_v57 = vld [vmem:[%s7062_s2 + $0x110] sm:$0xff]  ;;  %v3590_v58 = vld [vmem:[%s7062_s2 + $0x118] sm:$0xff]  ;;  %v3599_v59 = vld [vmem:[%s7062_s2 + $0x180] sm:$0xff] }
  0x15   :  { %362 = vmatpush.msra.mxu0 %v3453_v35  ;;  %382 = vmatpush.msra.mxu1 %v3458_v36  ;;  %v3604_v60 = vld [vmem:[%s7062_s2 + $0x188] sm:$0xff]  ;;  %v3611_v61 = vld [vmem:[%s7062_s2 + $0xd0] sm:$0xff]  ;;  %v3616_v62 = vld [vmem:[%s7062_s2 + $0xd8] sm:$0xff] }
  0x16   :  { %405 = vmatpush.msra.mxu2 %v3465_v37  ;;  %425 = vmatpush.msra.mxu3 %v3470_v38  ;;  %v3625_v63 = vld [vmem:[%s7062_s2 + $0x140] sm:$0xff]  ;;  %v3630_v0 = vld [vmem:[%s7062_s2 + $0x148] sm:$0xff]  ;;  %v3637_v1 = vld [vmem:[%s7062_s2 + $0x90] sm:$0xff] }
  0x17   :  { %363 = vmatpush.msra.mxu0 %v3477_v39  ;;  %383 = vmatpush.msra.mxu1 %v3482_v40  ;;  %v3642_v2 = vld [vmem:[%s7062_s2 + $0x98] sm:$0xff]  ;;  %v3649_v3 = vld [vmem:[%s7062_s2 + $0x100] sm:$0xff]  ;;  %v3654_v4 = vld [vmem:[%s7062_s2 + $0x108] sm:$0xff] }
  0x18   :  { %406 = vmatpush.msra.mxu2 %v3489_v41  ;;  %426 = vmatpush.msra.mxu3 %v3494_v42  ;;  %v3661_v5 = vld [vmem:[%s7062_s2 + $0x50] sm:$0xff]  ;;  %v3666_v6 = vld [vmem:[%s7062_s2 + $0x58] sm:$0xff]  ;;  %v3673_v7 = vld [vmem:[%s7062_s2 + $0xc0] sm:$0xff] }
  0x19   :  { %364 = vmatpush.msra.mxu0 %v3501_v43  ;;  %384 = vmatpush.msra.mxu1 %v3506_v44  ;;  %7377 = vst [vmem:[#allocation7_spill] sm:$0xff] %v3666_v6  ;;  %v3680_v8 = vld [vmem:[%s7062_s2 + $0xc8] sm:$0xff]  ;;  %v3685_v9 = vld [vmem:[%s7062_s2 + $0x10] sm:$0xff]  ;;  %v3692_v13 = vld [vmem:[%s7062_s2 + $0x18] sm:$0xff] }
  0x1a   :  { %407 = vmatpush.msra.mxu2 %v3513_v45  ;;  %427 = vmatpush.msra.mxu3 %v3518_v46  ;;  %7378 = vst [vmem:[#allocation8_spill] sm:$0xff] %v3685_v9  ;;  %v3702_v14 = vld [vmem:[%s7062_s2 + $0x3f0] sm:$0xff]  ;;  %v3707_v17 = vld [vmem:[%s7062_s2 + $0x3f8] sm:$0xff]  ;;  %v3715_v18 = vld [vmem:[%s7062_s2 + $0x80] sm:$0xff] }
  0x1b   :  { %365 = vmatpush.msra.mxu0 %v3525_v47  ;;  %385 = vmatpush.msra.mxu1 %v3530_v48  ;;  %7379 = vst [vmem:[#allocation9_spill] sm:$0xff] %v3692_v13  ;;  %v3720_v21 = vld [vmem:[%s7062_s2 + $0x88] sm:$0xff] }
  0x1c   :  { %408 = vmatpush.msra.mxu2 %v3537_v49  ;;  %428 = vmatpush.msra.mxu3 %v3542_v50  ;;  %7380 = vst [vmem:[#allocation10_spill] sm:$0xff] %v3702_v14 }
  0x1d   :  { %366 = vmatpush.msra.mxu0 %v3549_v51  ;;  %386 = vmatpush.msra.mxu1 %v3554_v52  ;;  %7381 = vst [vmem:[#allocation11_spill] sm:$0xff] %v3707_v17 }
  0x1e   :  { %409 = vmatpush.msra.mxu2 %v3561_v53  ;;  %429 = vmatpush.msra.mxu3 %v3566_v54  ;;  %7382 = vst [vmem:[#allocation12_spill] sm:$0xff] %v3715_v18 }
  0x1f   :  { %367 = vmatpush.msra.mxu0 %v3573_v55  ;;  %387 = vmatpush.msra.mxu1 %v3578_v56  ;;  %7383 = vst [vmem:[#allocation13_spill] sm:$0xff] %v3720_v21 }
  0x20   :  { %410 = vmatpush.msra.mxu2 %v3585_v57  ;;  %430 = vmatpush.msra.mxu3 %v3590_v58 }
  0x21   :  { %3138 = vmatmul.msk.f32.vlgmr.msrb.gmra.mxu2 %vm56_vm0, %v3318_v10  ;;  %3139 = vmatmul.msk.f32.vlgmr.msrb.gmra.mxu3 %vm56_vm0, %v3318_v10 }
  0x22   :  { %368 = vmatpush.msra.mxu0 %v3599_v59  ;;  %388 = vmatpush.msra.mxu1 %v3604_v60 }
  0x23   :  { %411 = vmatpush.msra.mxu2 %v3611_v61  ;;  %431 = vmatpush.msra.mxu3 %v3616_v62 }
  0x24   :  { %369 = vmatpush.msra.mxu0 %v3625_v63  ;;  %389 = vmatpush.msra.mxu1 %v3630_v0 }
  0x25   :  { %412 = vmatpush.msra.mxu2 %v3637_v1  ;;  %432 = vmatpush.msra.mxu3 %v3642_v2 }
  0x26   :  { %370 = vmatpush.msra.mxu0 %v3649_v3  ;;  %390 = vmatpush.msra.mxu1 %v3654_v4 }
  0x27   :  { %413 = vmatpush.msra.mxu2 %v3661_v5  ;;  %433 = vmatpush.msra.mxu3 %v3666_v6 }
  0x28   :  { %3137 = vmatmul.msk.f32.vlgmr.msrb.gmra.mxu1 %vm56_vm0, %v3318_v10  ;;  %371 = vmatpush.msra.mxu0 %v3673_v7 }
  0x29   :  { %391 = vmatpush.msra.mxu1 %v3680_v8  ;;  %414 = vmatpush.msra.mxu2 %v3685_v9  ;;  %v3739_v9 = vld [vmem:[%s7062_s2 + $0x40] sm:$0xff] }
  0x2a   :  { %434 = vmatpush.msra.mxu3 %v3692_v13  ;;  %3136 = vmatmul.msk.f32.vlgmr.msrb.gmra.mxu0 %vm56_vm0, %v3318_v10  ;;  %v3727_v13 = vld [vmem:[%s7062_s2 + $0x3b0] sm:$0xff]  ;;  %v3732_v10 = vld [vmem:[%s7062_s2 + $0x3b8] sm:$0xff]  ;;  %7386 = vst [vmem:[#allocation16_spill] sm:$0xff] %v3739_v9 }
  0x2b   :  { %415 = vmatmul.f32.vlgmr.msra.gmra.mxu2 %v7069_v22  ;;  %435 = vmatmul.f32.vlgmr.msra.gmra.mxu3 %v7069_v22  ;;  %7384 = vst [vmem:[#allocation14_spill] sm:$0xff] %v3727_v13  ;;  %v3744_v22 = vld [vmem:[%s7062_s2 + $0x48] sm:$0xff] }
  0x2c   :  { %7385 = vst [vmem:[#allocation15_spill] sm:$0xff] %v3732_v10  ;;  %479 = vmatpush.msrb.mxu2 %v3702_v14  ;;  %499 = vmatpush.msrb.mxu3 %v3707_v17  ;;  %v3751_v14 = vld [vmem:[%s7062_s2 + $0x370] sm:$0xff]  ;;  %v3756_v17 = vld [vmem:[%s7062_s2 + $0x378] sm:$0xff] }
  0x2d   :  { %7387 = vst [vmem:[#allocation17_spill] sm:$0xff] %v3744_v22  ;;  %372 = vmatpush.msra.mxu0 %v3715_v18  ;;  %392 = vmatpush.msra.mxu1 %v3720_v21  ;;  %v3763_v18 = vld [vmem:[%s7062_s2] sm:$0xff]  ;;  %v3768_v21 = vld [vmem:[%s7062_s2 + $0x8] sm:$0xff] }
  0x2e   :  { %7388 = vst [vmem:[#allocation18_spill] sm:$0xff] %v3751_v14  ;;  %480 = vmatpush.msrb.mxu2 %v3727_v13  ;;  %500 = vmatpush.msrb.mxu3 %v3732_v10  ;;  %v3775_v13 = vld [vmem:[%s7062_s2 + $0x3e0] sm:$0xff] }
  0x2f   :  { %7389 = vst [vmem:[#allocation19_spill] sm:$0xff] %v3756_v17  ;;  %373 = vmatpush.msra.mxu0 %v3739_v9  ;;  %393 = vmatpush.msra.mxu1 %v3744_v22 }
  0x30   :  { %7390 = vst [vmem:[#allocation20_spill] sm:$0xff] %v3763_v18 }
  0x31   :  { %7391 = vst [vmem:[#allocation21_spill] sm:$0xff] %v3768_v21 }
  0x32   :  { %7392 = vst [vmem:[#allocation22_spill] sm:$0xff] %v3775_v13 }
  0x33   :  { %12 = vsyncpa [#allocation5], 0  ;;  %481 = vmatpush.msrb.mxu2 %v3751_v14  ;;  %501 = vmatpush.msrb.mxu3 %v3756_v17  ;;  %v3782_v10 = vld [vmem:[%s7062_s2 + $0x3e8] sm:$0xff]  ;;  %v3787_v9 = vld [vmem:[%s7062_s2 + $0x330] sm:$0xff]  ;;  %v7396_v17 = vmov 0.0   ;;  %vm528_vm1 = vcmask 1042434  }
  0x34   :  { %7393 = vst [vmem:[#allocation23_spill] sm:$0xff] %v3782_v10  ;;  %374 = vmatpush.msra.mxu0 %v3763_v18  ;;  %394 = vmatpush.msra.mxu1 %v3768_v21  ;;  %v3794_v14 = vld [vmem:[%s7062_s2 + $0x338] sm:$0xff]  ;;  %v3801_v22 = vld [vmem:[%s7062_s2 + $0x3a0] sm:$0xff]  ;;  %v3806_v18 = vld [vmem:[%s7062_s2 + $0x3a8] sm:$0xff]  ;;  %vm526_vm2 = vcmask 1040384   ;;  %vm530_vm3 = vcmask 1041408  }
  0x35   :  { %7394 = vst [vmem:[#allocation24_spill] sm:$0xff] %v3787_v9  ;;  %395 = vmatmul.f32.vlgmr.msra.gmra.mxu1 %v7396_v17  ;;  %482 = vmatpush.msrb.mxu2 %v3787_v9  ;;  %v3813_v21 = vld [vmem:[%s7062_s2 + $0x2f0] sm:$0xff]  ;;  %v3830_v9 = vld [vmem:[%s7062_s2 + $0x368] sm:$0xff]  ;;  %v3842_v6 = vld [vmem:[%s7062_s2 + $0x2b8] sm:$0xff]  ;;  %s3249_s18 = smov [#allocation4]   ;;  %s3115_s22 = sshll.u32 %s7064_s4, 4  ;;  %s3116_s22 = int_to_ptr.hbm [resolvable:$true] %s3115_s22 }
  0x36   :  { %7395 = vst [vmem:[#allocation25_spill] sm:$0xff] %v3794_v14  ;;  %439 = vmatpush.msrb.mxu0 %v3775_v13  ;;  %459 = vmatpush.msrb.mxu1 %v3782_v10  ;;  %v3818_v13 = vld [vmem:[%s7062_s2 + $0x2f8] sm:$0xff]  ;;  %v3825_v10 = vld [vmem:[%s7062_s2 + $0x360] sm:$0xff]  ;;  %s3113_s19 = sshll.u32 %s3249_s18, 4  ;;  %s3114_s19 = int_to_ptr.vmem [resolvable:$true] %s3113_s19 }
  0x37   :  { %7397 = vst [vmem:[#allocation26_spill] sm:$0xff] %v3801_v22  ;;  %502 = vmatpush.msrb.mxu3 %v3794_v14  ;;  %375 = vmatmul.f32.vlgmr.msra.gmra.mxu0 %v7396_v17  ;;  %v3837_v14 = vld [vmem:[%s7062_s2 + $0x2b0] sm:$0xff] }
  0x38   :  { %7398 = vst [vmem:[#allocation27_spill] sm:$0xff] %v3806_v18  ;;  %440 = vmatpush.msrb.mxu0 %v3801_v22  ;;  %460 = vmatpush.msrb.mxu1 %v3806_v18  ;;  %v3849_v22 = vld [vmem:[%s7062_s2 + $0x320] sm:$0xff]  ;;  %v3854_v18 = vld [vmem:[%s7062_s2 + $0x328] sm:$0xff] }
  0x39   :  { %7399 = vst [vmem:[#allocation28_spill] sm:$0xff] %v3813_v21  ;;  %483 = vmatpush.msrb.mxu2 %v3813_v21  ;;  %503 = vmatpush.msrb.mxu3 %v3818_v13  ;;  %v3861_v21 = vld [vmem:[%s7062_s2 + $0x270] sm:$0xff] }
  0x3a   :  { %7400 = vst [vmem:[#allocation29_spill] sm:$0xff] %v3818_v13  ;;  %441 = vmatpush.msrb.mxu0 %v3825_v10  ;;  %461 = vmatpush.msrb.mxu1 %v3830_v9  ;;  %v3866_v13 = vld [vmem:[%s7062_s2 + $0x278] sm:$0xff] }
  0x3b   :  { %7401 = vst [vmem:[#allocation30_spill] sm:$0xff] %v3825_v10  ;;  %484 = vmatpush.msrb.mxu2 %v3837_v14  ;;  %504 = vmatpush.msrb.mxu3 %v3842_v6  ;;  %v3873_v10 = vld [vmem:[%s7062_s2 + $0x2e0] sm:$0xff] }
  0x3c   :  { %7402 = vst [vmem:[#allocation31_spill] sm:$0xff] %v3830_v9  ;;  %v3878_v9 = vld [vmem:[%s7062_s2 + $0x2e8] sm:$0xff]  ;;  %442 = vmatpush.msrb.mxu0 %v3849_v22  ;;  %462 = vmatpush.msrb.mxu1 %v3854_v18 }
  0x3d   :  { %7403 = vst [vmem:[#allocation32_spill] sm:$0xff] %v3837_v14  ;;  %v3885_v14 = vld [vmem:[%s7062_s2 + $0x230] sm:$0xff]  ;;  %485 = vmatpush.msrb.mxu2 %v3861_v21  ;;  %505 = vmatpush.msrb.mxu3 %v3866_v13 }
  0x3e   :  { %7404 = vst [vmem:[#allocation33_spill] sm:$0xff] %v3842_v6  ;;  %v3890_v6 = vld [vmem:[%s7062_s2 + $0x238] sm:$0xff]  ;;  %443 = vmatpush.msrb.mxu0 %v3873_v10  ;;  %463 = vmatpush.msrb.mxu1 %v3878_v9 }
  0x3f   :  { %7405 = vst [vmem:[#allocation34_spill] sm:$0xff] %v3849_v22  ;;  %v3897_v22 = vld [vmem:[%s7062_s2 + $0x2a0] sm:$0xff]  ;;  %486 = vmatpush.msrb.mxu2 %v3885_v14  ;;  %506 = vmatpush.msrb.mxu3 %v3890_v6 }
  0x40   :  { %7406 = vst [vmem:[#allocation35_spill] sm:$0xff] %v3854_v18  ;;  %v3902_v18 = vld [vmem:[%s7062_s2 + $0x2a8] sm:$0xff]  ;;  %444 = vmatpush.msrb.mxu0 %v3897_v22 }
  0x41   :  { %7407 = vst [vmem:[#allocation36_spill] sm:$0xff] %v3861_v21  ;;  %v3909_v21 = vld [vmem:[%s7062_s2 + $0x1f0] sm:$0xff]  ;;  %464 = vmatpush.msrb.mxu1 %v3902_v18 }
  0x42   :  { %7408 = vst [vmem:[#allocation37_spill] sm:$0xff] %v3866_v13  ;;  %v3914_v13 = vld [vmem:[%s7062_s2 + $0x1f8] sm:$0xff]  ;;  %487 = vmatpush.msrb.mxu2 %v3909_v21 }
  0x43   :  { %7409 = vst [vmem:[#allocation38_spill] sm:$0xff] %v3873_v10  ;;  %v3921_v10 = vld [vmem:[%s7062_s2 + $0x260] sm:$0xff]  ;;  %507 = vmatpush.msrb.mxu3 %v3914_v13 }
  0x44   :  { %7410 = vst [vmem:[#allocation39_spill] sm:$0xff] %v3878_v9  ;;  %v3926_v9 = vld [vmem:[%s7062_s2 + $0x268] sm:$0xff]  ;;  %445 = vmatpush.msrb.mxu0 %v3921_v10 }
  0x45   :  { %7411 = vst [vmem:[#allocation40_spill] sm:$0xff] %v3885_v14  ;;  %v3933_v14 = vld [vmem:[%s7062_s2 + $0x1b0] sm:$0xff]  ;;  %465 = vmatpush.msrb.mxu1 %v3926_v9 }
  0x46   :  { %7412 = vst [vmem:[#allocation41_spill] sm:$0xff] %v3890_v6  ;;  %v3938_v6 = vld [vmem:[%s7062_s2 + $0x1b8] sm:$0xff]  ;;  %488 = vmatpush.msrb.mxu2 %v3933_v14 }
  0x47   :  { %7413 = vst [vmem:[#allocation42_spill] sm:$0xff] %v3897_v22  ;;  %v3945_v22 = vld [vmem:[%s7062_s2 + $0x220] sm:$0xff]  ;;  %508 = vmatpush.msrb.mxu3 %v3938_v6 }
  0x48   :  { %7414 = vst [vmem:[#allocation43_spill] sm:$0xff] %v3902_v18  ;;  %v3950_v18 = vld [vmem:[%s7062_s2 + $0x228] sm:$0xff]  ;;  %446 = vmatpush.msrb.mxu0 %v3945_v22 }
  0x49   :  { %7415 = vst [vmem:[#allocation44_spill] sm:$0xff] %v3909_v21  ;;  %v3957_v21 = vld [vmem:[%s7062_s2 + $0x170] sm:$0xff]  ;;  %466 = vmatpush.msrb.mxu1 %v3950_v18 }
  0x4a   :  { %7416 = vst [vmem:[#allocation45_spill] sm:$0xff] %v3914_v13  ;;  %v3962_v13 = vld [vmem:[%s7062_s2 + $0x178] sm:$0xff]  ;;  %489 = vmatpush.msrb.mxu2 %v3957_v21 }
  0x4b   :  { %7417 = vst [vmem:[#allocation46_spill] sm:$0xff] %v3921_v10  ;;  %v3969_v10 = vld [vmem:[%s7062_s2 + $0x1e0] sm:$0xff]  ;;  %509 = vmatpush.msrb.mxu3 %v3962_v13 }
  0x4c   :  { %7418 = vst [vmem:[#allocation47_spill] sm:$0xff] %v3926_v9  ;;  %v3974_v9 = vld [vmem:[%s7062_s2 + $0x1e8] sm:$0xff]  ;;  %447 = vmatpush.msrb.mxu0 %v3969_v10 }
  0x4d   :  { %7419 = vst [vmem:[#allocation48_spill] sm:$0xff] %v3933_v14  ;;  %v3981_v14 = vld [vmem:[%s7062_s2 + $0x130] sm:$0xff]  ;;  %467 = vmatpush.msrb.mxu1 %v3974_v9 }
  0x4e   :  { %7420 = vst [vmem:[#allocation49_spill] sm:$0xff] %v3938_v6  ;;  %v3986_v6 = vld [vmem:[%s7062_s2 + $0x138] sm:$0xff]  ;;  %490 = vmatpush.msrb.mxu2 %v3981_v14 }
  0x4f   :  { %7421 = vst [vmem:[#allocation50_spill] sm:$0xff] %v3945_v22  ;;  %v3993_v22 = vld [vmem:[%s7062_s2 + $0x1a0] sm:$0xff]  ;;  %510 = vmatpush.msrb.mxu3 %v3986_v6 }
  0x50   :  { %7422 = vst [vmem:[#allocation51_spill] sm:$0xff] %v3950_v18  ;;  %v3998_v18 = vld [vmem:[%s7062_s2 + $0x1a8] sm:$0xff]  ;;  %448 = vmatpush.msrb.mxu0 %v3993_v22 }
  0x51   :  { %7423 = vst [vmem:[#allocation52_spill] sm:$0xff] %v3957_v21  ;;  %v4005_v21 = vld [vmem:[%s7062_s2 + $0xf0] sm:$0xff]  ;;  %468 = vmatpush.msrb.mxu1 %v3998_v18 }
  0x52   :  { %7424 = vst [vmem:[#allocation53_spill] sm:$0xff] %v3962_v13  ;;  %v4010_v13 = vld [vmem:[%s7062_s2 + $0xf8] sm:$0xff]  ;;  %491 = vmatpush.msrb.mxu2 %v4005_v21 }
  0x53   :  { %7425 = vst [vmem:[#allocation54_spill] sm:$0xff] %v3969_v10  ;;  %v4017_v10 = vld [vmem:[%s7062_s2 + $0x160] sm:$0xff]  ;;  %511 = vmatpush.msrb.mxu3 %v4010_v13 }
  0x54   :  { %7426 = vst [vmem:[#allocation55_spill] sm:$0xff] %v3974_v9  ;;  %v4022_v9 = vld [vmem:[%s7062_s2 + $0x168] sm:$0xff]  ;;  %449 = vmatpush.msrb.mxu0 %v4017_v10 }
  0x55   :  { %7427 = vst [vmem:[#allocation56_spill] sm:$0xff] %v3981_v14  ;;  %v4029_v14 = vld [vmem:[%s7062_s2 + $0xb0] sm:$0xff]  ;;  %469 = vmatpush.msrb.mxu1 %v4022_v9 }
  0x56   :  { %7428 = vst [vmem:[#allocation57_spill] sm:$0xff] %v3986_v6  ;;  %v4034_v6 = vld [vmem:[%s7062_s2 + $0xb8] sm:$0xff]  ;;  %492 = vmatpush.msrb.mxu2 %v4029_v14 }
  0x57   :  { %7429 = vst [vmem:[#allocation58_spill] sm:$0xff] %v3993_v22  ;;  %v4041_v22 = vld [vmem:[%s7062_s2 + $0x120] sm:$0xff]  ;;  %512 = vmatpush.msrb.mxu3 %v4034_v6 }
  0x58   :  { %7430 = vst [vmem:[#allocation59_spill] sm:$0xff] %v3998_v18  ;;  %v4046_v18 = vld [vmem:[%s7062_s2 + $0x128] sm:$0xff]  ;;  %450 = vmatpush.msrb.mxu0 %v4041_v22 }
  0x59   :  { %7431 = vst [vmem:[#allocation60_spill] sm:$0xff] %v4005_v21  ;;  %v4053_v21 = vld [vmem:[%s7062_s2 + $0x70] sm:$0xff]  ;;  %470 = vmatpush.msrb.mxu1 %v4046_v18 }
  0x5a   :  { %7432 = vst [vmem:[#allocation61_spill] sm:$0xff] %v4010_v13  ;;  %v4058_v13 = vld [vmem:[%s7062_s2 + $0x78] sm:$0xff]  ;;  %493 = vmatpush.msrb.mxu2 %v4053_v21 }
  0x5b   :  { %7433 = vst [vmem:[#allocation62_spill] sm:$0xff] %v4017_v10  ;;  %v4065_v10 = vld [vmem:[%s7062_s2 + $0xe0] sm:$0xff]  ;;  %513 = vmatpush.msrb.mxu3 %v4058_v13 }
  0x5c   :  { %7434 = vst [vmem:[#allocation63_spill] sm:$0xff] %v4022_v9  ;;  %v4070_v9 = vld [vmem:[%s7062_s2 + $0xe8] sm:$0xff]  ;;  %451 = vmatpush.msrb.mxu0 %v4065_v10 }
  0x5d   :  { %7435 = vst [vmem:[#allocation64_spill] sm:$0xff] %v4029_v14  ;;  %v4077_v14 = vld [vmem:[%s7062_s2 + $0x30] sm:$0xff]  ;;  %471 = vmatpush.msrb.mxu1 %v4070_v9 }
  0x5e   :  { %7436 = vst [vmem:[#allocation65_spill] sm:$0xff] %v4034_v6  ;;  %v4082_v6 = vld [vmem:[%s7062_s2 + $0x38] sm:$0xff]  ;;  %494 = vmatpush.msrb.mxu2 %v4077_v14 }
  0x5f   :  { %7437 = vst [vmem:[#allocation66_spill] sm:$0xff] %v4041_v22  ;;  %v4096_v22 = vld [vmem:[%s7062_s2 + $0xa8] sm:$0xff]  ;;  %514 = vmatpush.msrb.mxu3 %v4082_v6  ;;  %495 = vmatmul.f32.vlgmr.msrb.gmra.mxu2 %v7396_v17 }
  0x60   :  { %7438 = vst [vmem:[#allocation67_spill] sm:$0xff] %v4046_v18  ;;  %v4091_v18 = vld [vmem:[%s7062_s2 + $0xa0] sm:$0xff]  ;;  %515 = vmatmul.f32.vlgmr.msrb.gmra.mxu3 %v7396_v17  ;;  %472 = vmatpush.msrb.mxu1 %v4096_v22 }
  0x61   :  { %7439 = vst [vmem:[#allocation68_spill] sm:$0xff] %v4053_v21  ;;  %v4110_v21 = vld [vmem:[%s7062_s2 + $0x68] sm:$0xff]  ;;  %452 = vmatpush.msrb.mxu0 %v4091_v18  ;;  %760 = vmatpush.msra.mxu2 %v3323_v11  ;;  %v7443_v11 = vld [vmem:[#allocation7_spill] sm:$0xff] }
  0x62   :  { %7440 = vst [vmem:[#allocation69_spill] sm:$0xff] %v4058_v13  ;;  %v4105_v13 = vld [vmem:[%s7062_s2 + $0x60] sm:$0xff]  ;;  %780 = vmatpush.msra.mxu3 %v3328_v12  ;;  %473 = vmatpush.msrb.mxu1 %v4110_v21 }
  0x63   :  { %7441 = vst [vmem:[#allocation70_spill] sm:$0xff] %v4077_v14  ;;  %v4122_v14 = vld [vmem:[%s7062_s2 + $0x28] sm:$0xff]  ;;  %453 = vmatpush.msrb.mxu0 %v4105_v13  ;;  %761 = vmatpush.msra.mxu2 %v3343_v15  ;;  %v7444_v12 = vld [vmem:[#allocation12_spill] sm:$0xff] }
  0x64   :  { %7442 = vst [vmem:[#allocation71_spill] sm:$0xff] %v4082_v6  ;;  %v4117_v6 = vld [vmem:[%s7062_s2 + $0x20] sm:$0xff]  ;;  %781 = vmatpush.msra.mxu3 %v3348_v16  ;;  %474 = vmatpush.msrb.mxu1 %v4122_v14  ;;  %v7445_v15 = vld [vmem:[#allocation13_spill] sm:$0xff] }
  0x65   :  { %454 = vmatpush.msrb.mxu0 %v4117_v6  ;;  %475 = vmatmul.f32.vlgmr.msrb.gmra.mxu1 %v7396_v17  ;;  %v7446_v16 = vld [vmem:[#allocation8_spill] sm:$0xff] }
  0x66   :  { %455 = vmatmul.f32.vlgmr.msrb.gmra.mxu0 %v7396_v17  ;;  %740 = vmatpush.msra.mxu1 %v3386_v24  ;;  %v7450_v24 = vld [vmem:[#allocation10_spill] sm:$0xff] }
  0x67   :  { %720 = vmatpush.msra.mxu0 %v3381_v23  ;;  %762 = vmatpush.msra.mxu2 %v3361_v19  ;;  %v7447_v19 = vld [vmem:[#allocation9_spill] sm:$0xff] }
  0x68   :  { %782 = vmatpush.msra.mxu3 %v3366_v20  ;;  %741 = vmatpush.msra.mxu1 %v3410_v28  ;;  %v7448_v20 = vld [vmem:[#allocation16_spill] sm:$0xff]  ;;  %v7449_v23 = vld [vmem:[#allocation17_spill] sm:$0xff]  ;;  %v7454_v28 = vld [vmem:[#allocation22_spill] sm:$0xff] }
  0x69   :  { %721 = vmatpush.msra.mxu0 %v3405_v27  ;;  %763 = vmatpush.msra.mxu2 %v3391_v25  ;;  %v7451_v25 = vld [vmem:[#allocation11_spill] sm:$0xff]  ;;  %v7453_v27 = vld [vmem:[#allocation21_spill] sm:$0xff] }
  0x6a   :  { %783 = vmatpush.msra.mxu3 %v3396_v26  ;;  %742 = vmatpush.msra.mxu1 %v3434_v32  ;;  %v7452_v26 = vld [vmem:[#allocation20_spill] sm:$0xff]  ;;  %v7458_v32 = vld [vmem:[#allocation26_spill] sm:$0xff] }
  0x6b   :  { %722 = vmatpush.msra.mxu0 %v3429_v31  ;;  %764 = vmatpush.msra.mxu2 %v3417_v29  ;;  %v7455_v29 = vld [vmem:[#allocation23_spill] sm:$0xff] }
  0x6c   :  { %784 = vmatpush.msra.mxu3 %v3422_v30  ;;  %743 = vmatpush.msra.mxu1 %v3458_v36  ;;  %v7456_v30 = vld [vmem:[#allocation14_spill] sm:$0xff]  ;;  %v7457_v31 = vld [vmem:[#allocation15_spill] sm:$0xff] }
  0x6d   :  { %723 = vmatpush.msra.mxu0 %v3453_v35  ;;  %765 = vmatpush.msra.mxu2 %v3441_v33  ;;  %v7459_v33 = vld [vmem:[#allocation27_spill] sm:$0xff]  ;;  %v7462_v36 = vld [vmem:[#allocation30_spill] sm:$0xff] }
  0x6e   :  { %785 = vmatpush.msra.mxu3 %v3446_v34  ;;  %744 = vmatpush.msra.mxu1 %v3482_v40  ;;  %v7460_v34 = vld [vmem:[#allocation18_spill] sm:$0xff]  ;;  %v7461_v35 = vld [vmem:[#allocation19_spill] sm:$0xff] }
  0x6f   :  { %724 = vmatpush.msra.mxu0 %v3477_v39  ;;  %766 = vmatpush.msra.mxu2 %v3465_v37  ;;  %v7463_v37 = vld [vmem:[#allocation31_spill] sm:$0xff]  ;;  %v7465_v39 = vld [vmem:[#allocation25_spill] sm:$0xff]  ;;  %v7466_v40 = vld [vmem:[#allocation34_spill] sm:$0xff] }
  0x70   :  { %786 = vmatpush.msra.mxu3 %v3470_v38  ;;  %745 = vmatpush.msra.mxu1 %v3506_v44  ;;  %v7464_v38 = vld [vmem:[#allocation24_spill] sm:$0xff]  ;;  %v7470_v44 = vld [vmem:[#allocation38_spill] sm:$0xff] }
  0x71   :  { %725 = vmatpush.msra.mxu0 %v3501_v43  ;;  %767 = vmatpush.msra.mxu2 %v3489_v41  ;;  %v7467_v41 = vld [vmem:[#allocation35_spill] sm:$0xff]  ;;  %v7469_v43 = vld [vmem:[#allocation29_spill] sm:$0xff] }
  0x72   :  { %787 = vmatpush.msra.mxu3 %v3494_v42  ;;  %746 = vmatpush.msra.mxu1 %v3530_v48  ;;  %v7468_v42 = vld [vmem:[#allocation28_spill] sm:$0xff]  ;;  %v7474_v48 = vld [vmem:[#allocation42_spill] sm:$0xff] }
  0x73   :  { %726 = vmatpush.msra.mxu0 %v3525_v47  ;;  %768 = vmatpush.msra.mxu2 %v3513_v45  ;;  %v7471_v45 = vld [vmem:[#allocation39_spill] sm:$0xff]  ;;  %v7473_v47 = vld [vmem:[#allocation33_spill] sm:$0xff] }
  0x74   :  { %788 = vmatpush.msra.mxu3 %v3518_v46  ;;  %747 = vmatpush.msra.mxu1 %v3554_v52  ;;  %v7472_v46 = vld [vmem:[#allocation32_spill] sm:$0xff]  ;;  %v7478_v52 = vld [vmem:[#allocation46_spill] sm:$0xff] }
  0x75   :  { %727 = vmatpush.msra.mxu0 %v3549_v51  ;;  %769 = vmatpush.msra.mxu2 %v3537_v49  ;;  %v7475_v49 = vld [vmem:[#allocation43_spill] sm:$0xff]  ;;  %v7477_v51 = vld [vmem:[#allocation37_spill] sm:$0xff] }
  0x76   :  { %789 = vmatpush.msra.mxu3 %v3542_v50  ;;  %748 = vmatpush.msra.mxu1 %v3578_v56  ;;  %v7476_v50 = vld [vmem:[#allocation36_spill] sm:$0xff]  ;;  %v7482_v56 = vld [vmem:[#allocation50_spill] sm:$0xff] }
  0x77   :  { %728 = vmatpush.msra.mxu0 %v3573_v55  ;;  %770 = vmatpush.msra.mxu2 %v3561_v53  ;;  %v7479_v53 = vld [vmem:[#allocation47_spill] sm:$0xff]  ;;  %v7481_v55 = vld [vmem:[#allocation41_spill] sm:$0xff] }
  0x78   :  { %790 = vmatpush.msra.mxu3 %v3566_v54  ;;  %749 = vmatpush.msra.mxu1 %v3604_v60  ;;  %v7480_v54 = vld [vmem:[#allocation40_spill] sm:$0xff]  ;;  %v7486_v60 = vld [vmem:[#allocation54_spill] sm:$0xff] }
  0x79   :  { %729 = vmatpush.msra.mxu0 %v3599_v59  ;;  %771 = vmatpush.msra.mxu2 %v3585_v57  ;;  %v7483_v57 = vld [vmem:[#allocation51_spill] sm:$0xff]  ;;  %v7485_v59 = vld [vmem:[#allocation45_spill] sm:$0xff] }
  0x7a   :  { %791 = vmatpush.msra.mxu3 %v3590_v58  ;;  %750 = vmatpush.msra.mxu1 %v3630_v0  ;;  %v7484_v58 = vld [vmem:[#allocation44_spill] sm:$0xff]  ;;  %v7489_v0 = vld [vmem:[#allocation49_spill] sm:$0xff] }
  0x7b   :  { %730 = vmatpush.msra.mxu0 %v3625_v63  ;;  %772 = vmatpush.msra.mxu2 %v3611_v61  ;;  %v7487_v61 = vld [vmem:[#allocation55_spill] sm:$0xff]  ;;  %v7488_v63 = vld [vmem:[#allocation48_spill] sm:$0xff] }
  0x7c   :  { %792 = vmatpush.msra.mxu3 %v3616_v62  ;;  %751 = vmatpush.msra.mxu1 %v3654_v4  ;;  %v38_v62 = vld [vmem:[%s7063_s3] sm:$0xff]  ;;  %v7493_v4 = vld [vmem:[#allocation53_spill] sm:$0xff] }
  0x7d   :  { %731 = vmatpush.msra.mxu0 %v3649_v3  ;;  %773 = vmatpush.msra.mxu2 %v3637_v1  ;;  %v7490_v1 = vld [vmem:[#allocation58_spill] sm:$0xff]  ;;  %v7492_v3 = vld [vmem:[#allocation52_spill] sm:$0xff]  ;;  %v40_v17 = vperm.slane %v38_v62, 0 }
  0x7e   :  { %793 = vmatpush.msra.mxu3 %v3642_v2  ;;  %752 = vmatpush.msra.mxu1 %v3680_v8  ;;  %v7491_v2 = vld [vmem:[#allocation59_spill] sm:$0xff] }
  0x7f   :  { %732 = vmatpush.msra.mxu0 %v3673_v7  ;;  %774 = vmatpush.msra.mxu2 %v3661_v5  ;;  %v42_v5 = vperm.slane %v38_v62, 2  ;;  %v7494_v7 = vld [vmem:[#allocation62_spill] sm:$0xff]  ;;  %v7495_v8 = vld [vmem:[#allocation63_spill] sm:$0xff] }
  0x80   :  { %794 = vmatpush.msra.mxu3 %v7443_v11  ;;  %753 = vmatpush.msra.mxu1 %v7445_v15  ;;  %v41_v11 = vperm.slane %v38_v62, 1  ;;  %v7496_v15 = vld [vmem:[#allocation56_spill] sm:$0xff] }
  0x81   :  { %733 = vmatpush.msra.mxu0 %v7444_v12  ;;  %775 = vmatpush.msra.mxu2 %v7446_v16  ;;  %v43_v12 = vperm.slane %v38_v62, 3  ;;  %v7497_v16 = vld [vmem:[#allocation57_spill] sm:$0xff] }
  0x82   :  { %795 = vmatpush.msra.mxu3 %v7447_v19  ;;  %754 = vmatpush.msra.mxu1 %v7449_v23  ;;  %v7498_v19 = vld [vmem:[#allocation66_spill] sm:$0xff] }
  0x83   :  { %734 = vmatpush.msra.mxu0 %v7448_v20  ;;  %840 = vmatpush.msrb.mxu2 %v7450_v24  ;;  %v7499_v20 = vld [vmem:[#allocation67_spill] sm:$0xff] }
  0x84   :  { %860 = vmatpush.msrb.mxu3 %v7451_v25  ;;  %755 = vmatpush.msra.mxu1 %v7453_v27  ;;  %v7500_v25 = vld [vmem:[#allocation60_spill] sm:$0xff] }
  0x85   :  { %735 = vmatpush.msra.mxu0 %v7452_v26  ;;  %841 = vmatpush.msrb.mxu2 %v7456_v30  ;;  %v7501_v26 = vld [vmem:[#allocation61_spill] sm:$0xff] }
  0x86   :  { %820 = vmatpush.msrb.mxu1 %v7455_v29  ;;  %861 = vmatpush.msrb.mxu3 %v7457_v31 }
  0x87   :  { %800 = vmatpush.msrb.mxu0 %v7454_v28  ;;  %842 = vmatpush.msrb.mxu2 %v7460_v34  ;;  %v7503_v34 = vld [vmem:[#allocation65_spill] sm:$0xff] }
  0x88   :  { %821 = vmatpush.msrb.mxu1 %v7459_v33  ;;  %862 = vmatpush.msrb.mxu3 %v7461_v35  ;;  %v117_v23 = vpop.f32.mrf.mxu2  ;;  %v137_v24 = vpop.f32.mrf.mxu3  ;;  %v7502_v33 = vld [vmem:[#allocation64_spill] sm:$0xff] }
  0x89   :  { %801 = vmatpush.msrb.mxu0 %v7458_v32  ;;  %843 = vmatpush.msrb.mxu2 %v7464_v38  ;;  %v118_v29 = vadd.f32 %v117_v23, %v42_v5  ;;  %v138_v32 = vadd.f32 %v137_v24, %v43_v12  ;;  %v7504_v35 = vld [vmem:[#allocation68_spill] sm:$0xff] }
  0x8a   :  { %822 = vmatpush.msrb.mxu1 %v7463_v37  ;;  %863 = vmatpush.msrb.mxu3 %v7465_v39  ;;  %v77_v27 = vpop.f32.mrf.mxu0  ;;  %v97_v28 = vpop.f32.mrf.mxu1  ;;  %v45_v37 = vperm.slane %v38_v62, 5 }
  0x8b   :  { %802 = vmatpush.msrb.mxu0 %v7462_v36  ;;  %844 = vmatpush.msrb.mxu2 %v7468_v42  ;;  %v78_v30 = vadd.f32 %v77_v27, %v40_v17  ;;  %v98_v31 = vadd.f32 %v97_v28, %v41_v11  ;;  %222 = vst [vmem:[#allocation2 + $0x10] sm:$0xff] %v118_v29  ;;  %v7505_v36 = vld [vmem:[#allocation69_spill] sm:$0xff] }
  0x8c   :  { %823 = vmatpush.msrb.mxu1 %v7467_v41  ;;  %864 = vmatpush.msrb.mxu3 %v7469_v43  ;;  %223 = vst [vmem:[#allocation2 + $0x18] sm:$0xff] %v138_v32 }
  0x8d   :  { %803 = vmatpush.msrb.mxu0 %v7466_v40  ;;  %845 = vmatpush.msrb.mxu2 %v7472_v46  ;;  %220 = vst [vmem:[#allocation2] sm:$0xff] %v78_v30  ;;  %v44_v40 = vperm.slane %v38_v62, 4 }
  0x8e   :  { %824 = vmatpush.msrb.mxu1 %v7471_v45  ;;  %865 = vmatpush.msrb.mxu3 %v7473_v47  ;;  %221 = vst [vmem:[#allocation2 + $0x8] sm:$0xff] %v98_v31 }
  0x8f   :  { %804 = vmatpush.msrb.mxu0 %v7470_v44  ;;  %846 = vmatpush.msrb.mxu2 %v7476_v50 }
  0x90   :  { %825 = vmatpush.msrb.mxu1 %v7475_v49  ;;  %866 = vmatpush.msrb.mxu3 %v7477_v51 }
  0x91   :  { %805 = vmatpush.msrb.mxu0 %v7474_v48  ;;  %847 = vmatpush.msrb.mxu2 %v7480_v54 }
  0x92   :  { %826 = vmatpush.msrb.mxu1 %v7479_v53  ;;  %867 = vmatpush.msrb.mxu3 %v7481_v55 }
  0x93   :  { %806 = vmatpush.msrb.mxu0 %v7478_v52  ;;  %848 = vmatpush.msrb.mxu2 %v7484_v58 }
  0x94   :  { %827 = vmatpush.msrb.mxu1 %v7483_v57  ;;  %868 = vmatpush.msrb.mxu3 %v7485_v59 }
  0x95   :  { %807 = vmatpush.msrb.mxu0 %v7482_v56  ;;  %849 = vmatpush.msrb.mxu2 %v7488_v63  ;;  %v228_v57 = vld [vmem:[#allocation2] ss:$8 sm:$0xf] }
  0x96   :  { %828 = vmatpush.msrb.mxu1 %v7487_v61  ;;  %869 = vmatpush.msrb.mxu3 %v7489_v0 }
  0x97   :  { %808 = vmatpush.msrb.mxu0 %v7486_v60  ;;  %850 = vmatpush.msrb.mxu2 %v7492_v3 }
  0x98   :  { %829 = vmatpush.msrb.mxu1 %v7491_v2  ;;  %870 = vmatpush.msrb.mxu3 %v7493_v4 }
  0x99   :  { %809 = vmatpush.msrb.mxu0 %v7490_v1  ;;  %851 = vmatpush.msrb.mxu2 %v7496_v15 }
  0x9a   :  { %830 = vmatpush.msrb.mxu1 %v7495_v8  ;;  %871 = vmatpush.msrb.mxu3 %v7497_v16 }
  0x9b   :  { %810 = vmatpush.msrb.mxu0 %v7494_v7  ;;  %852 = vmatpush.msrb.mxu2 %v7500_v25 }
  0x9c   :  { %831 = vmatpush.msrb.mxu1 %v7499_v20  ;;  %872 = vmatpush.msrb.mxu3 %v7501_v26 }
  0x9d   :  { %811 = vmatpush.msrb.mxu0 %v7498_v19  ;;  %853 = vmatpush.msrb.mxu2 %v7502_v33 }
  0x9e   :  { %832 = vmatpush.msrb.mxu1 %v4070_v9  ;;  %873 = vmatpush.msrb.mxu3 %v7503_v34  ;;  %v7506_v9 = vld [vmem:[#allocation70_spill] sm:$0xff] }
  0x9f   :  { %812 = vmatpush.msrb.mxu0 %v4065_v10  ;;  %854 = vmatpush.msrb.mxu2 %v7504_v35  ;;  %v7507_v10 = vld [vmem:[#allocation71_spill] sm:$0xff] }
  0xa0   :  { %833 = vmatpush.msrb.mxu1 %v4096_v22  ;;  %874 = vmatpush.msrb.mxu3 %v7505_v36  ;;  %v47_v22 = vperm.slane %v38_v62, 7  ;;  %v4274_v36 = vld [vmem:[%s7062_s2 + $0x3c0] sm:$0xff] }
  0xa1   :  { %813 = vmatpush.msrb.mxu0 %v4091_v18  ;;  %855 = vmatpush.msrb.mxu2 %v7506_v9  ;;  %v46_v18 = vperm.slane %v38_v62, 6  ;;  %v4279_v9 = vld [vmem:[%s7062_s2 + $0x3c8] sm:$0xff] }
  0xa2   :  { %834 = vmatpush.msrb.mxu1 %v4110_v21  ;;  %875 = vmatpush.msrb.mxu3 %v7507_v10  ;;  %v4284_v10 = vld [vmem:[%s7062_s2 + $0x3d0] sm:$0xff] }
  0xa3   :  { %814 = vmatpush.msrb.mxu0 %v4105_v13 }
  0xa4   :  { %835 = vmatpush.msrb.mxu1 %v4122_v14  ;;  %v197_v38 = vpop.f32.mrf.mxu2  ;;  %v217_v39 = vpop.f32.mrf.mxu3 }
  0xa5   :  { %815 = vmatpush.msrb.mxu0 %v4117_v6  ;;  %v177_v41 = vpop.f32.mrf.mxu1  ;;  %v198_v42 = vadd.f32 %v197_v38, %v46_v18  ;;  %v218_v13 = vadd.f32 %v217_v39, %v47_v22  ;;  %v4291_v18 = vld [vmem:[%s7062_s2 + $0x3d8] sm:$0xff]  ;;  %v4298_v22 = vld [vmem:[%s7062_s2 + $0x380] sm:$0xff]  ;;  %v4308_v38 = vld [vmem:[%s7062_s2 + $0x390] sm:$0xff] }
  0xa6   :  { %v178_v43 = vadd.f32 %v177_v41, %v45_v37  ;;  %v4303_v37 = vld [vmem:[%s7062_s2 + $0x388] sm:$0xff]  ;;  %v4315_v39 = vld [vmem:[%s7062_s2 + $0x398] sm:$0xff] }
  0xa7   :  { %226 = vst [vmem:[#allocation2 + $0x30] sm:$0xff] %v198_v42  ;;  %v157_v21 = vpop.f32.mrf.mxu0  ;;  %v4325_v41 = vld [vmem:[%s7062_s2 + $0x348] sm:$0xff]  ;;  %v4332_v42 = vld [vmem:[%s7062_s2 + $0x350] sm:$0xff] }
  0xa8   :  { %225 = vst [vmem:[#allocation2 + $0x28] sm:$0xff] %v178_v43  ;;  %v158_v44 = vadd.f32 %v157_v21, %v44_v40  ;;  %v4320_v40 = vld [vmem:[%s7062_s2 + $0x340] sm:$0xff]  ;;  %v4351_v21 = vld [vmem:[%s7062_s2 + $0x308] sm:$0xff] }
  0xa9   :  { %227 = vst [vmem:[#allocation2 + $0x38] sm:$0xff] %v218_v13  ;;  %v4337_v13 = vld [vmem:[%s7062_s2 + $0x358] sm:$0xff]  ;;  %v4346_v43 = vld [vmem:[%s7062_s2 + $0x300] sm:$0xff] }
  0xaa   :  { %224 = vst [vmem:[#allocation2 + $0x20] sm:$0xff] %v158_v44  ;;  %v4356_v44 = vld [vmem:[%s7062_s2 + $0x310] sm:$0xff] }
  0xae   :  { %v416_v46 = vpop.f32.mrf.mxu2  ;;  %v436_v14 = vpop.f32.mrf.mxu3 }
  0xaf   :  { %v524_v48 = vrot.slane %v416_v46, 6  ;;  %v525_v49 = vrot.slane %v436_v14, 5  ;;  %v4375_v46 = vld [vmem:[%s7062_s2 + $0x2c8] sm:$0xff]  ;;  %v4380_v14 = vld [vmem:[%s7062_s2 + $0x2d0] sm:$0xff] }
  0xb1   :  { %v529_v54 = vsel %vm528_vm1, %v524_v48, %v525_v49  ;;  %v230_v59 = vld [vmem:[#allocation2 + $0x27] ss:$8 sm:$0xf] }
  0xb2   :  { %v396_v45 = vpop.f32.mrf.mxu1  ;;  %v4394_v48 = vld [vmem:[%s7062_s2 + $0x280] sm:$0xff]  ;;  %v4399_v49 = vld [vmem:[%s7062_s2 + $0x288] sm:$0xff] }
  0xb3   :  { %v523_v47 = vrot.slane %v396_v45, 7  ;;  %v4363_v45 = vld [vmem:[%s7062_s2 + $0x318] sm:$0xff] }
  0xb4   :  { %v376_v6 = vpop.f32.mrf.mxu0 }
  0xb5   :  { %v527_v55 = vsel %vm526_vm2, %v376_v6, %v523_v47  ;;  %v4370_v6 = vld [vmem:[%s7062_s2 + $0x2c0] sm:$0xff]  ;;  %v4387_v47 = vld [vmem:[%s7062_s2 + $0x2d8] sm:$0xff] }
  0xb6   :  { %v531_v56 = vsel %vm530_vm3, %v527_v55, %v529_v54  ;;  %v4428_v54 = vld [vmem:[%s7062_s2 + $0x250] sm:$0xff]  ;;  %v4435_v55 = vld [vmem:[%s7062_s2 + $0x258] sm:$0xff] }
  0xb7   :  { %v533_v58 = vadd.f32 %v531_v56, %v228_v57  ;;  %v4442_v56 = vld [vmem:[%s7062_s2 + $0x200] sm:$0xff]  ;;  %v4447_v57 = vld [vmem:[%s7062_s2 + $0x208] sm:$0xff] }
  0xb9   :  { %v547_v62 = vperm.slane %v533_v58, 0  ;;  %v548_v63 = vperm.slane %v533_v58, 1  ;;  %v549_v17 = vperm.slane %v533_v58, 2  ;;  %v550_v11 = vperm.slane %v533_v58, 3  ;;  %v4452_v58 = vld [vmem:[%s7062_s2 + $0x210] sm:$0xff] }
  0xe2   :  { %v476_v51 = vpop.f32.mrf.mxu1  ;;  %v496_v52 = vpop.f32.mrf.mxu2 }
  0xe3   :  { %v456_v50 = vpop.f32.mrf.mxu0  ;;  %v516_v53 = vpop.f32.mrf.mxu3  ;;  %539 = vst [vmem:[#allocation1 + $0x9] sm:$0xff] %v476_v51  ;;  %v4411_v51 = vld [vmem:[%s7062_s2 + $0x298] sm:$0xff] }
  0xe4   :  { %538 = vst [vmem:[#allocation1] sm:$0xff] %v456_v50  ;;  %v4404_v50 = vld [vmem:[%s7062_s2 + $0x290] sm:$0xff] }
  0xe5   :  { %540 = vst [vmem:[#allocation1 + $0x12] sm:$0xff] %v496_v52  ;;  %v4418_v52 = vld [vmem:[%s7062_s2 + $0x240] sm:$0xff] }
  0xe6   :  { %541 = vst [vmem:[#allocation1 + $0x1b] sm:$0xff] %v516_v53  ;;  %v4423_v53 = vld [vmem:[%s7062_s2 + $0x248] sm:$0xff] }
  0xed   :  { %v543_v60 = vld [vmem:[#allocation1 + $0x1] ss:$9 sm:$0xff] }
  0xee   :  { %v545_v61 = vadd.f32 %v543_v60, %v230_v59  ;;  %v4459_v59 = vld [vmem:[%s7062_s2 + $0x218] sm:$0xff]  ;;  %v4466_v60 = vld [vmem:[%s7062_s2 + $0x1c0] sm:$0xff] }
  0xf0   :  { %v556_v0 = vperm.slane %v545_v61, 0  ;;  %v557_v1 = vperm.slane %v545_v61, 1  ;;  %v558_v2 = vperm.slane %v545_v61, 2  ;;  %v559_v3 = vperm.slane %v545_v61, 3  ;;  %v4471_v61 = vld [vmem:[%s7062_s2 + $0x1c8] sm:$0xff] }
  0xf2   :  { %v564_v4 = vsel %vm526_vm2, %v547_v62, %v556_v0  ;;  %v565_v5 = vsel %vm526_vm2, %v548_v63, %v557_v1  ;;  %v566_v12 = vsel %vm526_vm2, %v549_v17, %v558_v2  ;;  %v567_v15 = vsel %vm526_vm2, %v550_v11, %v559_v3  ;;  %v4476_v62 = vld [vmem:[%s7062_s2 + $0x1d0] sm:$0xff]  ;;  %v4483_v63 = vld [vmem:[%s7062_s2 + $0x1d8] sm:$0xff]  ;;  %v4490_v0 = vld [vmem:[%s7062_s2 + $0x180] sm:$0xff] }
  0xf3   :  { %v568_v7 = vmul.f32 0.5, %v564_v4  ;;  %v569_v8 = vmul.f32 0.5, %v565_v5  ;;  %v570_v16 = vmul.f32 0.5, %v566_v12  ;;  %v4495_v1 = vld [vmem:[%s7062_s2 + $0x188] sm:$0xff]  ;;  %v4500_v2 = vld [vmem:[%s7062_s2 + $0x190] sm:$0xff]  ;;  %v4507_v3 = vld [vmem:[%s7062_s2 + $0x198] sm:$0xff] }
  0xf4   :  { %v4514_v4 = vld [vmem:[%s7062_s2 + $0x140] sm:$0xff]  ;;  %v4519_v5 = vld [vmem:[%s7062_s2 + $0x148] sm:$0xff]  ;;  %v4548_v12 = vld [vmem:[%s7062_s2 + $0x110] sm:$0xff] }
  0xf5   :  { %3142 = vtanh.f32 %v568_v7  ;;  %v4524_v7 = vld [vmem:[%s7062_s2 + $0x150] sm:$0xff]  ;;  %v4538_v17 = vld [vmem:[%s7062_s2 + $0x100] sm:$0xff]  ;;  %v4543_v11 = vld [vmem:[%s7062_s2 + $0x108] sm:$0xff]  ;;  %7508 = vst [vmem:[#allocation7_spill] sm:$0xff] %v4548_v12 }
  0xf6   :  { %3144 = vtanh.f32 %v569_v8  ;;  %v4531_v8 = vld [vmem:[%s7062_s2 + $0x158] sm:$0xff] }
  0xf7   :  { %3146 = vtanh.f32 %v567_v15  ;;  %v4555_v15 = vld [vmem:[%s7062_s2 + $0x118] sm:$0xff] }
  0xf8   :  { %3148 = vtanh.f32 %v570_v16  ;;  %7509 = vst [vmem:[#allocation12_spill] sm:$0xff] %v4555_v15  ;;  %v4560_v16 = vld [vmem:[%s7062_s2 + $0xc0] sm:$0xff] }
  0xf9   :  { %7510 = vst [vmem:[#allocation13_spill] sm:$0xff] %v4560_v16 }
  0xfb   :  { %v3143_v19 = vpop.eup %3142 }
  0xfc   :  { %v3145_v20 = vpop.eup %3144  ;;  %v574_v23 = vmul.f32 0.5, %v3143_v19  ;;  %v4565_v19 = vld [vmem:[%s7062_s2 + $0xc8] sm:$0xff] }
  0xfd   :  { %v575_v24 = vmul.f32 0.5, %v3145_v20  ;;  %v3147_v26 = vpop.eup %3146  ;;  %7511 = vst [vmem:[#allocation8_spill] sm:$0xff] %v4565_v19  ;;  %v4572_v20 = vld [vmem:[%s7062_s2 + $0xd0] sm:$0xff] }
  0xfe   :  { %v577_v25 = vadd.f32 0.5, %v574_v23  ;;  %v3149_v30 = vpop.eup %3148  ;;  %7512 = vst [vmem:[#allocation9_spill] sm:$0xff] %v4572_v20  ;;  %v4577_v23 = vld [vmem:[%s7062_s2 + $0xd8] sm:$0xff] }
  0xff   :  { %v578_v27 = vadd.f32 0.5, %v575_v24  ;;  %v576_v32 = vmul.f32 0.5, %v3149_v30  ;;  %7513 = vst [vmem:[#allocation16_spill] sm:$0xff] %v4577_v23  ;;  %v4582_v24 = vld [vmem:[%s7062_s2 + $0x80] sm:$0xff]  ;;  %v4618_v30 = vld [vmem:[%s7062_s2 + $0x50] sm:$0xff] }
 0x100   :  { %v582_v28 = vmul.f32 %v3147_v26, %v577_v25  ;;  %7514 = vst [vmem:[#allocation17_spill] sm:$0xff] %v4582_v24  ;;  %v4589_v25 = vld [vmem:[%s7062_s2 + $0x88] sm:$0xff]  ;;  %v4594_v26 = vld [vmem:[%s7062_s2 + $0x90] sm:$0xff] }
 0x101   :  { %v581_v29 = vmul.f32 0.0, %v578_v27  ;;  %v579_v33 = vadd.f32 0.5, %v576_v32  ;;  %7515 = vst [vmem:[#allocation10_spill] sm:$0xff] %v4589_v25  ;;  %v4599_v27 = vld [vmem:[%s7062_s2 + $0x98] sm:$0xff] }
 0x102   :  { %7516 = vst [vmem:[#allocation11_spill] sm:$0xff] %v4594_v26  ;;  %v4623_v32 = vld [vmem:[%s7062_s2 + $0x58] sm:$0xff] }
 0x103   :  { %v4268_v31 = vadd.f32 %v582_v28, %v581_v29  ;;  %7517 = vst [vmem:[#allocation20_spill] sm:$0xff] %v4599_v27  ;;  %v4606_v28 = vld [vmem:[%s7062_s2 + $0x40] sm:$0xff]  ;;  %v4611_v29 = vld [vmem:[%s7062_s2 + $0x48] sm:$0xff] }
 0x104   :  { %7518 = vst [vmem:[#allocation21_spill] sm:$0xff] %v4606_v28 }
 0x105   :  { %3150 = vtanh.f32 %v4268_v31  ;;  %7519 = vst [vmem:[#allocation22_spill] sm:$0xff] %v4611_v29 }
 0x106   :  { %7520 = vst [vmem:[#allocation23_spill] sm:$0xff] %v4618_v30 }
 0x107   :  { %7521 = vst [vmem:[#allocation14_spill] sm:$0xff] %v4623_v32 }
 0x10b   :  { %v3151_v34 = vpop.eup %3150 }
 0x10c   :  { %v585_v35 = vmul.f32 %v3151_v34, %v579_v33  ;;  %v4630_v33 = vld [vmem:[%s7062_s2] sm:$0xff]  ;;  %v4635_v34 = vld [vmem:[%s7062_s2 + $0x8] sm:$0xff] }
 0x10d   :  { %7522 = vst [vmem:[#allocation15_spill] sm:$0xff] %v4630_v33 }
 0x10e   :  { %736 = vmatmul.f32.vlgmr.msra.gmra.mxu0 %v585_v35  ;;  %586 = vst [vmem:[#allocation4] sm:$0x1] %v585_v35  ;;  %756 = vmatmul.f32.vlgmr.msra.gmra.mxu1 %v585_v35 }
 0x10f   :  { %587 = vst [vmem:[#allocation3 + $0x6] sm:$0x2] %v585_v35  ;;  %776 = vmatmul.f32.vlgmr.msra.gmra.mxu2 %v585_v35  ;;  %796 = vmatmul.f32.vlgmr.msra.gmra.mxu3 %v585_v35 }
 0x110   :  { %1078 = vmatpush.msra.mxu0 %v4274_v36  ;;  %1098 = vmatpush.msra.mxu1 %v4279_v9  ;;  %7523 = vst [vmem:[#allocation26_spill] sm:$0xff] %v4635_v34 }
 0x111   :  { %1118 = vmatpush.msra.mxu2 %v4284_v10  ;;  %1138 = vmatpush.msra.mxu3 %v4291_v18 }
 0x112   :  { %1079 = vmatpush.msra.mxu0 %v4298_v22  ;;  %1099 = vmatpush.msra.mxu1 %v4303_v37 }
 0x113   :  { %1119 = vmatpush.msra.mxu2 %v4308_v38  ;;  %1139 = vmatpush.msra.mxu3 %v4315_v39 }
 0x114   :  { %1080 = vmatpush.msra.mxu0 %v4320_v40  ;;  %1100 = vmatpush.msra.mxu1 %v4325_v41 }
 0x115   :  { %1120 = vmatpush.msra.mxu2 %v4332_v42  ;;  %1140 = vmatpush.msra.mxu3 %v4337_v13 }
 0x116   :  { %816 = vmatmul.f32.vlgmr.msrb.gmra.mxu0 %v585_v35  ;;  %836 = vmatmul.f32.vlgmr.msrb.gmra.mxu1 %v585_v35 }
 0x117   :  { %856 = vmatmul.f32.vlgmr.msrb.gmra.mxu2 %v585_v35  ;;  %876 = vmatmul.f32.vlgmr.msrb.gmra.mxu3 %v585_v35  ;;  %v4642_v35 = vld [vmem:[%s7062_s2 + $0x10] sm:$0xff] }
 0x118   :  { %1081 = vmatpush.msra.mxu0 %v4346_v43  ;;  %1101 = vmatpush.msra.mxu1 %v4351_v21  ;;  %7524 = vst [vmem:[#allocation27_spill] sm:$0xff] %v4642_v35 }
 0x119   :  { %1121 = vmatpush.msra.mxu2 %v4356_v44  ;;  %1141 = vmatpush.msra.mxu3 %v4363_v45 }
 0x11a   :  { %1082 = vmatpush.msra.mxu0 %v4370_v6  ;;  %1102 = vmatpush.msra.mxu1 %v4375_v46 }
 0x11b   :  { %1122 = vmatpush.msra.mxu2 %v4380_v14  ;;  %1142 = vmatpush.msra.mxu3 %v4387_v47 }
 0x11c   :  { %1083 = vmatpush.msra.mxu0 %v4394_v48  ;;  %1103 = vmatpush.msra.mxu1 %v4399_v49 }
 0x11d   :  { %1123 = vmatpush.msra.mxu2 %v4404_v50  ;;  %1143 = vmatpush.msra.mxu3 %v4411_v51 }
 0x11e   :  { %1084 = vmatpush.msra.mxu0 %v4418_v52  ;;  %1104 = vmatpush.msra.mxu1 %v4423_v53 }
 0x11f   :  { %1124 = vmatpush.msra.mxu2 %v4428_v54  ;;  %1144 = vmatpush.msra.mxu3 %v4435_v55 }
 0x120   :  { %1085 = vmatpush.msra.mxu0 %v4442_v56  ;;  %1105 = vmatpush.msra.mxu1 %v4447_v57 }
 0x121   :  { %1125 = vmatpush.msra.mxu2 %v4452_v58  ;;  %1145 = vmatpush.msra.mxu3 %v4459_v59 }
 0x122   :  { %1086 = vmatpush.msra.mxu0 %v4466_v60  ;;  %1106 = vmatpush.msra.mxu1 %v4471_v61 }
 0x123   :  { %1126 = vmatpush.msra.mxu2 %v4476_v62  ;;  %1146 = vmatpush.msra.mxu3 %v4483_v63 }
 0x124   :  { %1087 = vmatpush.msra.mxu0 %v4490_v0  ;;  %1107 = vmatpush.msra.mxu1 %v4495_v1 }
 0x125   :  { %1127 = vmatpush.msra.mxu2 %v4500_v2  ;;  %1147 = vmatpush.msra.mxu3 %v4507_v3 }
 0x126   :  { %1088 = vmatpush.msra.mxu0 %v4514_v4  ;;  %1108 = vmatpush.msra.mxu1 %v4519_v5 }
 0x127   :  { %1128 = vmatpush.msra.mxu2 %v4524_v7  ;;  %1148 = vmatpush.msra.mxu3 %v4531_v8 }
 0x128   :  { %1089 = vmatpush.msra.mxu0 %v4538_v17  ;;  %1109 = vmatpush.msra.mxu1 %v4543_v11 }
 0x129   :  { %1129 = vmatpush.msra.mxu2 %v4548_v12  ;;  %1149 = vmatpush.msra.mxu3 %v4555_v15  ;;  %v5007_v15 = vld [vmem:[%s7062_s2 + $0x68] sm:$0xff] }
 0x12a   :  { %1090 = vmatpush.msra.mxu0 %v4560_v16  ;;  %1110 = vmatpush.msra.mxu1 %v4565_v19  ;;  %7583 = vst [vmem:[#allocation82_spill] sm:$0xff] %v5007_v15 }
 0x12b   :  { %1130 = vmatpush.msra.mxu2 %v4572_v20  ;;  %1150 = vmatpush.msra.mxu3 %v4577_v23 }
 0x12c   :  { %1091 = vmatpush.msra.mxu0 %v4582_v24  ;;  %1111 = vmatpush.msra.mxu1 %v4589_v25 }
 0x12d   :  { %1131 = vmatpush.msra.mxu2 %v4594_v26  ;;  %1151 = vmatpush.msra.mxu3 %v4599_v27  ;;  %v4647_v27 = vld [vmem:[%s7062_s2 + $0x18] sm:$0xff] }
 0x12e   :  { %1092 = vmatpush.msra.mxu0 %v4606_v28  ;;  %1112 = vmatpush.msra.mxu1 %v4611_v29  ;;  %7525 = vst [vmem:[#allocation18_spill] sm:$0xff] %v4647_v27  ;;  %v4654_v28 = vld [vmem:[%s7062_s2 + $0x3e0] sm:$0xff]  ;;  %v4659_v29 = vld [vmem:[%s7062_s2 + $0x3e8] sm:$0xff] }
 0x12f   :  { %1132 = vmatpush.msra.mxu2 %v4618_v30  ;;  %1152 = vmatpush.msra.mxu3 %v4623_v32  ;;  %7526 = vst [vmem:[#allocation19_spill] sm:$0xff] %v4654_v28  ;;  %v4670_v32 = vld [vmem:[%s7062_s2 + $0x3f0] sm:$0xff]  ;;  %v4675_v30 = vld [vmem:[%s7062_s2 + $0x3f8] sm:$0xff] }
 0x130   :  { %7527 = vst [vmem:[#allocation30_spill] sm:$0xff] %v4659_v29  ;;  %1093 = vmatpush.msra.mxu0 %v4630_v33  ;;  %1113 = vmatpush.msra.mxu1 %v4635_v34  ;;  %v4682_v33 = vld [vmem:[%s7062_s2 + $0x3a0] sm:$0xff]  ;;  %v4687_v34 = vld [vmem:[%s7062_s2 + $0x3a8] sm:$0xff] }
 0x131   :  { %7528 = vst [vmem:[#allocation31_spill] sm:$0xff] %v4670_v32  ;;  %1133 = vmatpush.msra.mxu2 %v4642_v35  ;;  %1153 = vmatpush.msra.mxu3 %v4647_v27  ;;  %v4694_v35 = vld [vmem:[%s7062_s2 + $0x3b0] sm:$0xff]  ;;  %v4699_v27 = vld [vmem:[%s7062_s2 + $0x3b8] sm:$0xff] }
 0x132   :  { %7529 = vst [vmem:[#allocation24_spill] sm:$0xff] %v4675_v30  ;;  %1158 = vmatpush.msrb.mxu0 %v4654_v28  ;;  %1178 = vmatpush.msrb.mxu1 %v4659_v29  ;;  %v4706_v28 = vld [vmem:[%s7062_s2 + $0x360] sm:$0xff]  ;;  %v4711_v29 = vld [vmem:[%s7062_s2 + $0x368] sm:$0xff] }
 0x133   :  { %7530 = vst [vmem:[#allocation25_spill] sm:$0xff] %v4682_v33  ;;  %1198 = vmatpush.msrb.mxu2 %v4670_v32  ;;  %1218 = vmatpush.msrb.mxu3 %v4675_v30  ;;  %v4718_v32 = vld [vmem:[%s7062_s2 + $0x370] sm:$0xff]  ;;  %v4723_v30 = vld [vmem:[%s7062_s2 + $0x378] sm:$0xff] }
 0x134   :  { %7531 = vst [vmem:[#allocation34_spill] sm:$0xff] %v4687_v34  ;;  %1159 = vmatpush.msrb.mxu0 %v4682_v33  ;;  %1179 = vmatpush.msrb.mxu1 %v4687_v34  ;;  %v4730_v33 = vld [vmem:[%s7062_s2 + $0x320] sm:$0xff]  ;;  %v4735_v34 = vld [vmem:[%s7062_s2 + $0x328] sm:$0xff] }
 0x135   :  { %7532 = vst [vmem:[#allocation35_spill] sm:$0xff] %v4694_v35  ;;  %1199 = vmatpush.msrb.mxu2 %v4694_v35  ;;  %1219 = vmatpush.msrb.mxu3 %v4699_v27  ;;  %v4742_v35 = vld [vmem:[%s7062_s2 + $0x330] sm:$0xff] }
 0x136   :  { %7533 = vst [vmem:[#allocation28_spill] sm:$0xff] %v4699_v27  ;;  %1160 = vmatpush.msrb.mxu0 %v4706_v28  ;;  %1180 = vmatpush.msrb.mxu1 %v4711_v29  ;;  %v4747_v27 = vld [vmem:[%s7062_s2 + $0x338] sm:$0xff] }
 0x137   :  { %7534 = vst [vmem:[#allocation29_spill] sm:$0xff] %v4706_v28  ;;  %1200 = vmatpush.msrb.mxu2 %v4718_v32  ;;  %1220 = vmatpush.msrb.mxu3 %v4723_v30  ;;  %v4759_v28 = vld [vmem:[%s7062_s2 + $0x2e8] sm:$0xff] }
 0x138   :  { %7535 = vst [vmem:[#allocation38_spill] sm:$0xff] %v4711_v29  ;;  %v4754_v29 = vld [vmem:[%s7062_s2 + $0x2e0] sm:$0xff]  ;;  %1161 = vmatpush.msrb.mxu0 %v4730_v33  ;;  %1181 = vmatpush.msrb.mxu1 %v4735_v34 }
 0x139   :  { %7536 = vst [vmem:[#allocation39_spill] sm:$0xff] %v4718_v32  ;;  %v4771_v32 = vld [vmem:[%s7062_s2 + $0x2f8] sm:$0xff]  ;;  %1201 = vmatpush.msrb.mxu2 %v4742_v35  ;;  %1221 = vmatpush.msrb.mxu3 %v4747_v27 }
 0x13a   :  { %7537 = vst [vmem:[#allocation32_spill] sm:$0xff] %v4723_v30  ;;  %v4766_v30 = vld [vmem:[%s7062_s2 + $0x2f0] sm:$0xff]  ;;  %1162 = vmatpush.msrb.mxu0 %v4754_v29  ;;  %1182 = vmatpush.msrb.mxu1 %v4759_v28 }
 0x13b   :  { %7538 = vst [vmem:[#allocation33_spill] sm:$0xff] %v4730_v33  ;;  %v4778_v33 = vld [vmem:[%s7062_s2 + $0x2a0] sm:$0xff]  ;;  %1202 = vmatpush.msrb.mxu2 %v4766_v30  ;;  %1222 = vmatpush.msrb.mxu3 %v4771_v32 }
 0x13c   :  { %7539 = vst [vmem:[#allocation42_spill] sm:$0xff] %v4735_v34  ;;  %v4783_v34 = vld [vmem:[%s7062_s2 + $0x2a8] sm:$0xff]  ;;  %1163 = vmatpush.msrb.mxu0 %v4778_v33 }
 0x13d   :  { %7540 = vst [vmem:[#allocation43_spill] sm:$0xff] %v4742_v35  ;;  %1183 = vmatpush.msrb.mxu1 %v4783_v34 }
 0x13e   :  { %7541 = vst [vmem:[#allocation36_spill] sm:$0xff] %v4747_v27  ;;  %v4795_v27 = vld [vmem:[%s7062_s2 + $0x2b8] sm:$0xff] }
 0x13f   :  { %7542 = vst [vmem:[#allocation37_spill] sm:$0xff] %v4754_v29  ;;  %1223 = vmatpush.msrb.mxu3 %v4795_v27 }
 0x140   :  { %7543 = vst [vmem:[#allocation46_spill] sm:$0xff] %v4759_v28  ;;  %v4807_v28 = vld [vmem:[%s7062_s2 + $0x268] sm:$0xff] }
 0x141   :  { %7544 = vst [vmem:[#allocation47_spill] sm:$0xff] %v4766_v30  ;;  %v4814_v30 = vld [vmem:[%s7062_s2 + $0x270] sm:$0xff]  ;;  %1184 = vmatpush.msrb.mxu1 %v4807_v28 }
 0x142   :  { %7545 = vst [vmem:[#allocation40_spill] sm:$0xff] %v4771_v32  ;;  %v4819_v32 = vld [vmem:[%s7062_s2 + $0x278] sm:$0xff] }
 0x143   :  { %7546 = vst [vmem:[#allocation41_spill] sm:$0xff] %v4778_v33  ;;  %v4831_v33 = vld [vmem:[%s7062_s2 + $0x228] sm:$0xff]  ;;  %1224 = vmatpush.msrb.mxu3 %v4819_v32 }
 0x144   :  { %7547 = vst [vmem:[#allocation50_spill] sm:$0xff] %v4783_v34  ;;  %v4826_v34 = vld [vmem:[%s7062_s2 + $0x220] sm:$0xff]  ;;  %1185 = vmatpush.msrb.mxu1 %v4831_v33 }
 0x145   :  { %7549 = vst [vmem:[#allocation44_spill] sm:$0xff] %v4795_v27 }
 0x146   :  { %7551 = vst [vmem:[#allocation54_spill] sm:$0xff] %v4807_v28  ;;  %v4851_v28 = vld [vmem:[%s7062_s2 + $0x1e0] sm:$0xff] }
 0x147   :  { %7552 = vst [vmem:[#allocation55_spill] sm:$0xff] %v4814_v30 }
 0x148   :  { %7553 = vst [vmem:[#allocation48_spill] sm:$0xff] %v4819_v32  ;;  %v4868_v32 = vld [vmem:[%s7062_s2 + $0x1f8] sm:$0xff] }
 0x149   :  { %7554 = vst [vmem:[#allocation49_spill] sm:$0xff] %v4826_v34 }
 0x14a   :  { %7555 = vst [vmem:[#allocation58_spill] sm:$0xff] %v4831_v33  ;;  %v4881_v33 = vld [vmem:[%s7062_s2 + $0x1a8] sm:$0xff] }
 0x14b   :  { %7558 = vst [vmem:[#allocation53_spill] sm:$0xff] %v4851_v28 }
 0x14c   :  { %7561 = vst [vmem:[#allocation56_spill] sm:$0xff] %v4868_v32 }
 0x14d   :  { %7563 = vst [vmem:[#allocation66_spill] sm:$0xff] %v4881_v33 }
 0x18b   :  { %v4661_v26 = vpop.f32.mrf.mxu0  ;;  %v4663_v25 = vpop.f32.mrf.mxu1 }
 0x18c   :  { %v884_v27 = vrot.slane %v4663_v25, 7  ;;  %v4863_v25 = vld [vmem:[%s7062_s2 + $0x1f0] sm:$0xff] }
 0x18d   :  { %7560 = vst [vmem:[#allocation63_spill] sm:$0xff] %v4863_v25 }
 0x192   :  { %v777_v24 = vpop.f32.mrf.mxu2  ;;  %v797_v23 = vpop.f32.mrf.mxu3 }
 0x193   :  { %v817_v20 = vpop.f32.mrf.mxu0  ;;  %v837_v19 = vpop.f32.mrf.mxu1  ;;  %v885_v29 = vrot.slane %v777_v24, 6  ;;  %v886_v35 = vrot.slane %v797_v23, 5  ;;  %v4838_v23 = vld [vmem:[%s7062_s2 + $0x230] sm:$0xff]  ;;  %v4843_v24 = vld [vmem:[%s7062_s2 + $0x238] sm:$0xff] }
 0x194   :  { %896 = vst [vmem:[#allocation1] sm:$0xff] %v817_v20  ;;  %v4790_v20 = vld [vmem:[%s7062_s2 + $0x2b0] sm:$0xff]  ;;  %1225 = vmatpush.msrb.mxu3 %v4843_v24 }
 0x195   :  { %897 = vst [vmem:[#allocation1 + $0x9] sm:$0xff] %v837_v19  ;;  %v4802_v19 = vld [vmem:[%s7062_s2 + $0x260] sm:$0xff]  ;;  %1203 = vmatpush.msrb.mxu2 %v4790_v20 }
 0x196   :  { %7548 = vst [vmem:[#allocation51_spill] sm:$0xff] %v4790_v20  ;;  %1164 = vmatpush.msrb.mxu0 %v4802_v19  ;;  %1226 = vmatpush.msrb.mxu3 %v4868_v32  ;;  %v591_v32 = vld [vmem:[#allocation2 + $0x26] ss:$8 sm:$0xf] }
 0x197   :  { %7550 = vst [vmem:[#allocation45_spill] sm:$0xff] %v4802_v19  ;;  %1204 = vmatpush.msrb.mxu2 %v4814_v30  ;;  %v4856_v19 = vld [vmem:[%s7062_s2 + $0x1e8] sm:$0xff]  ;;  %v888_v30 = vsel %vm528_vm1, %v885_v29, %v886_v35  ;;  %v4893_v29 = vld [vmem:[%s7062_s2 + $0x1b8] sm:$0xff]  ;;  %v887_v35 = vsel %vm526_vm2, %v4661_v26, %v884_v27  ;;  %v4915_v26 = vld [vmem:[%s7062_s2 + $0x170] sm:$0xff] }
 0x198   :  { %7556 = vst [vmem:[#allocation59_spill] sm:$0xff] %v4838_v23  ;;  %1165 = vmatpush.msrb.mxu0 %v4826_v34  ;;  %1186 = vmatpush.msrb.mxu1 %v4856_v19  ;;  %v4920_v27 = vld [vmem:[%s7062_s2 + $0x178] sm:$0xff]  ;;  %v5002_v34 = vld [vmem:[%s7062_s2 + $0x60] sm:$0xff] }
 0x199   :  { %7557 = vst [vmem:[#allocation52_spill] sm:$0xff] %v4843_v24  ;;  %1205 = vmatpush.msrb.mxu2 %v4838_v23  ;;  %v889_v24 = vsel %vm530_vm3, %v887_v35, %v888_v30  ;;  %1227 = vmatpush.msrb.mxu3 %v4893_v29  ;;  %v4927_v30 = vld [vmem:[%s7062_s2 + $0x120] sm:$0xff]  ;;  %v4932_v35 = vld [vmem:[%s7062_s2 + $0x128] sm:$0xff] }
 0x19a   :  { %v857_v20 = vpop.f32.mrf.mxu2  ;;  %v877_v16 = vpop.f32.mrf.mxu3  ;;  %7559 = vst [vmem:[#allocation62_spill] sm:$0xff] %v4856_v19  ;;  %1166 = vmatpush.msrb.mxu0 %v4851_v28  ;;  %v4902_v19 = vld [vmem:[%s7062_s2 + $0x160] sm:$0xff]  ;;  %v4907_v28 = vld [vmem:[%s7062_s2 + $0x168] sm:$0xff]  ;;  %1187 = vmatpush.msrb.mxu1 %v4881_v33 }
 0x19b   :  { %898 = vst [vmem:[#allocation1 + $0x12] sm:$0xff] %v857_v20  ;;  %v4876_v20 = vld [vmem:[%s7062_s2 + $0x1a0] sm:$0xff]  ;;  %1206 = vmatpush.msrb.mxu2 %v4863_v25  ;;  %1228 = vmatpush.msrb.mxu3 %v4920_v27 }
 0x19c   :  { %899 = vst [vmem:[#allocation1 + $0x1b] sm:$0xff] %v877_v16  ;;  %v4888_v16 = vld [vmem:[%s7062_s2 + $0x1b0] sm:$0xff]  ;;  %1167 = vmatpush.msrb.mxu0 %v4876_v20  ;;  %1188 = vmatpush.msrb.mxu1 %v4907_v28 }
 0x19d   :  { %7562 = vst [vmem:[#allocation57_spill] sm:$0xff] %v4876_v20  ;;  %1207 = vmatpush.msrb.mxu2 %v4888_v16  ;;  %v589_v33 = vld [vmem:[#allocation2 + $0x1] ss:$8 sm:$0xf] }
 0x19e   :  { %7564 = vst [vmem:[#allocation67_spill] sm:$0xff] %v4888_v16  ;;  %1168 = vmatpush.msrb.mxu0 %v4902_v19  ;;  %v4939_v16 = vld [vmem:[%s7062_s2 + $0x130] sm:$0xff]  ;;  %v891_v20 = vadd.f32 %v889_v24, %v589_v33  ;;  %1189 = vmatpush.msrb.mxu1 %v4932_v35  ;;  %v4960_v33 = vld [vmem:[%s7062_s2 + $0xe8] sm:$0xff] }
 0x19f   :  { %7565 = vst [vmem:[#allocation60_spill] sm:$0xff] %v4893_v29  ;;  %v4944_v29 = vld [vmem:[%s7062_s2 + $0x138] sm:$0xff]  ;;  %1208 = vmatpush.msrb.mxu2 %v4915_v26  ;;  %v4965_v24 = vld [vmem:[%s7062_s2 + $0xf0] sm:$0xff] }
 0x1a0   :  { %7566 = vst [vmem:[#allocation61_spill] sm:$0xff] %v4902_v19  ;;  %1169 = vmatpush.msrb.mxu0 %v4927_v30  ;;  %1229 = vmatpush.msrb.mxu3 %v4944_v29  ;;  %v4955_v19 = vld [vmem:[%s7062_s2 + $0xe0] sm:$0xff]  ;;  %v908_v12 = vperm.slane %v891_v20, 3 }
 0x1a1   :  { %7567 = vst [vmem:[#allocation64_spill] sm:$0xff] %v4907_v28  ;;  %1209 = vmatpush.msrb.mxu2 %v4939_v16  ;;  %1190 = vmatpush.msrb.mxu1 %v4960_v33 }
 0x1a2   :  { %7568 = vst [vmem:[#allocation65_spill] sm:$0xff] %v4915_v26  ;;  %1170 = vmatpush.msrb.mxu0 %v4955_v19 }
 0x1a3   :  { %7569 = vst [vmem:[#allocation68_spill] sm:$0xff] %v4920_v27  ;;  %v901_v25 = vld [vmem:[#allocation1 + $0x1] ss:$9 sm:$0xff]  ;;  %1210 = vmatpush.msrb.mxu2 %v4965_v24 }
 0x1a4   :  { %7570 = vst [vmem:[#allocation69_spill] sm:$0xff] %v4927_v30  ;;  %v903_v28 = vadd.f32 %v901_v25, %v591_v32  ;;  %v4972_v32 = vld [vmem:[%s7062_s2 + $0xf8] sm:$0xff]  ;;  %v4977_v25 = vld [vmem:[%s7062_s2 + $0xa0] sm:$0xff] }
 0x1a5   :  { %7571 = vst [vmem:[#allocation70_spill] sm:$0xff] %v4932_v35  ;;  %v905_v35 = vperm.slane %v891_v20, 0  ;;  %1230 = vmatpush.msrb.mxu3 %v4972_v32  ;;  %v4994_v27 = vld [vmem:[%s7062_s2 + $0xb8] sm:$0xff]  ;;  %1171 = vmatpush.msrb.mxu0 %v4977_v25 }
 0x1a6   :  { %7572 = vst [vmem:[#allocation71_spill] sm:$0xff] %v4939_v16  ;;  %v906_v16 = vperm.slane %v891_v20, 1  ;;  %v914_v30 = vperm.slane %v903_v28, 0  ;;  %v916_v26 = vperm.slane %v903_v28, 2  ;;  %v917_v23 = vperm.slane %v903_v28, 3 }
 0x1a7   :  { %7573 = vst [vmem:[#allocation72_spill] sm:$0xff] %v4944_v29  ;;  %v915_v29 = vperm.slane %v903_v28, 1  ;;  %v5012_v28 = vld [vmem:[%s7062_s2 + $0x70] sm:$0xff]  ;;  %1231 = vmatpush.msrb.mxu3 %v4994_v27  ;;  %1172 = vmatpush.msrb.mxu0 %v5002_v34 }
 0x1a8   :  { %7574 = vst [vmem:[#allocation73_spill] sm:$0xff] %v4955_v19  ;;  %v4984_v19 = vld [vmem:[%s7062_s2 + $0xa8] sm:$0xff] }
 0x1a9   :  { %7575 = vst [vmem:[#allocation74_spill] sm:$0xff] %v4960_v33  ;;  %v4989_v33 = vld [vmem:[%s7062_s2 + $0xb0] sm:$0xff]  ;;  %1191 = vmatpush.msrb.mxu1 %v4984_v19 }
 0x1aa   :  { %7576 = vst [vmem:[#allocation75_spill] sm:$0xff] %v4965_v24  ;;  %v922_v24 = vsel %vm526_vm2, %v905_v35, %v914_v30  ;;  %1211 = vmatpush.msrb.mxu2 %v4989_v33 }
 0x1ab   :  { %7577 = vst [vmem:[#allocation76_spill] sm:$0xff] %v4972_v32  ;;  %v923_v32 = vsel %vm526_vm2, %v906_v16, %v915_v29  ;;  %v926_v30 = vmul.f32 0.5, %v922_v24  ;;  %v5019_v16 = vld [vmem:[%s7062_s2 + $0x78] sm:$0xff]  ;;  %v5024_v29 = vld [vmem:[%s7062_s2 + $0x20] sm:$0xff]  ;;  %v5031_v24 = vld [vmem:[%s7062_s2 + $0x28] sm:$0xff]  ;;  %1192 = vmatpush.msrb.mxu1 %v5007_v15 }
 0x1ac   :  { %7578 = vst [vmem:[#allocation77_spill] sm:$0xff] %v4977_v25  ;;  %v927_v35 = vmul.f32 0.5, %v923_v32  ;;  %v907_v25 = vperm.slane %v891_v20, 2  ;;  %v5036_v32 = vld [vmem:[%s7062_s2 + $0x30] sm:$0xff]  ;;  %1212 = vmatpush.msrb.mxu2 %v5012_v28  ;;  %v5043_v20 = vld [vmem:[%s7062_s2 + $0x38] sm:$0xff]  ;;  %1232 = vmatpush.msrb.mxu3 %v5019_v16 }
 0x1ad   :  { %7579 = vst [vmem:[#allocation78_spill] sm:$0xff] %v4984_v19  ;;  %3152 = vtanh.f32 %v926_v30  ;;  %1173 = vmatpush.msrb.mxu0 %v5024_v29  ;;  %1193 = vmatpush.msrb.mxu1 %v5031_v24 }
 0x1ae   :  { %7580 = vst [vmem:[#allocation79_spill] sm:$0xff] %v4989_v33  ;;  %3154 = vtanh.f32 %v927_v35  ;;  %1213 = vmatpush.msrb.mxu2 %v5036_v32  ;;  %1233 = vmatpush.msrb.mxu3 %v5043_v20 }
 0x1af   :  { %7581 = vst [vmem:[#allocation80_spill] sm:$0xff] %v4994_v27  ;;  %v925_v27 = vsel %vm526_vm2, %v908_v12, %v917_v23 }
 0x1b0   :  { %7582 = vst [vmem:[#allocation81_spill] sm:$0xff] %v5002_v34  ;;  %v924_v34 = vsel %vm526_vm2, %v907_v25, %v916_v26  ;;  %3156 = vtanh.f32 %v925_v27 }
 0x1b1   :  { %7584 = vst [vmem:[#allocation83_spill] sm:$0xff] %v5012_v28  ;;  %v928_v30 = vmul.f32 0.5, %v924_v34 }
 0x1b2   :  { %7585 = vst [vmem:[#allocation84_spill] sm:$0xff] %v5019_v16 }
 0x1b3   :  { %7586 = vst [vmem:[#allocation85_spill] sm:$0xff] %v5024_v29  ;;  %v3153_v28 = vpop.eup %3152  ;;  %3158 = vtanh.f32 %v928_v30  ;;  %v7643_v30 = vld [vmem:[#allocation57_spill] sm:$0xff] }
 0x1b4   :  { %7587 = vst [vmem:[#allocation86_spill] sm:$0xff] %v5036_v32  ;;  %v3155_v15 = vpop.eup %3154  ;;  %v932_v33 = vmul.f32 0.5, %v3153_v28  ;;  %v7638_v28 = vld [vmem:[#allocation52_spill] sm:$0xff] }
 0x1b5   :  { %7588 = vst [vmem:[#allocation87_spill] sm:$0xff] %v5043_v20  ;;  %v933_v26 = vmul.f32 0.5, %v3155_v15  ;;  %v7636_v15 = vld [vmem:[#allocation58_spill] sm:$0xff] }
 0x1b6   :  { %v935_v25 = vadd.f32 0.5, %v932_v33  ;;  %v3157_v12 = vpop.eup %3156  ;;  %v7637_v33 = vld [vmem:[#allocation59_spill] sm:$0xff] }
 0x1b7   :  { %v936_v23 = vadd.f32 0.5, %v933_v26  ;;  %v7644_v26 = vld [vmem:[#allocation66_spill] sm:$0xff] }
 0x1b8   :  { %v940_v35 = vmul.f32 %v3157_v12, %v935_v25  ;;  %v7645_v25 = vld [vmem:[#allocation67_spill] sm:$0xff]  ;;  %v7646_v12 = vld [vmem:[#allocation60_spill] sm:$0xff] }
 0x1b9   :  { %v939_v16 = vmul.f32 %v936_v23, %v4268_v31  ;;  %v3159_v29 = vpop.eup %3158  ;;  %v7589_v31 = vld [vmem:[#allocation7_spill] sm:$0xff]  ;;  %v7647_v23 = vld [vmem:[#allocation61_spill] sm:$0xff] }
 0x1ba   :  { %v934_v32 = vmul.f32 0.5, %v3159_v29  ;;  %v7640_v29 = vld [vmem:[#allocation62_spill] sm:$0xff] }
 0x1bb   :  { %v5053_v19 = vadd.f32 %v940_v35, %v939_v16  ;;  %v7639_v16 = vld [vmem:[#allocation53_spill] sm:$0xff]  ;;  %v7648_v35 = vld [vmem:[#allocation64_spill] sm:$0xff] }
 0x1bc   :  { %v937_v20 = vadd.f32 0.5, %v934_v32  ;;  %v7641_v32 = vld [vmem:[#allocation63_spill] sm:$0xff] }
 0x1bd   :  { %3160 = vtanh.f32 %v5053_v19 }
 0x1c3   :  { %v3161_v34 = vpop.eup %3160 }
 0x1c4   :  { %v943_v27 = vmul.f32 %v3161_v34, %v937_v20  ;;  %v7642_v20 = vld [vmem:[#allocation56_spill] sm:$0xff]  ;;  %v7649_v34 = vld [vmem:[#allocation65_spill] sm:$0xff] }
 0x1c6   :  { %1094 = vmatmul.f32.vlgmr.msra.gmra.mxu0 %v943_v27  ;;  %944 = vst [vmem:[#allocation4 + $0x1] sm:$0x1] %v943_v27  ;;  %1114 = vmatmul.f32.vlgmr.msra.gmra.mxu1 %v943_v27 }
 0x1c7   :  { %945 = vst [vmem:[#allocation3 + $0x5] sm:$0x2] %v943_v27  ;;  %1134 = vmatmul.f32.vlgmr.msra.gmra.mxu2 %v943_v27  ;;  %1154 = vmatmul.f32.vlgmr.msra.gmra.mxu3 %v943_v27 }
 0x1c8   :  { %1436 = vmatpush.msra.mxu0 %v4274_v36  ;;  %1456 = vmatpush.msra.mxu1 %v4279_v9  ;;  %v7590_v36 = vld [vmem:[#allocation12_spill] sm:$0xff]  ;;  %v7591_v9 = vld [vmem:[#allocation13_spill] sm:$0xff] }
 0x1c9   :  { %1476 = vmatpush.msra.mxu2 %v4284_v10  ;;  %1496 = vmatpush.msra.mxu3 %v4291_v18  ;;  %v7592_v10 = vld [vmem:[#allocation8_spill] sm:$0xff]  ;;  %v7593_v18 = vld [vmem:[#allocation9_spill] sm:$0xff] }
 0x1ca   :  { %1437 = vmatpush.msra.mxu0 %v4298_v22  ;;  %1457 = vmatpush.msra.mxu1 %v4303_v37  ;;  %v7594_v22 = vld [vmem:[#allocation16_spill] sm:$0xff]  ;;  %v7595_v37 = vld [vmem:[#allocation17_spill] sm:$0xff] }
 0x1cb   :  { %1477 = vmatpush.msra.mxu2 %v4308_v38  ;;  %1497 = vmatpush.msra.mxu3 %v4315_v39  ;;  %v7596_v38 = vld [vmem:[#allocation10_spill] sm:$0xff]  ;;  %v7597_v39 = vld [vmem:[#allocation11_spill] sm:$0xff] }
 0x1cc   :  { %1438 = vmatpush.msra.mxu0 %v4320_v40  ;;  %1458 = vmatpush.msra.mxu1 %v4325_v41  ;;  %v7598_v40 = vld [vmem:[#allocation20_spill] sm:$0xff]  ;;  %v7599_v41 = vld [vmem:[#allocation21_spill] sm:$0xff] }
 0x1cd   :  { %1478 = vmatpush.msra.mxu2 %v4332_v42  ;;  %1498 = vmatpush.msra.mxu3 %v4337_v13  ;;  %v7600_v42 = vld [vmem:[#allocation22_spill] sm:$0xff]  ;;  %v7601_v13 = vld [vmem:[#allocation23_spill] sm:$0xff] }
 0x1ce   :  { %1174 = vmatmul.f32.vlgmr.msrb.gmra.mxu0 %v943_v27  ;;  %1194 = vmatmul.f32.vlgmr.msrb.gmra.mxu1 %v943_v27 }
 0x1cf   :  { %1214 = vmatmul.f32.vlgmr.msrb.gmra.mxu2 %v943_v27  ;;  %1234 = vmatmul.f32.vlgmr.msrb.gmra.mxu3 %v943_v27  ;;  %v7650_v27 = vld [vmem:[#allocation68_spill] sm:$0xff] }
 0x1d0   :  { %1439 = vmatpush.msra.mxu0 %v4346_v43  ;;  %1459 = vmatpush.msra.mxu1 %v4351_v21  ;;  %v7602_v43 = vld [vmem:[#allocation14_spill] sm:$0xff]  ;;  %v7603_v21 = vld [vmem:[#allocation15_spill] sm:$0xff] }
 0x1d1   :  { %1479 = vmatpush.msra.mxu2 %v4356_v44  ;;  %1499 = vmatpush.msra.mxu3 %v4363_v45  ;;  %v7604_v44 = vld [vmem:[#allocation26_spill] sm:$0xff]  ;;  %v7605_v45 = vld [vmem:[#allocation27_spill] sm:$0xff] }
 0x1d2   :  { %1440 = vmatpush.msra.mxu0 %v4370_v6  ;;  %1460 = vmatpush.msra.mxu1 %v4375_v46  ;;  %v7606_v6 = vld [vmem:[#allocation18_spill] sm:$0xff]  ;;  %v7607_v46 = vld [vmem:[#allocation19_spill] sm:$0xff] }
 0x1d3   :  { %1480 = vmatpush.msra.mxu2 %v4380_v14  ;;  %1500 = vmatpush.msra.mxu3 %v4387_v47  ;;  %v7608_v14 = vld [vmem:[#allocation30_spill] sm:$0xff]  ;;  %v7609_v47 = vld [vmem:[#allocation31_spill] sm:$0xff] }
 0x1d4   :  { %1441 = vmatpush.msra.mxu0 %v4394_v48  ;;  %1461 = vmatpush.msra.mxu1 %v4399_v49  ;;  %v7610_v48 = vld [vmem:[#allocation24_spill] sm:$0xff]  ;;  %v7611_v49 = vld [vmem:[#allocation25_spill] sm:$0xff] }
 0x1d5   :  { %1481 = vmatpush.msra.mxu2 %v4404_v50  ;;  %1501 = vmatpush.msra.mxu3 %v4411_v51  ;;  %v7612_v50 = vld [vmem:[#allocation34_spill] sm:$0xff]  ;;  %v7613_v51 = vld [vmem:[#allocation35_spill] sm:$0xff] }
 0x1d6   :  { %1442 = vmatpush.msra.mxu0 %v4418_v52  ;;  %1462 = vmatpush.msra.mxu1 %v4423_v53  ;;  %v7614_v52 = vld [vmem:[#allocation28_spill] sm:$0xff]  ;;  %v7615_v53 = vld [vmem:[#allocation29_spill] sm:$0xff] }
 0x1d7   :  { %1482 = vmatpush.msra.mxu2 %v4428_v54  ;;  %1502 = vmatpush.msra.mxu3 %v4435_v55  ;;  %v7616_v54 = vld [vmem:[#allocation38_spill] sm:$0xff]  ;;  %v7617_v55 = vld [vmem:[#allocation39_spill] sm:$0xff] }
 0x1d8   :  { %1443 = vmatpush.msra.mxu0 %v4442_v56  ;;  %1463 = vmatpush.msra.mxu1 %v4447_v57  ;;  %v7618_v56 = vld [vmem:[#allocation32_spill] sm:$0xff]  ;;  %v7619_v57 = vld [vmem:[#allocation33_spill] sm:$0xff] }
 0x1d9   :  { %1483 = vmatpush.msra.mxu2 %v4452_v58  ;;  %1503 = vmatpush.msra.mxu3 %v4459_v59  ;;  %v7620_v58 = vld [vmem:[#allocation42_spill] sm:$0xff]  ;;  %v7621_v59 = vld [vmem:[#allocation43_spill] sm:$0xff] }
 0x1da   :  { %1444 = vmatpush.msra.mxu0 %v4466_v60  ;;  %1464 = vmatpush.msra.mxu1 %v4471_v61  ;;  %v7622_v60 = vld [vmem:[#allocation36_spill] sm:$0xff]  ;;  %v7623_v61 = vld [vmem:[#allocation37_spill] sm:$0xff] }
 0x1db   :  { %1484 = vmatpush.msra.mxu2 %v4476_v62  ;;  %1504 = vmatpush.msra.mxu3 %v4483_v63  ;;  %v7624_v62 = vld [vmem:[#allocation46_spill] sm:$0xff]  ;;  %v7625_v63 = vld [vmem:[#allocation47_spill] sm:$0xff] }
 0x1dc   :  { %1445 = vmatpush.msra.mxu0 %v4490_v0  ;;  %1465 = vmatpush.msra.mxu1 %v4495_v1  ;;  %v7626_v0 = vld [vmem:[#allocation40_spill] sm:$0xff]  ;;  %v7627_v1 = vld [vmem:[#allocation41_spill] sm:$0xff] }
 0x1dd   :  { %1485 = vmatpush.msra.mxu2 %v4500_v2  ;;  %1505 = vmatpush.msra.mxu3 %v4507_v3  ;;  %v7628_v2 = vld [vmem:[#allocation50_spill] sm:$0xff]  ;;  %v7629_v3 = vld [vmem:[#allocation51_spill] sm:$0xff] }
 0x1de   :  { %1446 = vmatpush.msra.mxu0 %v4514_v4  ;;  %1466 = vmatpush.msra.mxu1 %v4519_v5  ;;  %v7630_v4 = vld [vmem:[#allocation44_spill] sm:$0xff]  ;;  %v7631_v5 = vld [vmem:[#allocation45_spill] sm:$0xff] }
 0x1df   :  { %1486 = vmatpush.msra.mxu2 %v4524_v7  ;;  %1506 = vmatpush.msra.mxu3 %v4531_v8  ;;  %v7632_v7 = vld [vmem:[#allocation54_spill] sm:$0xff]  ;;  %v7633_v8 = vld [vmem:[#allocation55_spill] sm:$0xff] }
 0x1e0   :  { %1447 = vmatpush.msra.mxu0 %v4538_v17  ;;  %1467 = vmatpush.msra.mxu1 %v4543_v11  ;;  %v7634_v17 = vld [vmem:[#allocation48_spill] sm:$0xff]  ;;  %v7635_v11 = vld [vmem:[#allocation49_spill] sm:$0xff] }
 0x1e1   :  { %1487 = vmatpush.msra.mxu2 %v7589_v31  ;;  %1507 = vmatpush.msra.mxu3 %v7590_v36  ;;  %v7651_v31 = vld [vmem:[#allocation69_spill] sm:$0xff]  ;;  %v7652_v36 = vld [vmem:[#allocation70_spill] sm:$0xff] }
 0x1e2   :  { %1448 = vmatpush.msra.mxu0 %v7591_v9  ;;  %1468 = vmatpush.msra.mxu1 %v7592_v10  ;;  %v7653_v9 = vld [vmem:[#allocation71_spill] sm:$0xff]  ;;  %v7654_v10 = vld [vmem:[#allocation72_spill] sm:$0xff] }
 0x1e3   :  { %1488 = vmatpush.msra.mxu2 %v7593_v18  ;;  %1508 = vmatpush.msra.mxu3 %v7594_v22  ;;  %v7655_v18 = vld [vmem:[#allocation73_spill] sm:$0xff]  ;;  %v7656_v22 = vld [vmem:[#allocation74_spill] sm:$0xff] }
 0x1e4   :  { %1449 = vmatpush.msra.mxu0 %v7595_v37  ;;  %1469 = vmatpush.msra.mxu1 %v7596_v38  ;;  %v7657_v37 = vld [vmem:[#allocation75_spill] sm:$0xff]  ;;  %v7658_v38 = vld [vmem:[#allocation76_spill] sm:$0xff] }
 0x1e5   :  { %1489 = vmatpush.msra.mxu2 %v7597_v39  ;;  %1509 = vmatpush.msra.mxu3 %v7598_v40  ;;  %v7659_v39 = vld [vmem:[#allocation77_spill] sm:$0xff]  ;;  %v7660_v40 = vld [vmem:[#allocation78_spill] sm:$0xff] }
 0x1e6   :  { %1450 = vmatpush.msra.mxu0 %v7599_v41  ;;  %1470 = vmatpush.msra.mxu1 %v7600_v42  ;;  %v7661_v41 = vld [vmem:[#allocation79_spill] sm:$0xff]  ;;  %v7662_v42 = vld [vmem:[#allocation80_spill] sm:$0xff] }
 0x1e7   :  { %1490 = vmatpush.msra.mxu2 %v7601_v13  ;;  %1510 = vmatpush.msra.mxu3 %v7602_v43  ;;  %v7663_v13 = vld [vmem:[#allocation81_spill] sm:$0xff]  ;;  %v7664_v43 = vld [vmem:[#allocation82_spill] sm:$0xff] }
 0x1e8   :  { %1451 = vmatpush.msra.mxu0 %v7603_v21  ;;  %1471 = vmatpush.msra.mxu1 %v7604_v44  ;;  %v7665_v21 = vld [vmem:[#allocation83_spill] sm:$0xff]  ;;  %v7666_v44 = vld [vmem:[#allocation84_spill] sm:$0xff] }
 0x1e9   :  { %1491 = vmatpush.msra.mxu2 %v7605_v45  ;;  %1511 = vmatpush.msra.mxu3 %v7606_v6  ;;  %v7667_v45 = vld [vmem:[#allocation85_spill] sm:$0xff]  ;;  %v7668_v6 = vld [vmem:[#allocation86_spill] sm:$0xff] }
 0x1ea   :  { %1516 = vmatpush.msrb.mxu0 %v7607_v46  ;;  %1536 = vmatpush.msrb.mxu1 %v7608_v14  ;;  %v7669_v46 = vld [vmem:[#allocation87_spill] sm:$0xff] }
 0x1eb   :  { %1556 = vmatpush.msrb.mxu2 %v7609_v47  ;;  %1576 = vmatpush.msrb.mxu3 %v7610_v48 }
 0x1ec   :  { %1517 = vmatpush.msrb.mxu0 %v7611_v49  ;;  %1537 = vmatpush.msrb.mxu1 %v7612_v50 }
 0x1ed   :  { %1557 = vmatpush.msrb.mxu2 %v7613_v51  ;;  %1577 = vmatpush.msrb.mxu3 %v7614_v52 }
 0x1ee   :  { %1518 = vmatpush.msrb.mxu0 %v7615_v53  ;;  %1538 = vmatpush.msrb.mxu1 %v7616_v54 }
 0x1ef   :  { %1558 = vmatpush.msrb.mxu2 %v7617_v55  ;;  %1578 = vmatpush.msrb.mxu3 %v7618_v56 }
 0x1f0   :  { %1519 = vmatpush.msrb.mxu0 %v7619_v57  ;;  %1539 = vmatpush.msrb.mxu1 %v7620_v58 }
 0x1f1   :  { %1559 = vmatpush.msrb.mxu2 %v7621_v59  ;;  %1579 = vmatpush.msrb.mxu3 %v7622_v60  ;;  %v947_v59 = vld [vmem:[#allocation2 + $0x2] ss:$8 sm:$0xf] }
 0x1f2   :  { %1520 = vmatpush.msrb.mxu0 %v7623_v61  ;;  %1540 = vmatpush.msrb.mxu1 %v7624_v62  ;;  %v949_v61 = vld [vmem:[#allocation2 + $0x25] ss:$8 sm:$0xf] }
 0x1f3   :  { %1560 = vmatpush.msrb.mxu2 %v7625_v63  ;;  %1580 = vmatpush.msrb.mxu3 %v7626_v0 }
 0x1f4   :  { %1521 = vmatpush.msrb.mxu0 %v7627_v1  ;;  %1541 = vmatpush.msrb.mxu1 %v7628_v2 }
 0x1f5   :  { %1561 = vmatpush.msrb.mxu2 %v7629_v3  ;;  %1581 = vmatpush.msrb.mxu3 %v7630_v4 }
 0x1f6   :  { %1522 = vmatpush.msrb.mxu0 %v7631_v5  ;;  %1542 = vmatpush.msrb.mxu1 %v7632_v7 }
 0x1f7   :  { %1562 = vmatpush.msrb.mxu2 %v7633_v8  ;;  %1582 = vmatpush.msrb.mxu3 %v7634_v17 }
 0x1f8   :  { %1523 = vmatpush.msrb.mxu0 %v7635_v11  ;;  %1543 = vmatpush.msrb.mxu1 %v7636_v15 }
 0x1f9   :  { %1563 = vmatpush.msrb.mxu2 %v7637_v33  ;;  %1583 = vmatpush.msrb.mxu3 %v7638_v28 }
 0x1fa   :  { %1524 = vmatpush.msrb.mxu0 %v7639_v16  ;;  %1544 = vmatpush.msrb.mxu1 %v7640_v29 }
 0x1fb   :  { %1564 = vmatpush.msrb.mxu2 %v7641_v32  ;;  %1584 = vmatpush.msrb.mxu3 %v7642_v20 }
 0x1fc   :  { %1525 = vmatpush.msrb.mxu0 %v7643_v30  ;;  %1545 = vmatpush.msrb.mxu1 %v7644_v26 }
 0x1fd   :  { %1565 = vmatpush.msrb.mxu2 %v7645_v25  ;;  %1585 = vmatpush.msrb.mxu3 %v7646_v12 }
 0x1fe   :  { %1526 = vmatpush.msrb.mxu0 %v7647_v23  ;;  %1546 = vmatpush.msrb.mxu1 %v7648_v35 }
 0x1ff   :  { %1566 = vmatpush.msrb.mxu2 %v7649_v34  ;;  %1586 = vmatpush.msrb.mxu3 %v7650_v27 }
 0x200   :  { %1527 = vmatpush.msrb.mxu0 %v7651_v31  ;;  %1547 = vmatpush.msrb.mxu1 %v7652_v36 }
 0x201   :  { %1567 = vmatpush.msrb.mxu2 %v7653_v9  ;;  %1587 = vmatpush.msrb.mxu3 %v7654_v10 }
 0x202   :  { %1528 = vmatpush.msrb.mxu0 %v7655_v18  ;;  %1548 = vmatpush.msrb.mxu1 %v7656_v22  ;;  %v5203_v22 = vld [vmem:[%s7062_s2 + $0x3c8] sm:$0xff] }
 0x203   :  { %1568 = vmatpush.msrb.mxu2 %v7657_v37  ;;  %1588 = vmatpush.msrb.mxu3 %v7658_v38  ;;  %v5208_v37 = vld [vmem:[%s7062_s2 + $0x3d0] sm:$0xff]  ;;  %v5215_v38 = vld [vmem:[%s7062_s2 + $0x3d8] sm:$0xff] }
 0x204   :  { %1529 = vmatpush.msrb.mxu0 %v7659_v39  ;;  %1549 = vmatpush.msrb.mxu1 %v7660_v40  ;;  %v5222_v39 = vld [vmem:[%s7062_s2 + $0x380] sm:$0xff]  ;;  %v5227_v40 = vld [vmem:[%s7062_s2 + $0x388] sm:$0xff] }
 0x205   :  { %1569 = vmatpush.msrb.mxu2 %v7661_v41  ;;  %1589 = vmatpush.msrb.mxu3 %v7662_v42  ;;  %v5232_v41 = vld [vmem:[%s7062_s2 + $0x390] sm:$0xff]  ;;  %v5239_v42 = vld [vmem:[%s7062_s2 + $0x398] sm:$0xff] }
 0x206   :  { %1530 = vmatpush.msrb.mxu0 %v7663_v13  ;;  %1550 = vmatpush.msrb.mxu1 %v7664_v43  ;;  %v5244_v13 = vld [vmem:[%s7062_s2 + $0x340] sm:$0xff]  ;;  %v5249_v43 = vld [vmem:[%s7062_s2 + $0x348] sm:$0xff] }
 0x207   :  { %1570 = vmatpush.msrb.mxu2 %v7665_v21  ;;  %1590 = vmatpush.msrb.mxu3 %v7666_v44  ;;  %v5256_v21 = vld [vmem:[%s7062_s2 + $0x350] sm:$0xff]  ;;  %v5261_v44 = vld [vmem:[%s7062_s2 + $0x358] sm:$0xff] }
 0x208   :  { %1531 = vmatpush.msrb.mxu0 %v7667_v45  ;;  %1551 = vmatpush.msrb.mxu1 %v5031_v24  ;;  %v5270_v45 = vld [vmem:[%s7062_s2 + $0x300] sm:$0xff] }
 0x209   :  { %1571 = vmatpush.msrb.mxu2 %v7668_v6  ;;  %1591 = vmatpush.msrb.mxu3 %v7669_v46  ;;  %v5275_v6 = vld [vmem:[%s7062_s2 + $0x308] sm:$0xff]  ;;  %v5280_v46 = vld [vmem:[%s7062_s2 + $0x310] sm:$0xff] }
 0x243   :  { %v1095_v14 = vpop.f32.mrf.mxu0  ;;  %v1115_v47 = vpop.f32.mrf.mxu1 }
 0x244   :  { %v1242_v54 = vrot.slane %v1115_v47, 7  ;;  %v5294_v47 = vld [vmem:[%s7062_s2 + $0x2c0] sm:$0xff] }
 0x246   :  { %v1245_v57 = vsel %vm526_vm2, %v1095_v14, %v1242_v54  ;;  %v5287_v14 = vld [vmem:[%s7062_s2 + $0x318] sm:$0xff] }
 0x247   :  { %v5335_v54 = vld [vmem:[%s7062_s2 + $0x298] sm:$0xff] }
 0x24a   :  { %v1135_v48 = vpop.f32.mrf.mxu2  ;;  %v1155_v49 = vpop.f32.mrf.mxu3 }
 0x24b   :  { %v1175_v50 = vpop.f32.mrf.mxu0  ;;  %v1195_v51 = vpop.f32.mrf.mxu1  ;;  %v1243_v52 = vrot.slane %v1135_v48, 6  ;;  %v1244_v53 = vrot.slane %v1155_v49, 5  ;;  %v5299_v48 = vld [vmem:[%s7062_s2 + $0x2c8] sm:$0xff]  ;;  %v5304_v49 = vld [vmem:[%s7062_s2 + $0x2d0] sm:$0xff] }
 0x24c   :  { %1254 = vst [vmem:[#allocation1] sm:$0xff] %v1175_v50  ;;  %v5311_v50 = vld [vmem:[%s7062_s2 + $0x2d8] sm:$0xff] }
 0x24d   :  { %1255 = vst [vmem:[#allocation1 + $0x9] sm:$0xff] %v1195_v51  ;;  %v1246_v24 = vsel %vm528_vm1, %v1243_v52, %v1244_v53  ;;  %v5318_v51 = vld [vmem:[%s7062_s2 + $0x280] sm:$0xff]  ;;  %v5323_v52 = vld [vmem:[%s7062_s2 + $0x288] sm:$0xff]  ;;  %v5328_v53 = vld [vmem:[%s7062_s2 + $0x290] sm:$0xff] }
 0x24e   :  { %v1247_v58 = vsel %vm530_vm3, %v1245_v57, %v1246_v24  ;;  %v5352_v24 = vld [vmem:[%s7062_s2 + $0x250] sm:$0xff]  ;;  %v5359_v57 = vld [vmem:[%s7062_s2 + $0x258] sm:$0xff] }
 0x24f   :  { %v1249_v60 = vadd.f32 %v1247_v58, %v947_v59  ;;  %v5366_v58 = vld [vmem:[%s7062_s2 + $0x200] sm:$0xff]  ;;  %v5371_v59 = vld [vmem:[%s7062_s2 + $0x208] sm:$0xff] }
 0x251   :  { %v1263_v0 = vperm.slane %v1249_v60, 0  ;;  %v1264_v1 = vperm.slane %v1249_v60, 1  ;;  %v1265_v15 = vperm.slane %v1249_v60, 2  ;;  %v1266_v33 = vperm.slane %v1249_v60, 3  ;;  %v5376_v60 = vld [vmem:[%s7062_s2 + $0x210] sm:$0xff] }
 0x252   :  { %v1215_v55 = vpop.f32.mrf.mxu2  ;;  %v1235_v56 = vpop.f32.mrf.mxu3 }
 0x253   :  { %1256 = vst [vmem:[#allocation1 + $0x12] sm:$0xff] %v1215_v55  ;;  %v5342_v55 = vld [vmem:[%s7062_s2 + $0x240] sm:$0xff] }
 0x254   :  { %1257 = vst [vmem:[#allocation1 + $0x1b] sm:$0xff] %v1235_v56  ;;  %v5347_v56 = vld [vmem:[%s7062_s2 + $0x248] sm:$0xff] }
 0x25b   :  { %v1259_v62 = vld [vmem:[#allocation1 + $0x1] ss:$9 sm:$0xff] }
 0x25c   :  { %v1261_v63 = vadd.f32 %v1259_v62, %v949_v61  ;;  %v5383_v61 = vld [vmem:[%s7062_s2 + $0x218] sm:$0xff]  ;;  %v5390_v62 = vld [vmem:[%s7062_s2 + $0x1c0] sm:$0xff] }
 0x25e   :  { %v1272_v2 = vperm.slane %v1261_v63, 0  ;;  %v1273_v3 = vperm.slane %v1261_v63, 1  ;;  %v1274_v4 = vperm.slane %v1261_v63, 2  ;;  %v1275_v5 = vperm.slane %v1261_v63, 3  ;;  %v5395_v63 = vld [vmem:[%s7062_s2 + $0x1c8] sm:$0xff] }
 0x260   :  { %v1280_v7 = vsel %vm526_vm2, %v1263_v0, %v1272_v2  ;;  %v1281_v8 = vsel %vm526_vm2, %v1264_v1, %v1273_v3  ;;  %v1282_v28 = vsel %vm526_vm2, %v1265_v15, %v1274_v4  ;;  %v1283_v16 = vsel %vm526_vm2, %v1266_v33, %v1275_v5  ;;  %v5400_v0 = vld [vmem:[%s7062_s2 + $0x1d0] sm:$0xff]  ;;  %v5407_v1 = vld [vmem:[%s7062_s2 + $0x1d8] sm:$0xff]  ;;  %v5414_v2 = vld [vmem:[%s7062_s2 + $0x180] sm:$0xff] }
 0x261   :  { %v1284_v17 = vmul.f32 0.5, %v1280_v7  ;;  %v1285_v11 = vmul.f32 0.5, %v1281_v8  ;;  %v1286_v29 = vmul.f32 0.5, %v1282_v28  ;;  %v5419_v3 = vld [vmem:[%s7062_s2 + $0x188] sm:$0xff]  ;;  %v5424_v4 = vld [vmem:[%s7062_s2 + $0x190] sm:$0xff]  ;;  %v5431_v5 = vld [vmem:[%s7062_s2 + $0x198] sm:$0xff] }
 0x262   :  { %v5438_v7 = vld [vmem:[%s7062_s2 + $0x140] sm:$0xff]  ;;  %v5443_v8 = vld [vmem:[%s7062_s2 + $0x148] sm:$0xff]  ;;  %v5472_v28 = vld [vmem:[%s7062_s2 + $0x110] sm:$0xff] }
 0x263   :  { %3162 = vtanh.f32 %v1284_v17  ;;  %v5448_v17 = vld [vmem:[%s7062_s2 + $0x150] sm:$0xff]  ;;  %v5462_v15 = vld [vmem:[%s7062_s2 + $0x100] sm:$0xff]  ;;  %v5467_v33 = vld [vmem:[%s7062_s2 + $0x108] sm:$0xff]  ;;  %7670 = vst [vmem:[#allocation7_spill] sm:$0xff] %v5472_v28 }
 0x264   :  { %3164 = vtanh.f32 %v1285_v11  ;;  %v5455_v11 = vld [vmem:[%s7062_s2 + $0x158] sm:$0xff] }
 0x265   :  { %3166 = vtanh.f32 %v1283_v16  ;;  %v5479_v16 = vld [vmem:[%s7062_s2 + $0x118] sm:$0xff] }
 0x266   :  { %3168 = vtanh.f32 %v1286_v29  ;;  %7671 = vst [vmem:[#allocation12_spill] sm:$0xff] %v5479_v16  ;;  %v5484_v29 = vld [vmem:[%s7062_s2 + $0xc0] sm:$0xff] }
 0x267   :  { %7672 = vst [vmem:[#allocation13_spill] sm:$0xff] %v5484_v29 }
 0x269   :  { %v3163_v32 = vpop.eup %3162 }
 0x26a   :  { %v3165_v20 = vpop.eup %3164  ;;  %v1290_v30 = vmul.f32 0.5, %v3163_v32  ;;  %v5489_v32 = vld [vmem:[%s7062_s2 + $0xc8] sm:$0xff] }
 0x26b   :  { %v1291_v26 = vmul.f32 0.5, %v3165_v20  ;;  %v3167_v12 = vpop.eup %3166  ;;  %7673 = vst [vmem:[#allocation8_spill] sm:$0xff] %v5489_v32  ;;  %v5496_v20 = vld [vmem:[%s7062_s2 + $0xd0] sm:$0xff] }
 0x26c   :  { %v1293_v25 = vadd.f32 0.5, %v1290_v30  ;;  %v3169_v27 = vpop.eup %3168  ;;  %7674 = vst [vmem:[#allocation9_spill] sm:$0xff] %v5496_v20  ;;  %v5501_v30 = vld [vmem:[%s7062_s2 + $0xd8] sm:$0xff] }
 0x26d   :  { %v1294_v23 = vadd.f32 0.5, %v1291_v26  ;;  %v1292_v36 = vmul.f32 0.5, %v3169_v27  ;;  %7675 = vst [vmem:[#allocation16_spill] sm:$0xff] %v5501_v30  ;;  %v5506_v26 = vld [vmem:[%s7062_s2 + $0x80] sm:$0xff]  ;;  %v5542_v27 = vld [vmem:[%s7062_s2 + $0x50] sm:$0xff] }
 0x26e   :  { %v1298_v35 = vmul.f32 %v3167_v12, %v1293_v25  ;;  %7676 = vst [vmem:[#allocation17_spill] sm:$0xff] %v5506_v26  ;;  %v5513_v25 = vld [vmem:[%s7062_s2 + $0x88] sm:$0xff]  ;;  %v5518_v12 = vld [vmem:[%s7062_s2 + $0x90] sm:$0xff] }
 0x26f   :  { %v1297_v34 = vmul.f32 %v1294_v23, %v5053_v19  ;;  %v1295_v9 = vadd.f32 0.5, %v1292_v36  ;;  %v5198_v19 = vld [vmem:[%s7062_s2 + $0x3c0] sm:$0xff]  ;;  %7677 = vst [vmem:[#allocation10_spill] sm:$0xff] %v5513_v25  ;;  %v5523_v23 = vld [vmem:[%s7062_s2 + $0x98] sm:$0xff] }
 0x270   :  { %7678 = vst [vmem:[#allocation11_spill] sm:$0xff] %v5518_v12  ;;  %v5547_v36 = vld [vmem:[%s7062_s2 + $0x58] sm:$0xff] }
 0x271   :  { %v5192_v31 = vadd.f32 %v1298_v35, %v1297_v34  ;;  %7679 = vst [vmem:[#allocation20_spill] sm:$0xff] %v5523_v23  ;;  %v5530_v35 = vld [vmem:[%s7062_s2 + $0x40] sm:$0xff]  ;;  %v5535_v34 = vld [vmem:[%s7062_s2 + $0x48] sm:$0xff] }
 0x272   :  { %7680 = vst [vmem:[#allocation21_spill] sm:$0xff] %v5530_v35 }
 0x273   :  { %3170 = vtanh.f32 %v5192_v31  ;;  %7681 = vst [vmem:[#allocation22_spill] sm:$0xff] %v5535_v34 }
 0x274   :  { %7682 = vst [vmem:[#allocation23_spill] sm:$0xff] %v5542_v27 }
 0x275   :  { %7683 = vst [vmem:[#allocation14_spill] sm:$0xff] %v5547_v36 }
 0x279   :  { %v3171_v10 = vpop.eup %3170 }
 0x27a   :  { %v1301_v18 = vmul.f32 %v3171_v10, %v1295_v9  ;;  %v5554_v9 = vld [vmem:[%s7062_s2] sm:$0xff]  ;;  %v5559_v10 = vld [vmem:[%s7062_s2 + $0x8] sm:$0xff] }
 0x27b   :  { %7684 = vst [vmem:[#allocation15_spill] sm:$0xff] %v5554_v9 }
 0x27c   :  { %1452 = vmatmul.f32.vlgmr.msra.gmra.mxu0 %v1301_v18  ;;  %1302 = vst [vmem:[#allocation4 + $0x2] sm:$0x1] %v1301_v18  ;;  %1472 = vmatmul.f32.vlgmr.msra.gmra.mxu1 %v1301_v18 }
 0x27d   :  { %1303 = vst [vmem:[#allocation3 + $0x4] sm:$0x2] %v1301_v18  ;;  %1492 = vmatmul.f32.vlgmr.msra.gmra.mxu2 %v1301_v18  ;;  %1512 = vmatmul.f32.vlgmr.msra.gmra.mxu3 %v1301_v18 }
 0x27e   :  { %1794 = vmatpush.msra.mxu0 %v5198_v19  ;;  %1814 = vmatpush.msra.mxu1 %v5203_v22  ;;  %7685 = vst [vmem:[#allocation26_spill] sm:$0xff] %v5559_v10 }
 0x27f   :  { %1834 = vmatpush.msra.mxu2 %v5208_v37  ;;  %1854 = vmatpush.msra.mxu3 %v5215_v38 }
 0x280   :  { %1795 = vmatpush.msra.mxu0 %v5222_v39  ;;  %1815 = vmatpush.msra.mxu1 %v5227_v40 }
 0x281   :  { %1835 = vmatpush.msra.mxu2 %v5232_v41  ;;  %1855 = vmatpush.msra.mxu3 %v5239_v42 }
 0x282   :  { %1796 = vmatpush.msra.mxu0 %v5244_v13  ;;  %1816 = vmatpush.msra.mxu1 %v5249_v43 }
 0x283   :  { %1836 = vmatpush.msra.mxu2 %v5256_v21  ;;  %1856 = vmatpush.msra.mxu3 %v5261_v44 }
 0x284   :  { %1532 = vmatmul.f32.vlgmr.msrb.gmra.mxu0 %v1301_v18  ;;  %1552 = vmatmul.f32.vlgmr.msrb.gmra.mxu1 %v1301_v18 }
 0x285   :  { %1572 = vmatmul.f32.vlgmr.msrb.gmra.mxu2 %v1301_v18  ;;  %1592 = vmatmul.f32.vlgmr.msrb.gmra.mxu3 %v1301_v18  ;;  %v5566_v18 = vld [vmem:[%s7062_s2 + $0x10] sm:$0xff] }
 0x286   :  { %1797 = vmatpush.msra.mxu0 %v5270_v45  ;;  %1817 = vmatpush.msra.mxu1 %v5275_v6  ;;  %7686 = vst [vmem:[#allocation27_spill] sm:$0xff] %v5566_v18 }
 0x287   :  { %1837 = vmatpush.msra.mxu2 %v5280_v46  ;;  %1857 = vmatpush.msra.mxu3 %v5287_v14 }
 0x288   :  { %1798 = vmatpush.msra.mxu0 %v5294_v47  ;;  %1818 = vmatpush.msra.mxu1 %v5299_v48 }
 0x289   :  { %1838 = vmatpush.msra.mxu2 %v5304_v49  ;;  %1858 = vmatpush.msra.mxu3 %v5311_v50 }
 0x28a   :  { %1799 = vmatpush.msra.mxu0 %v5318_v51  ;;  %1819 = vmatpush.msra.mxu1 %v5323_v52 }
 0x28b   :  { %1839 = vmatpush.msra.mxu2 %v5328_v53  ;;  %1859 = vmatpush.msra.mxu3 %v5335_v54 }
 0x28c   :  { %1800 = vmatpush.msra.mxu0 %v5342_v55  ;;  %1820 = vmatpush.msra.mxu1 %v5347_v56 }
 0x28d   :  { %1840 = vmatpush.msra.mxu2 %v5352_v24  ;;  %1860 = vmatpush.msra.mxu3 %v5359_v57 }
 0x28e   :  { %1801 = vmatpush.msra.mxu0 %v5366_v58  ;;  %1821 = vmatpush.msra.mxu1 %v5371_v59 }
 0x28f   :  { %1841 = vmatpush.msra.mxu2 %v5376_v60  ;;  %1861 = vmatpush.msra.mxu3 %v5383_v61 }
 0x290   :  { %1802 = vmatpush.msra.mxu0 %v5390_v62  ;;  %1822 = vmatpush.msra.mxu1 %v5395_v63 }
 0x291   :  { %1842 = vmatpush.msra.mxu2 %v5400_v0  ;;  %1862 = vmatpush.msra.mxu3 %v5407_v1 }
 0x292   :  { %1803 = vmatpush.msra.mxu0 %v5414_v2  ;;  %1823 = vmatpush.msra.mxu1 %v5419_v3 }
 0x293   :  { %1843 = vmatpush.msra.mxu2 %v5424_v4  ;;  %1863 = vmatpush.msra.mxu3 %v5431_v5 }
 0x294   :  { %1804 = vmatpush.msra.mxu0 %v5438_v7  ;;  %1824 = vmatpush.msra.mxu1 %v5443_v8 }
 0x295   :  { %1844 = vmatpush.msra.mxu2 %v5448_v17  ;;  %1864 = vmatpush.msra.mxu3 %v5455_v11 }
 0x296   :  { %1805 = vmatpush.msra.mxu0 %v5462_v15  ;;  %1825 = vmatpush.msra.mxu1 %v5467_v33 }
 0x297   :  { %1845 = vmatpush.msra.mxu2 %v5472_v28  ;;  %1865 = vmatpush.msra.mxu3 %v5479_v16  ;;  %v5931_v16 = vld [vmem:[%s7062_s2 + $0x68] sm:$0xff] }
 0x298   :  { %1806 = vmatpush.msra.mxu0 %v5484_v29  ;;  %1826 = vmatpush.msra.mxu1 %v5489_v32  ;;  %7745 = vst [vmem:[#allocation82_spill] sm:$0xff] %v5931_v16 }
 0x299   :  { %1846 = vmatpush.msra.mxu2 %v5496_v20  ;;  %1866 = vmatpush.msra.mxu3 %v5501_v30 }
 0x29a   :  { %1807 = vmatpush.msra.mxu0 %v5506_v26  ;;  %1827 = vmatpush.msra.mxu1 %v5513_v25 }
 0x29b   :  { %1847 = vmatpush.msra.mxu2 %v5518_v12  ;;  %1867 = vmatpush.msra.mxu3 %v5523_v23  ;;  %v5571_v23 = vld [vmem:[%s7062_s2 + $0x18] sm:$0xff] }
 0x29c   :  { %1808 = vmatpush.msra.mxu0 %v5530_v35  ;;  %1828 = vmatpush.msra.mxu1 %v5535_v34  ;;  %7687 = vst [vmem:[#allocation18_spill] sm:$0xff] %v5571_v23  ;;  %v5578_v35 = vld [vmem:[%s7062_s2 + $0x3e0] sm:$0xff]  ;;  %v5583_v34 = vld [vmem:[%s7062_s2 + $0x3e8] sm:$0xff] }
 0x29d   :  { %1848 = vmatpush.msra.mxu2 %v5542_v27  ;;  %1868 = vmatpush.msra.mxu3 %v5547_v36  ;;  %7688 = vst [vmem:[#allocation19_spill] sm:$0xff] %v5578_v35  ;;  %v5594_v36 = vld [vmem:[%s7062_s2 + $0x3f0] sm:$0xff]  ;;  %v5599_v27 = vld [vmem:[%s7062_s2 + $0x3f8] sm:$0xff] }
 0x29e   :  { %7689 = vst [vmem:[#allocation30_spill] sm:$0xff] %v5583_v34  ;;  %1809 = vmatpush.msra.mxu0 %v5554_v9  ;;  %1829 = vmatpush.msra.mxu1 %v5559_v10  ;;  %v5606_v9 = vld [vmem:[%s7062_s2 + $0x3a0] sm:$0xff]  ;;  %v5611_v10 = vld [vmem:[%s7062_s2 + $0x3a8] sm:$0xff] }
 0x29f   :  { %7690 = vst [vmem:[#allocation31_spill] sm:$0xff] %v5594_v36  ;;  %1849 = vmatpush.msra.mxu2 %v5566_v18  ;;  %1869 = vmatpush.msra.mxu3 %v5571_v23  ;;  %v5618_v18 = vld [vmem:[%s7062_s2 + $0x3b0] sm:$0xff]  ;;  %v5623_v23 = vld [vmem:[%s7062_s2 + $0x3b8] sm:$0xff] }
 0x2a0   :  { %7691 = vst [vmem:[#allocation24_spill] sm:$0xff] %v5599_v27  ;;  %1874 = vmatpush.msrb.mxu0 %v5578_v35  ;;  %1894 = vmatpush.msrb.mxu1 %v5583_v34  ;;  %v5630_v35 = vld [vmem:[%s7062_s2 + $0x360] sm:$0xff]  ;;  %v5635_v34 = vld [vmem:[%s7062_s2 + $0x368] sm:$0xff] }
 0x2a1   :  { %7692 = vst [vmem:[#allocation25_spill] sm:$0xff] %v5606_v9  ;;  %1914 = vmatpush.msrb.mxu2 %v5594_v36  ;;  %1934 = vmatpush.msrb.mxu3 %v5599_v27  ;;  %v5642_v36 = vld [vmem:[%s7062_s2 + $0x370] sm:$0xff]  ;;  %v5647_v27 = vld [vmem:[%s7062_s2 + $0x378] sm:$0xff] }
 0x2a2   :  { %7693 = vst [vmem:[#allocation34_spill] sm:$0xff] %v5611_v10  ;;  %1875 = vmatpush.msrb.mxu0 %v5606_v9  ;;  %1895 = vmatpush.msrb.mxu1 %v5611_v10  ;;  %v5654_v9 = vld [vmem:[%s7062_s2 + $0x320] sm:$0xff]  ;;  %v5659_v10 = vld [vmem:[%s7062_s2 + $0x328] sm:$0xff] }
 0x2a3   :  { %7694 = vst [vmem:[#allocation35_spill] sm:$0xff] %v5618_v18  ;;  %1915 = vmatpush.msrb.mxu2 %v5618_v18  ;;  %1935 = vmatpush.msrb.mxu3 %v5623_v23  ;;  %v5666_v18 = vld [vmem:[%s7062_s2 + $0x330] sm:$0xff] }
 0x2a4   :  { %7695 = vst [vmem:[#allocation28_spill] sm:$0xff] %v5623_v23  ;;  %1876 = vmatpush.msrb.mxu0 %v5630_v35  ;;  %1896 = vmatpush.msrb.mxu1 %v5635_v34  ;;  %v5671_v23 = vld [vmem:[%s7062_s2 + $0x338] sm:$0xff] }
 0x2a5   :  { %7696 = vst [vmem:[#allocation29_spill] sm:$0xff] %v5630_v35  ;;  %1916 = vmatpush.msrb.mxu2 %v5642_v36  ;;  %1936 = vmatpush.msrb.mxu3 %v5647_v27  ;;  %v5683_v35 = vld [vmem:[%s7062_s2 + $0x2e8] sm:$0xff] }
 0x2a6   :  { %7697 = vst [vmem:[#allocation38_spill] sm:$0xff] %v5635_v34  ;;  %v5678_v34 = vld [vmem:[%s7062_s2 + $0x2e0] sm:$0xff]  ;;  %1877 = vmatpush.msrb.mxu0 %v5654_v9  ;;  %1897 = vmatpush.msrb.mxu1 %v5659_v10 }
 0x2a7   :  { %7698 = vst [vmem:[#allocation39_spill] sm:$0xff] %v5642_v36  ;;  %v5695_v36 = vld [vmem:[%s7062_s2 + $0x2f8] sm:$0xff]  ;;  %1917 = vmatpush.msrb.mxu2 %v5666_v18  ;;  %1937 = vmatpush.msrb.mxu3 %v5671_v23 }
 0x2a8   :  { %7699 = vst [vmem:[#allocation32_spill] sm:$0xff] %v5647_v27  ;;  %v5690_v27 = vld [vmem:[%s7062_s2 + $0x2f0] sm:$0xff]  ;;  %1878 = vmatpush.msrb.mxu0 %v5678_v34  ;;  %1898 = vmatpush.msrb.mxu1 %v5683_v35 }
 0x2a9   :  { %7700 = vst [vmem:[#allocation33_spill] sm:$0xff] %v5654_v9  ;;  %v5702_v9 = vld [vmem:[%s7062_s2 + $0x2a0] sm:$0xff]  ;;  %1918 = vmatpush.msrb.mxu2 %v5690_v27  ;;  %1938 = vmatpush.msrb.mxu3 %v5695_v36 }
 0x2aa   :  { %7701 = vst [vmem:[#allocation42_spill] sm:$0xff] %v5659_v10  ;;  %v5707_v10 = vld [vmem:[%s7062_s2 + $0x2a8] sm:$0xff]  ;;  %1879 = vmatpush.msrb.mxu0 %v5702_v9 }
 0x2ab   :  { %7702 = vst [vmem:[#allocation43_spill] sm:$0xff] %v5666_v18  ;;  %1899 = vmatpush.msrb.mxu1 %v5707_v10 }
 0x2ac   :  { %7703 = vst [vmem:[#allocation36_spill] sm:$0xff] %v5671_v23  ;;  %v5719_v23 = vld [vmem:[%s7062_s2 + $0x2b8] sm:$0xff] }
 0x2ad   :  { %7704 = vst [vmem:[#allocation37_spill] sm:$0xff] %v5678_v34  ;;  %1939 = vmatpush.msrb.mxu3 %v5719_v23 }
 0x2ae   :  { %7705 = vst [vmem:[#allocation46_spill] sm:$0xff] %v5683_v35  ;;  %v5731_v35 = vld [vmem:[%s7062_s2 + $0x268] sm:$0xff] }
 0x2af   :  { %7706 = vst [vmem:[#allocation47_spill] sm:$0xff] %v5690_v27  ;;  %v5738_v27 = vld [vmem:[%s7062_s2 + $0x270] sm:$0xff]  ;;  %1900 = vmatpush.msrb.mxu1 %v5731_v35 }
 0x2b0   :  { %7707 = vst [vmem:[#allocation40_spill] sm:$0xff] %v5695_v36  ;;  %v5743_v36 = vld [vmem:[%s7062_s2 + $0x278] sm:$0xff] }
 0x2b1   :  { %7708 = vst [vmem:[#allocation41_spill] sm:$0xff] %v5702_v9  ;;  %v5755_v9 = vld [vmem:[%s7062_s2 + $0x228] sm:$0xff]  ;;  %1940 = vmatpush.msrb.mxu3 %v5743_v36 }
 0x2b2   :  { %7709 = vst [vmem:[#allocation50_spill] sm:$0xff] %v5707_v10  ;;  %v5750_v10 = vld [vmem:[%s7062_s2 + $0x220] sm:$0xff]  ;;  %1901 = vmatpush.msrb.mxu1 %v5755_v9 }
 0x2b3   :  { %7711 = vst [vmem:[#allocation44_spill] sm:$0xff] %v5719_v23 }
 0x2b4   :  { %7713 = vst [vmem:[#allocation54_spill] sm:$0xff] %v5731_v35  ;;  %v5775_v35 = vld [vmem:[%s7062_s2 + $0x1e0] sm:$0xff] }
 0x2b5   :  { %7714 = vst [vmem:[#allocation55_spill] sm:$0xff] %v5738_v27 }
 0x2b6   :  { %7715 = vst [vmem:[#allocation48_spill] sm:$0xff] %v5743_v36  ;;  %v5792_v36 = vld [vmem:[%s7062_s2 + $0x1f8] sm:$0xff] }
 0x2b7   :  { %7716 = vst [vmem:[#allocation49_spill] sm:$0xff] %v5750_v10 }
 0x2b8   :  { %7717 = vst [vmem:[#allocation58_spill] sm:$0xff] %v5755_v9  ;;  %v5805_v9 = vld [vmem:[%s7062_s2 + $0x1a8] sm:$0xff] }
 0x2b9   :  { %7720 = vst [vmem:[#allocation53_spill] sm:$0xff] %v5775_v35 }
 0x2ba   :  { %7723 = vst [vmem:[#allocation56_spill] sm:$0xff] %v5792_v36 }
 0x2bb   :  { %7725 = vst [vmem:[#allocation66_spill] sm:$0xff] %v5805_v9 }
 0x2f9   :  { %v5585_v12 = vpop.f32.mrf.mxu0  ;;  %v5587_v25 = vpop.f32.mrf.mxu1 }
 0x2fa   :  { %v1600_v23 = vrot.slane %v5587_v25, 7  ;;  %v5787_v25 = vld [vmem:[%s7062_s2 + $0x1f0] sm:$0xff] }
 0x2fb   :  { %7722 = vst [vmem:[#allocation63_spill] sm:$0xff] %v5787_v25 }
 0x300   :  { %v1493_v26 = vpop.f32.mrf.mxu2  ;;  %v1513_v30 = vpop.f32.mrf.mxu3 }
 0x301   :  { %v1533_v20 = vpop.f32.mrf.mxu0  ;;  %v1553_v32 = vpop.f32.mrf.mxu1  ;;  %v1601_v34 = vrot.slane %v1493_v26, 6  ;;  %v1602_v18 = vrot.slane %v1513_v30, 5  ;;  %v5762_v30 = vld [vmem:[%s7062_s2 + $0x230] sm:$0xff]  ;;  %v5767_v26 = vld [vmem:[%s7062_s2 + $0x238] sm:$0xff] }
 0x302   :  { %1612 = vst [vmem:[#allocation1] sm:$0xff] %v1533_v20  ;;  %v5714_v20 = vld [vmem:[%s7062_s2 + $0x2b0] sm:$0xff]  ;;  %1941 = vmatpush.msrb.mxu3 %v5767_v26 }
 0x303   :  { %1613 = vst [vmem:[#allocation1 + $0x9] sm:$0xff] %v1553_v32  ;;  %v5726_v32 = vld [vmem:[%s7062_s2 + $0x260] sm:$0xff]  ;;  %1919 = vmatpush.msrb.mxu2 %v5714_v20 }
 0x304   :  { %7710 = vst [vmem:[#allocation51_spill] sm:$0xff] %v5714_v20  ;;  %1880 = vmatpush.msrb.mxu0 %v5726_v32  ;;  %1942 = vmatpush.msrb.mxu3 %v5792_v36  ;;  %v1307_v36 = vld [vmem:[#allocation2 + $0x24] ss:$8 sm:$0xf] }
 0x305   :  { %7712 = vst [vmem:[#allocation45_spill] sm:$0xff] %v5726_v32  ;;  %1920 = vmatpush.msrb.mxu2 %v5738_v27  ;;  %v5780_v32 = vld [vmem:[%s7062_s2 + $0x1e8] sm:$0xff]  ;;  %v1604_v27 = vsel %vm528_vm1, %v1601_v34, %v1602_v18  ;;  %v5817_v34 = vld [vmem:[%s7062_s2 + $0x1b8] sm:$0xff]  ;;  %v1603_v18 = vsel %vm526_vm2, %v5585_v12, %v1600_v23  ;;  %v5839_v12 = vld [vmem:[%s7062_s2 + $0x170] sm:$0xff] }
 0x306   :  { %7718 = vst [vmem:[#allocation59_spill] sm:$0xff] %v5762_v30  ;;  %1881 = vmatpush.msrb.mxu0 %v5750_v10  ;;  %1902 = vmatpush.msrb.mxu1 %v5780_v32  ;;  %v5844_v23 = vld [vmem:[%s7062_s2 + $0x178] sm:$0xff]  ;;  %v5926_v10 = vld [vmem:[%s7062_s2 + $0x60] sm:$0xff] }
 0x307   :  { %7719 = vst [vmem:[#allocation52_spill] sm:$0xff] %v5767_v26  ;;  %1921 = vmatpush.msrb.mxu2 %v5762_v30  ;;  %v1605_v26 = vsel %vm530_vm3, %v1603_v18, %v1604_v27  ;;  %1943 = vmatpush.msrb.mxu3 %v5817_v34  ;;  %v5851_v27 = vld [vmem:[%s7062_s2 + $0x120] sm:$0xff]  ;;  %v5856_v18 = vld [vmem:[%s7062_s2 + $0x128] sm:$0xff] }
 0x308   :  { %v1573_v20 = vpop.f32.mrf.mxu2  ;;  %v1593_v29 = vpop.f32.mrf.mxu3  ;;  %7721 = vst [vmem:[#allocation62_spill] sm:$0xff] %v5780_v32  ;;  %1882 = vmatpush.msrb.mxu0 %v5775_v35  ;;  %v5826_v32 = vld [vmem:[%s7062_s2 + $0x160] sm:$0xff]  ;;  %v5831_v35 = vld [vmem:[%s7062_s2 + $0x168] sm:$0xff]  ;;  %1903 = vmatpush.msrb.mxu1 %v5805_v9 }
 0x309   :  { %1614 = vst [vmem:[#allocation1 + $0x12] sm:$0xff] %v1573_v20  ;;  %v5800_v20 = vld [vmem:[%s7062_s2 + $0x1a0] sm:$0xff]  ;;  %1922 = vmatpush.msrb.mxu2 %v5787_v25  ;;  %1944 = vmatpush.msrb.mxu3 %v5844_v23 }
 0x30a   :  { %1615 = vst [vmem:[#allocation1 + $0x1b] sm:$0xff] %v1593_v29  ;;  %v5812_v29 = vld [vmem:[%s7062_s2 + $0x1b0] sm:$0xff]  ;;  %1883 = vmatpush.msrb.mxu0 %v5800_v20  ;;  %1904 = vmatpush.msrb.mxu1 %v5831_v35 }
 0x30b   :  { %7724 = vst [vmem:[#allocation57_spill] sm:$0xff] %v5800_v20  ;;  %1923 = vmatpush.msrb.mxu2 %v5812_v29  ;;  %v1305_v9 = vld [vmem:[#allocation2 + $0x3] ss:$8 sm:$0xf] }
 0x30c   :  { %7726 = vst [vmem:[#allocation67_spill] sm:$0xff] %v5812_v29  ;;  %1884 = vmatpush.msrb.mxu0 %v5826_v32  ;;  %v5863_v29 = vld [vmem:[%s7062_s2 + $0x130] sm:$0xff]  ;;  %v1607_v20 = vadd.f32 %v1605_v26, %v1305_v9  ;;  %1905 = vmatpush.msrb.mxu1 %v5856_v18  ;;  %v5884_v9 = vld [vmem:[%s7062_s2 + $0xe8] sm:$0xff] }
 0x30d   :  { %7727 = vst [vmem:[#allocation60_spill] sm:$0xff] %v5817_v34  ;;  %v5868_v34 = vld [vmem:[%s7062_s2 + $0x138] sm:$0xff]  ;;  %1924 = vmatpush.msrb.mxu2 %v5839_v12  ;;  %v5889_v26 = vld [vmem:[%s7062_s2 + $0xf0] sm:$0xff] }
 0x30e   :  { %7728 = vst [vmem:[#allocation61_spill] sm:$0xff] %v5826_v32  ;;  %1885 = vmatpush.msrb.mxu0 %v5851_v27  ;;  %1945 = vmatpush.msrb.mxu3 %v5868_v34  ;;  %v5879_v32 = vld [vmem:[%s7062_s2 + $0xe0] sm:$0xff]  ;;  %v1624_v28 = vperm.slane %v1607_v20, 3 }
 0x30f   :  { %7729 = vst [vmem:[#allocation64_spill] sm:$0xff] %v5831_v35  ;;  %1925 = vmatpush.msrb.mxu2 %v5863_v29  ;;  %1906 = vmatpush.msrb.mxu1 %v5884_v9 }
 0x310   :  { %7730 = vst [vmem:[#allocation65_spill] sm:$0xff] %v5839_v12  ;;  %1886 = vmatpush.msrb.mxu0 %v5879_v32 }
 0x311   :  { %7731 = vst [vmem:[#allocation68_spill] sm:$0xff] %v5844_v23  ;;  %v1617_v25 = vld [vmem:[#allocation1 + $0x1] ss:$9 sm:$0xff]  ;;  %1926 = vmatpush.msrb.mxu2 %v5889_v26 }
 0x312   :  { %7732 = vst [vmem:[#allocation69_spill] sm:$0xff] %v5851_v27  ;;  %v1619_v35 = vadd.f32 %v1617_v25, %v1307_v36  ;;  %v5896_v36 = vld [vmem:[%s7062_s2 + $0xf8] sm:$0xff]  ;;  %v5901_v25 = vld [vmem:[%s7062_s2 + $0xa0] sm:$0xff] }
 0x313   :  { %7733 = vst [vmem:[#allocation70_spill] sm:$0xff] %v5856_v18  ;;  %v1621_v18 = vperm.slane %v1607_v20, 0  ;;  %1946 = vmatpush.msrb.mxu3 %v5896_v36  ;;  %v5918_v23 = vld [vmem:[%s7062_s2 + $0xb8] sm:$0xff]  ;;  %1887 = vmatpush.msrb.mxu0 %v5901_v25 }
 0x314   :  { %7734 = vst [vmem:[#allocation71_spill] sm:$0xff] %v5863_v29  ;;  %v1622_v29 = vperm.slane %v1607_v20, 1  ;;  %v1630_v27 = vperm.slane %v1619_v35, 0  ;;  %v1632_v12 = vperm.slane %v1619_v35, 2  ;;  %v1633_v30 = vperm.slane %v1619_v35, 3 }
 0x315   :  { %7735 = vst [vmem:[#allocation72_spill] sm:$0xff] %v5868_v34  ;;  %v1631_v34 = vperm.slane %v1619_v35, 1  ;;  %v5936_v35 = vld [vmem:[%s7062_s2 + $0x70] sm:$0xff]  ;;  %1947 = vmatpush.msrb.mxu3 %v5918_v23  ;;  %1888 = vmatpush.msrb.mxu0 %v5926_v10 }
 0x316   :  { %7736 = vst [vmem:[#allocation73_spill] sm:$0xff] %v5879_v32  ;;  %v5908_v32 = vld [vmem:[%s7062_s2 + $0xa8] sm:$0xff] }
 0x317   :  { %7737 = vst [vmem:[#allocation74_spill] sm:$0xff] %v5884_v9  ;;  %v5913_v9 = vld [vmem:[%s7062_s2 + $0xb0] sm:$0xff]  ;;  %1907 = vmatpush.msrb.mxu1 %v5908_v32 }
 0x318   :  { %7738 = vst [vmem:[#allocation75_spill] sm:$0xff] %v5889_v26  ;;  %v1638_v26 = vsel %vm526_vm2, %v1621_v18, %v1630_v27  ;;  %1927 = vmatpush.msrb.mxu2 %v5913_v9 }
 0x319   :  { %7739 = vst [vmem:[#allocation76_spill] sm:$0xff] %v5896_v36  ;;  %v1639_v36 = vsel %vm526_vm2, %v1622_v29, %v1631_v34  ;;  %v1642_v27 = vmul.f32 0.5, %v1638_v26  ;;  %v5943_v29 = vld [vmem:[%s7062_s2 + $0x78] sm:$0xff]  ;;  %v5948_v34 = vld [vmem:[%s7062_s2 + $0x20] sm:$0xff]  ;;  %v5955_v26 = vld [vmem:[%s7062_s2 + $0x28] sm:$0xff]  ;;  %1908 = vmatpush.msrb.mxu1 %v5931_v16 }
 0x31a   :  { %7740 = vst [vmem:[#allocation77_spill] sm:$0xff] %v5901_v25  ;;  %v1643_v18 = vmul.f32 0.5, %v1639_v36  ;;  %v1623_v25 = vperm.slane %v1607_v20, 2  ;;  %v5960_v36 = vld [vmem:[%s7062_s2 + $0x30] sm:$0xff]  ;;  %1928 = vmatpush.msrb.mxu2 %v5936_v35  ;;  %v5967_v20 = vld [vmem:[%s7062_s2 + $0x38] sm:$0xff]  ;;  %1948 = vmatpush.msrb.mxu3 %v5943_v29 }
 0x31b   :  { %7741 = vst [vmem:[#allocation78_spill] sm:$0xff] %v5908_v32  ;;  %3172 = vtanh.f32 %v1642_v27  ;;  %1889 = vmatpush.msrb.mxu0 %v5948_v34  ;;  %1909 = vmatpush.msrb.mxu1 %v5955_v26 }
 0x31c   :  { %7742 = vst [vmem:[#allocation79_spill] sm:$0xff] %v5913_v9  ;;  %3174 = vtanh.f32 %v1643_v18  ;;  %1929 = vmatpush.msrb.mxu2 %v5960_v36  ;;  %1949 = vmatpush.msrb.mxu3 %v5967_v20 }
 0x31d   :  { %7743 = vst [vmem:[#allocation80_spill] sm:$0xff] %v5918_v23  ;;  %v1641_v23 = vsel %vm526_vm2, %v1624_v28, %v1633_v30 }
 0x31e   :  { %7744 = vst [vmem:[#allocation81_spill] sm:$0xff] %v5926_v10  ;;  %v1640_v10 = vsel %vm526_vm2, %v1623_v25, %v1632_v12  ;;  %3176 = vtanh.f32 %v1641_v23 }
 0x31f   :  { %7746 = vst [vmem:[#allocation83_spill] sm:$0xff] %v5936_v35  ;;  %v1644_v27 = vmul.f32 0.5, %v1640_v10 }
 0x320   :  { %7747 = vst [vmem:[#allocation84_spill] sm:$0xff] %v5943_v29 }
 0x321   :  { %7748 = vst [vmem:[#allocation85_spill] sm:$0xff] %v5948_v34  ;;  %v3173_v35 = vpop.eup %3172  ;;  %3178 = vtanh.f32 %v1644_v27  ;;  %v7805_v27 = vld [vmem:[#allocation57_spill] sm:$0xff] }
 0x322   :  { %7749 = vst [vmem:[#allocation86_spill] sm:$0xff] %v5960_v36  ;;  %v3175_v16 = vpop.eup %3174  ;;  %v1648_v9 = vmul.f32 0.5, %v3173_v35  ;;  %v7800_v35 = vld [vmem:[#allocation52_spill] sm:$0xff] }
 0x323   :  { %7750 = vst [vmem:[#allocation87_spill] sm:$0xff] %v5967_v20  ;;  %v1649_v12 = vmul.f32 0.5, %v3175_v16  ;;  %v7798_v16 = vld [vmem:[#allocation58_spill] sm:$0xff] }
 0x324   :  { %v1651_v25 = vadd.f32 0.5, %v1648_v9  ;;  %v3177_v28 = vpop.eup %3176  ;;  %v7799_v9 = vld [vmem:[#allocation59_spill] sm:$0xff] }
 0x325   :  { %v1652_v30 = vadd.f32 0.5, %v1649_v12  ;;  %v7806_v12 = vld [vmem:[#allocation66_spill] sm:$0xff] }
 0x326   :  { %v1656_v18 = vmul.f32 %v3177_v28, %v1651_v25  ;;  %v7807_v25 = vld [vmem:[#allocation67_spill] sm:$0xff]  ;;  %v7808_v28 = vld [vmem:[#allocation60_spill] sm:$0xff] }
 0x327   :  { %v1655_v29 = vmul.f32 %v1652_v30, %v5192_v31  ;;  %v3179_v34 = vpop.eup %3178  ;;  %v7751_v31 = vld [vmem:[#allocation7_spill] sm:$0xff]  ;;  %v7809_v30 = vld [vmem:[#allocation61_spill] sm:$0xff] }
 0x328   :  { %v1650_v36 = vmul.f32 0.5, %v3179_v34  ;;  %v7802_v34 = vld [vmem:[#allocation62_spill] sm:$0xff] }
 0x329   :  { %v5977_v32 = vadd.f32 %v1656_v18, %v1655_v29  ;;  %v7801_v29 = vld [vmem:[#allocation53_spill] sm:$0xff]  ;;  %v7810_v18 = vld [vmem:[#allocation64_spill] sm:$0xff] }
 0x32a   :  { %v1653_v20 = vadd.f32 0.5, %v1650_v36  ;;  %v7803_v36 = vld [vmem:[#allocation63_spill] sm:$0xff] }
 0x32b   :  { %3180 = vtanh.f32 %v5977_v32 }
 0x331   :  { %v3181_v10 = vpop.eup %3180 }
 0x332   :  { %v1659_v23 = vmul.f32 %v3181_v10, %v1653_v20  ;;  %v7804_v20 = vld [vmem:[#allocation56_spill] sm:$0xff]  ;;  %v7811_v10 = vld [vmem:[#allocation65_spill] sm:$0xff] }
 0x334   :  { %1810 = vmatmul.f32.vlgmr.msra.gmra.mxu0 %v1659_v23  ;;  %1660 = vst [vmem:[#allocation4 + $0x3] sm:$0x1] %v1659_v23  ;;  %1830 = vmatmul.f32.vlgmr.msra.gmra.mxu1 %v1659_v23 }
 0x335   :  { %1661 = vst [vmem:[#allocation3 + $0x3] sm:$0x2] %v1659_v23  ;;  %1850 = vmatmul.f32.vlgmr.msra.gmra.mxu2 %v1659_v23  ;;  %1870 = vmatmul.f32.vlgmr.msra.gmra.mxu3 %v1659_v23 }
 0x336   :  { %2152 = vmatpush.msra.mxu0 %v5198_v19  ;;  %2172 = vmatpush.msra.mxu1 %v5203_v22  ;;  %v7752_v19 = vld [vmem:[#allocation12_spill] sm:$0xff]  ;;  %v7753_v22 = vld [vmem:[#allocation13_spill] sm:$0xff] }
 0x337   :  { %2192 = vmatpush.msra.mxu2 %v5208_v37  ;;  %2212 = vmatpush.msra.mxu3 %v5215_v38  ;;  %v7754_v37 = vld [vmem:[#allocation8_spill] sm:$0xff]  ;;  %v7755_v38 = vld [vmem:[#allocation9_spill] sm:$0xff] }
 0x338   :  { %2153 = vmatpush.msra.mxu0 %v5222_v39  ;;  %2173 = vmatpush.msra.mxu1 %v5227_v40  ;;  %v7756_v39 = vld [vmem:[#allocation16_spill] sm:$0xff]  ;;  %v7757_v40 = vld [vmem:[#allocation17_spill] sm:$0xff] }
 0x339   :  { %2193 = vmatpush.msra.mxu2 %v5232_v41  ;;  %2213 = vmatpush.msra.mxu3 %v5239_v42  ;;  %v7758_v41 = vld [vmem:[#allocation10_spill] sm:$0xff]  ;;  %v7759_v42 = vld [vmem:[#allocation11_spill] sm:$0xff] }
 0x33a   :  { %2154 = vmatpush.msra.mxu0 %v5244_v13  ;;  %2174 = vmatpush.msra.mxu1 %v5249_v43  ;;  %v7760_v13 = vld [vmem:[#allocation20_spill] sm:$0xff]  ;;  %v7761_v43 = vld [vmem:[#allocation21_spill] sm:$0xff] }
 0x33b   :  { %2194 = vmatpush.msra.mxu2 %v5256_v21  ;;  %2214 = vmatpush.msra.mxu3 %v5261_v44  ;;  %v7762_v21 = vld [vmem:[#allocation22_spill] sm:$0xff]  ;;  %v7763_v44 = vld [vmem:[#allocation23_spill] sm:$0xff] }
 0x33c   :  { %1890 = vmatmul.f32.vlgmr.msrb.gmra.mxu0 %v1659_v23  ;;  %1910 = vmatmul.f32.vlgmr.msrb.gmra.mxu1 %v1659_v23 }
 0x33d   :  { %1930 = vmatmul.f32.vlgmr.msrb.gmra.mxu2 %v1659_v23  ;;  %1950 = vmatmul.f32.vlgmr.msrb.gmra.mxu3 %v1659_v23  ;;  %v7812_v23 = vld [vmem:[#allocation68_spill] sm:$0xff] }
 0x33e   :  { %2155 = vmatpush.msra.mxu0 %v5270_v45  ;;  %2175 = vmatpush.msra.mxu1 %v5275_v6  ;;  %v7764_v45 = vld [vmem:[#allocation14_spill] sm:$0xff]  ;;  %v7765_v6 = vld [vmem:[#allocation15_spill] sm:$0xff] }
 0x33f   :  { %2195 = vmatpush.msra.mxu2 %v5280_v46  ;;  %2215 = vmatpush.msra.mxu3 %v5287_v14  ;;  %v7766_v46 = vld [vmem:[#allocation26_spill] sm:$0xff]  ;;  %v7767_v14 = vld [vmem:[#allocation27_spill] sm:$0xff] }
 0x340   :  { %2156 = vmatpush.msra.mxu0 %v5294_v47  ;;  %2176 = vmatpush.msra.mxu1 %v5299_v48  ;;  %v7768_v47 = vld [vmem:[#allocation18_spill] sm:$0xff]  ;;  %v7769_v48 = vld [vmem:[#allocation19_spill] sm:$0xff] }
 0x341   :  { %2196 = vmatpush.msra.mxu2 %v5304_v49  ;;  %2216 = vmatpush.msra.mxu3 %v5311_v50  ;;  %v7770_v49 = vld [vmem:[#allocation30_spill] sm:$0xff]  ;;  %v7771_v50 = vld [vmem:[#allocation31_spill] sm:$0xff] }
 0x342   :  { %2157 = vmatpush.msra.mxu0 %v5318_v51  ;;  %2177 = vmatpush.msra.mxu1 %v5323_v52  ;;  %v7772_v51 = vld [vmem:[#allocation24_spill] sm:$0xff]  ;;  %v7773_v52 = vld [vmem:[#allocation25_spill] sm:$0xff] }
 0x343   :  { %2197 = vmatpush.msra.mxu2 %v5328_v53  ;;  %2217 = vmatpush.msra.mxu3 %v5335_v54  ;;  %v7774_v53 = vld [vmem:[#allocation34_spill] sm:$0xff]  ;;  %v7775_v54 = vld [vmem:[#allocation35_spill] sm:$0xff] }
 0x344   :  { %2158 = vmatpush.msra.mxu0 %v5342_v55  ;;  %2178 = vmatpush.msra.mxu1 %v5347_v56  ;;  %v7776_v55 = vld [vmem:[#allocation28_spill] sm:$0xff]  ;;  %v7777_v56 = vld [vmem:[#allocation29_spill] sm:$0xff] }
 0x345   :  { %2198 = vmatpush.msra.mxu2 %v5352_v24  ;;  %2218 = vmatpush.msra.mxu3 %v5359_v57  ;;  %v7778_v24 = vld [vmem:[#allocation38_spill] sm:$0xff]  ;;  %v7779_v57 = vld [vmem:[#allocation39_spill] sm:$0xff] }
 0x346   :  { %2159 = vmatpush.msra.mxu0 %v5366_v58  ;;  %2179 = vmatpush.msra.mxu1 %v5371_v59  ;;  %v7780_v58 = vld [vmem:[#allocation32_spill] sm:$0xff]  ;;  %v7781_v59 = vld [vmem:[#allocation33_spill] sm:$0xff] }
 0x347   :  { %2199 = vmatpush.msra.mxu2 %v5376_v60  ;;  %2219 = vmatpush.msra.mxu3 %v5383_v61  ;;  %v7782_v60 = vld [vmem:[#allocation42_spill] sm:$0xff]  ;;  %v7783_v61 = vld [vmem:[#allocation43_spill] sm:$0xff] }
 0x348   :  { %2160 = vmatpush.msra.mxu0 %v5390_v62  ;;  %2180 = vmatpush.msra.mxu1 %v5395_v63  ;;  %v7784_v62 = vld [vmem:[#allocation36_spill] sm:$0xff]  ;;  %v7785_v63 = vld [vmem:[#allocation37_spill] sm:$0xff] }
 0x349   :  { %2200 = vmatpush.msra.mxu2 %v5400_v0  ;;  %2220 = vmatpush.msra.mxu3 %v5407_v1  ;;  %v7786_v0 = vld [vmem:[#allocation46_spill] sm:$0xff]  ;;  %v7787_v1 = vld [vmem:[#allocation47_spill] sm:$0xff] }
 0x34a   :  { %2161 = vmatpush.msra.mxu0 %v5414_v2  ;;  %2181 = vmatpush.msra.mxu1 %v5419_v3  ;;  %v7788_v2 = vld [vmem:[#allocation40_spill] sm:$0xff]  ;;  %v7789_v3 = vld [vmem:[#allocation41_spill] sm:$0xff] }
 0x34b   :  { %2201 = vmatpush.msra.mxu2 %v5424_v4  ;;  %2221 = vmatpush.msra.mxu3 %v5431_v5  ;;  %v7790_v4 = vld [vmem:[#allocation50_spill] sm:$0xff]  ;;  %v7791_v5 = vld [vmem:[#allocation51_spill] sm:$0xff] }
 0x34c   :  { %2162 = vmatpush.msra.mxu0 %v5438_v7  ;;  %2182 = vmatpush.msra.mxu1 %v5443_v8  ;;  %v7792_v7 = vld [vmem:[#allocation44_spill] sm:$0xff]  ;;  %v7793_v8 = vld [vmem:[#allocation45_spill] sm:$0xff] }
 0x34d   :  { %2202 = vmatpush.msra.mxu2 %v5448_v17  ;;  %2222 = vmatpush.msra.mxu3 %v5455_v11  ;;  %v7794_v17 = vld [vmem:[#allocation54_spill] sm:$0xff]  ;;  %v7795_v11 = vld [vmem:[#allocation55_spill] sm:$0xff] }
 0x34e   :  { %2163 = vmatpush.msra.mxu0 %v5462_v15  ;;  %2183 = vmatpush.msra.mxu1 %v5467_v33  ;;  %v7796_v15 = vld [vmem:[#allocation48_spill] sm:$0xff]  ;;  %v7797_v33 = vld [vmem:[#allocation49_spill] sm:$0xff] }
 0x34f   :  { %2203 = vmatpush.msra.mxu2 %v7751_v31  ;;  %2223 = vmatpush.msra.mxu3 %v7752_v19  ;;  %v7813_v31 = vld [vmem:[#allocation69_spill] sm:$0xff]  ;;  %v7814_v19 = vld [vmem:[#allocation70_spill] sm:$0xff] }
 0x350   :  { %2164 = vmatpush.msra.mxu0 %v7753_v22  ;;  %2184 = vmatpush.msra.mxu1 %v7754_v37  ;;  %v7815_v22 = vld [vmem:[#allocation71_spill] sm:$0xff]  ;;  %v7816_v37 = vld [vmem:[#allocation72_spill] sm:$0xff] }
 0x351   :  { %2204 = vmatpush.msra.mxu2 %v7755_v38  ;;  %2224 = vmatpush.msra.mxu3 %v7756_v39  ;;  %v7817_v38 = vld [vmem:[#allocation73_spill] sm:$0xff]  ;;  %v7818_v39 = vld [vmem:[#allocation74_spill] sm:$0xff] }
 0x352   :  { %2165 = vmatpush.msra.mxu0 %v7757_v40  ;;  %2185 = vmatpush.msra.mxu1 %v7758_v41  ;;  %v7819_v40 = vld [vmem:[#allocation75_spill] sm:$0xff]  ;;  %v7820_v41 = vld [vmem:[#allocation76_spill] sm:$0xff] }
 0x353   :  { %2205 = vmatpush.msra.mxu2 %v7759_v42  ;;  %2225 = vmatpush.msra.mxu3 %v7760_v13  ;;  %v7821_v42 = vld [vmem:[#allocation77_spill] sm:$0xff]  ;;  %v7822_v13 = vld [vmem:[#allocation78_spill] sm:$0xff] }
 0x354   :  { %2166 = vmatpush.msra.mxu0 %v7761_v43  ;;  %2186 = vmatpush.msra.mxu1 %v7762_v21  ;;  %v7823_v43 = vld [vmem:[#allocation79_spill] sm:$0xff]  ;;  %v7824_v21 = vld [vmem:[#allocation80_spill] sm:$0xff] }
 0x355   :  { %2206 = vmatpush.msra.mxu2 %v7763_v44  ;;  %2226 = vmatpush.msra.mxu3 %v7764_v45  ;;  %v7825_v44 = vld [vmem:[#allocation81_spill] sm:$0xff]  ;;  %v7826_v45 = vld [vmem:[#allocation82_spill] sm:$0xff] }
 0x356   :  { %2167 = vmatpush.msra.mxu0 %v7765_v6  ;;  %2187 = vmatpush.msra.mxu1 %v7766_v46  ;;  %v7827_v6 = vld [vmem:[#allocation83_spill] sm:$0xff]  ;;  %v7828_v46 = vld [vmem:[#allocation84_spill] sm:$0xff] }
 0x357   :  { %2207 = vmatpush.msra.mxu2 %v7767_v14  ;;  %2227 = vmatpush.msra.mxu3 %v7768_v47  ;;  %v7829_v14 = vld [vmem:[#allocation85_spill] sm:$0xff]  ;;  %v7830_v47 = vld [vmem:[#allocation86_spill] sm:$0xff] }
 0x358   :  { %2232 = vmatpush.msrb.mxu0 %v7769_v48  ;;  %2252 = vmatpush.msrb.mxu1 %v7770_v49  ;;  %v7831_v48 = vld [vmem:[#allocation87_spill] sm:$0xff] }
 0x359   :  { %2272 = vmatpush.msrb.mxu2 %v7771_v50  ;;  %2292 = vmatpush.msrb.mxu3 %v7772_v51 }
 0x35a   :  { %2233 = vmatpush.msrb.mxu0 %v7773_v52  ;;  %2253 = vmatpush.msrb.mxu1 %v7774_v53 }
 0x35b   :  { %2273 = vmatpush.msrb.mxu2 %v7775_v54  ;;  %2293 = vmatpush.msrb.mxu3 %v7776_v55 }
 0x35c   :  { %2234 = vmatpush.msrb.mxu0 %v7777_v56  ;;  %2254 = vmatpush.msrb.mxu1 %v7778_v24 }
 0x35d   :  { %2274 = vmatpush.msrb.mxu2 %v7779_v57  ;;  %2294 = vmatpush.msrb.mxu3 %v7780_v58 }
 0x35e   :  { %2235 = vmatpush.msrb.mxu0 %v7781_v59  ;;  %2255 = vmatpush.msrb.mxu1 %v7782_v60 }
 0x35f   :  { %2275 = vmatpush.msrb.mxu2 %v7783_v61  ;;  %2295 = vmatpush.msrb.mxu3 %v7784_v62  ;;  %v1663_v61 = vld [vmem:[#allocation2 + $0x4] ss:$8 sm:$0xf] }
 0x360   :  { %2236 = vmatpush.msrb.mxu0 %v7785_v63  ;;  %2256 = vmatpush.msrb.mxu1 %v7786_v0  ;;  %v1665_v63 = vld [vmem:[#allocation2 + $0x23] ss:$8 sm:$0xf] }
 0x361   :  { %2276 = vmatpush.msrb.mxu2 %v7787_v1  ;;  %2296 = vmatpush.msrb.mxu3 %v7788_v2 }
 0x362   :  { %2237 = vmatpush.msrb.mxu0 %v7789_v3  ;;  %2257 = vmatpush.msrb.mxu1 %v7790_v4 }
 0x363   :  { %2277 = vmatpush.msrb.mxu2 %v7791_v5  ;;  %2297 = vmatpush.msrb.mxu3 %v7792_v7 }
 0x364   :  { %2238 = vmatpush.msrb.mxu0 %v7793_v8  ;;  %2258 = vmatpush.msrb.mxu1 %v7794_v17 }
 0x365   :  { %2278 = vmatpush.msrb.mxu2 %v7795_v11  ;;  %2298 = vmatpush.msrb.mxu3 %v7796_v15 }
 0x366   :  { %2239 = vmatpush.msrb.mxu0 %v7797_v33  ;;  %2259 = vmatpush.msrb.mxu1 %v7798_v16 }
 0x367   :  { %2279 = vmatpush.msrb.mxu2 %v7799_v9  ;;  %2299 = vmatpush.msrb.mxu3 %v7800_v35 }
 0x368   :  { %2240 = vmatpush.msrb.mxu0 %v7801_v29  ;;  %2260 = vmatpush.msrb.mxu1 %v7802_v34 }
 0x369   :  { %2280 = vmatpush.msrb.mxu2 %v7803_v36  ;;  %2300 = vmatpush.msrb.mxu3 %v7804_v20 }
 0x36a   :  { %2241 = vmatpush.msrb.mxu0 %v7805_v27  ;;  %2261 = vmatpush.msrb.mxu1 %v7806_v12 }
 0x36b   :  { %2281 = vmatpush.msrb.mxu2 %v7807_v25  ;;  %2301 = vmatpush.msrb.mxu3 %v7808_v28 }
 0x36c   :  { %2242 = vmatpush.msrb.mxu0 %v7809_v30  ;;  %2262 = vmatpush.msrb.mxu1 %v7810_v18 }
 0x36d   :  { %2282 = vmatpush.msrb.mxu2 %v7811_v10  ;;  %2302 = vmatpush.msrb.mxu3 %v7812_v23 }
 0x36e   :  { %2243 = vmatpush.msrb.mxu0 %v7813_v31  ;;  %2263 = vmatpush.msrb.mxu1 %v7814_v19 }
 0x36f   :  { %2283 = vmatpush.msrb.mxu2 %v7815_v22  ;;  %2303 = vmatpush.msrb.mxu3 %v7816_v37 }
 0x370   :  { %2244 = vmatpush.msrb.mxu0 %v7817_v38  ;;  %2264 = vmatpush.msrb.mxu1 %v7818_v39  ;;  %v6127_v39 = vld [vmem:[%s7062_s2 + $0x3c8] sm:$0xff] }
 0x371   :  { %2284 = vmatpush.msrb.mxu2 %v7819_v40  ;;  %2304 = vmatpush.msrb.mxu3 %v7820_v41  ;;  %v6132_v40 = vld [vmem:[%s7062_s2 + $0x3d0] sm:$0xff]  ;;  %v6139_v41 = vld [vmem:[%s7062_s2 + $0x3d8] sm:$0xff] }
 0x372   :  { %2245 = vmatpush.msrb.mxu0 %v7821_v42  ;;  %2265 = vmatpush.msrb.mxu1 %v7822_v13  ;;  %v6146_v42 = vld [vmem:[%s7062_s2 + $0x380] sm:$0xff]  ;;  %v6151_v13 = vld [vmem:[%s7062_s2 + $0x388] sm:$0xff] }
 0x373   :  { %2285 = vmatpush.msrb.mxu2 %v7823_v43  ;;  %2305 = vmatpush.msrb.mxu3 %v7824_v21  ;;  %v6156_v43 = vld [vmem:[%s7062_s2 + $0x390] sm:$0xff]  ;;  %v6163_v21 = vld [vmem:[%s7062_s2 + $0x398] sm:$0xff] }
 0x374   :  { %2246 = vmatpush.msrb.mxu0 %v7825_v44  ;;  %2266 = vmatpush.msrb.mxu1 %v7826_v45  ;;  %v6168_v44 = vld [vmem:[%s7062_s2 + $0x340] sm:$0xff]  ;;  %v6173_v45 = vld [vmem:[%s7062_s2 + $0x348] sm:$0xff] }
 0x375   :  { %2286 = vmatpush.msrb.mxu2 %v7827_v6  ;;  %2306 = vmatpush.msrb.mxu3 %v7828_v46  ;;  %v6180_v6 = vld [vmem:[%s7062_s2 + $0x350] sm:$0xff]  ;;  %v6185_v46 = vld [vmem:[%s7062_s2 + $0x358] sm:$0xff] }
 0x376   :  { %2247 = vmatpush.msrb.mxu0 %v7829_v14  ;;  %2267 = vmatpush.msrb.mxu1 %v5955_v26  ;;  %v6194_v14 = vld [vmem:[%s7062_s2 + $0x300] sm:$0xff] }
 0x377   :  { %2287 = vmatpush.msrb.mxu2 %v7830_v47  ;;  %2307 = vmatpush.msrb.mxu3 %v7831_v48  ;;  %v6199_v47 = vld [vmem:[%s7062_s2 + $0x308] sm:$0xff]  ;;  %v6204_v48 = vld [vmem:[%s7062_s2 + $0x310] sm:$0xff] }
 0x3b1   :  { %v1811_v49 = vpop.f32.mrf.mxu0  ;;  %v1831_v50 = vpop.f32.mrf.mxu1 }
 0x3b2   :  { %v1958_v24 = vrot.slane %v1831_v50, 7  ;;  %v6218_v50 = vld [vmem:[%s7062_s2 + $0x2c0] sm:$0xff] }
 0x3b4   :  { %v1961_v59 = vsel %vm526_vm2, %v1811_v49, %v1958_v24  ;;  %v6211_v49 = vld [vmem:[%s7062_s2 + $0x318] sm:$0xff] }
 0x3b5   :  { %v6259_v24 = vld [vmem:[%s7062_s2 + $0x298] sm:$0xff] }
 0x3b8   :  { %v1851_v51 = vpop.f32.mrf.mxu2  ;;  %v1871_v52 = vpop.f32.mrf.mxu3 }
 0x3b9   :  { %v1891_v53 = vpop.f32.mrf.mxu0  ;;  %v1911_v54 = vpop.f32.mrf.mxu1  ;;  %v1959_v55 = vrot.slane %v1851_v51, 6  ;;  %v1960_v56 = vrot.slane %v1871_v52, 5  ;;  %v6223_v51 = vld [vmem:[%s7062_s2 + $0x2c8] sm:$0xff]  ;;  %v6228_v52 = vld [vmem:[%s7062_s2 + $0x2d0] sm:$0xff] }
 0x3ba   :  { %1970 = vst [vmem:[#allocation1] sm:$0xff] %v1891_v53  ;;  %v6235_v53 = vld [vmem:[%s7062_s2 + $0x2d8] sm:$0xff] }
 0x3bb   :  { %1971 = vst [vmem:[#allocation1 + $0x9] sm:$0xff] %v1911_v54  ;;  %v1962_v26 = vsel %vm528_vm1, %v1959_v55, %v1960_v56  ;;  %v6242_v54 = vld [vmem:[%s7062_s2 + $0x280] sm:$0xff]  ;;  %v6247_v55 = vld [vmem:[%s7062_s2 + $0x288] sm:$0xff]  ;;  %v6252_v56 = vld [vmem:[%s7062_s2 + $0x290] sm:$0xff] }
 0x3bc   :  { %v1963_v60 = vsel %vm530_vm3, %v1961_v59, %v1962_v26  ;;  %v6276_v26 = vld [vmem:[%s7062_s2 + $0x250] sm:$0xff]  ;;  %v6283_v59 = vld [vmem:[%s7062_s2 + $0x258] sm:$0xff] }
 0x3bd   :  { %v1965_v62 = vadd.f32 %v1963_v60, %v1663_v61  ;;  %v6290_v60 = vld [vmem:[%s7062_s2 + $0x200] sm:$0xff]  ;;  %v6295_v61 = vld [vmem:[%s7062_s2 + $0x208] sm:$0xff] }
 0x3bf   :  { %v1979_v2 = vperm.slane %v1965_v62, 0  ;;  %v1980_v3 = vperm.slane %v1965_v62, 1  ;;  %v1981_v16 = vperm.slane %v1965_v62, 2  ;;  %v1982_v9 = vperm.slane %v1965_v62, 3  ;;  %v6300_v62 = vld [vmem:[%s7062_s2 + $0x210] sm:$0xff] }
 0x3c0   :  { %v1931_v57 = vpop.f32.mrf.mxu2  ;;  %v1951_v58 = vpop.f32.mrf.mxu3 }
 0x3c1   :  { %1972 = vst [vmem:[#allocation1 + $0x12] sm:$0xff] %v1931_v57  ;;  %v6266_v57 = vld [vmem:[%s7062_s2 + $0x240] sm:$0xff] }
 0x3c2   :  { %1973 = vst [vmem:[#allocation1 + $0x1b] sm:$0xff] %v1951_v58  ;;  %v6271_v58 = vld [vmem:[%s7062_s2 + $0x248] sm:$0xff] }
 0x3c9   :  { %v1975_v0 = vld [vmem:[#allocation1 + $0x1] ss:$9 sm:$0xff] }
 0x3ca   :  { %v1977_v1 = vadd.f32 %v1975_v0, %v1665_v63  ;;  %v6307_v63 = vld [vmem:[%s7062_s2 + $0x218] sm:$0xff]  ;;  %v6314_v0 = vld [vmem:[%s7062_s2 + $0x1c0] sm:$0xff] }
 0x3cc   :  { %v1988_v4 = vperm.slane %v1977_v1, 0  ;;  %v1989_v5 = vperm.slane %v1977_v1, 1  ;;  %v1990_v7 = vperm.slane %v1977_v1, 2  ;;  %v1991_v8 = vperm.slane %v1977_v1, 3  ;;  %v6319_v1 = vld [vmem:[%s7062_s2 + $0x1c8] sm:$0xff] }
 0x3ce   :  { %v1996_v17 = vsel %vm526_vm2, %v1979_v2, %v1988_v4  ;;  %v1997_v11 = vsel %vm526_vm2, %v1980_v3, %v1989_v5  ;;  %v1998_v35 = vsel %vm526_vm2, %v1981_v16, %v1990_v7  ;;  %v1999_v29 = vsel %vm526_vm2, %v1982_v9, %v1991_v8  ;;  %v6324_v2 = vld [vmem:[%s7062_s2 + $0x1d0] sm:$0xff]  ;;  %v6331_v3 = vld [vmem:[%s7062_s2 + $0x1d8] sm:$0xff]  ;;  %v6338_v4 = vld [vmem:[%s7062_s2 + $0x180] sm:$0xff] }
 0x3cf   :  { %v2000_v15 = vmul.f32 0.5, %v1996_v17  ;;  %v2001_v33 = vmul.f32 0.5, %v1997_v11  ;;  %v2002_v34 = vmul.f32 0.5, %v1998_v35  ;;  %v6343_v5 = vld [vmem:[%s7062_s2 + $0x188] sm:$0xff]  ;;  %v6348_v7 = vld [vmem:[%s7062_s2 + $0x190] sm:$0xff]  ;;  %v6355_v8 = vld [vmem:[%s7062_s2 + $0x198] sm:$0xff] }
 0x3d0   :  { %v6362_v17 = vld [vmem:[%s7062_s2 + $0x140] sm:$0xff]  ;;  %v6367_v11 = vld [vmem:[%s7062_s2 + $0x148] sm:$0xff]  ;;  %v6396_v35 = vld [vmem:[%s7062_s2 + $0x110] sm:$0xff] }
 0x3d1   :  { %3182 = vtanh.f32 %v2000_v15  ;;  %v6372_v15 = vld [vmem:[%s7062_s2 + $0x150] sm:$0xff]  ;;  %v6386_v16 = vld [vmem:[%s7062_s2 + $0x100] sm:$0xff]  ;;  %v6391_v9 = vld [vmem:[%s7062_s2 + $0x108] sm:$0xff]  ;;  %7832 = vst [vmem:[#allocation7_spill] sm:$0xff] %v6396_v35 }
 0x3d2   :  { %3184 = vtanh.f32 %v2001_v33  ;;  %v6379_v33 = vld [vmem:[%s7062_s2 + $0x158] sm:$0xff] }
 0x3d3   :  { %3186 = vtanh.f32 %v1999_v29  ;;  %v6403_v29 = vld [vmem:[%s7062_s2 + $0x118] sm:$0xff] }
 0x3d4   :  { %3188 = vtanh.f32 %v2002_v34  ;;  %7833 = vst [vmem:[#allocation12_spill] sm:$0xff] %v6403_v29  ;;  %v6410_v34 = vld [vmem:[%s7062_s2 + $0xc0] sm:$0xff] }
 0x3d5   :  { %7834 = vst [vmem:[#allocation13_spill] sm:$0xff] %v6410_v34 }
 0x3d7   :  { %v3183_v36 = vpop.eup %3182 }
 0x3d8   :  { %v3185_v20 = vpop.eup %3184  ;;  %v2006_v27 = vmul.f32 0.5, %v3183_v36  ;;  %v6415_v36 = vld [vmem:[%s7062_s2 + $0xc8] sm:$0xff] }
 0x3d9   :  { %v2007_v12 = vmul.f32 0.5, %v3185_v20  ;;  %v3187_v28 = vpop.eup %3186  ;;  %7835 = vst [vmem:[#allocation8_spill] sm:$0xff] %v6415_v36  ;;  %v6420_v20 = vld [vmem:[%s7062_s2 + $0xd0] sm:$0xff] }
 0x3da   :  { %v2009_v25 = vadd.f32 0.5, %v2006_v27  ;;  %v3189_v23 = vpop.eup %3188  ;;  %7836 = vst [vmem:[#allocation9_spill] sm:$0xff] %v6420_v20  ;;  %v6427_v27 = vld [vmem:[%s7062_s2 + $0xd8] sm:$0xff] }
 0x3db   :  { %v2010_v30 = vadd.f32 0.5, %v2007_v12  ;;  %v2008_v19 = vmul.f32 0.5, %v3189_v23  ;;  %7837 = vst [vmem:[#allocation16_spill] sm:$0xff] %v6427_v27  ;;  %v6434_v12 = vld [vmem:[%s7062_s2 + $0x80] sm:$0xff]  ;;  %v6468_v23 = vld [vmem:[%s7062_s2 + $0x50] sm:$0xff] }
 0x3dc   :  { %v2014_v18 = vmul.f32 %v3187_v28, %v2009_v25  ;;  %7838 = vst [vmem:[#allocation17_spill] sm:$0xff] %v6434_v12  ;;  %v6439_v25 = vld [vmem:[%s7062_s2 + $0x88] sm:$0xff]  ;;  %v6444_v28 = vld [vmem:[%s7062_s2 + $0x90] sm:$0xff] }
 0x3dd   :  { %v2013_v10 = vmul.f32 %v2010_v30, %v5977_v32  ;;  %v2011_v22 = vadd.f32 0.5, %v2008_v19  ;;  %v6122_v32 = vld [vmem:[%s7062_s2 + $0x3c0] sm:$0xff]  ;;  %7839 = vst [vmem:[#allocation10_spill] sm:$0xff] %v6439_v25  ;;  %v6451_v30 = vld [vmem:[%s7062_s2 + $0x98] sm:$0xff] }
 0x3de   :  { %7840 = vst [vmem:[#allocation11_spill] sm:$0xff] %v6444_v28  ;;  %v6473_v19 = vld [vmem:[%s7062_s2 + $0x58] sm:$0xff] }
 0x3df   :  { %v6116_v31 = vadd.f32 %v2014_v18, %v2013_v10  ;;  %7841 = vst [vmem:[#allocation20_spill] sm:$0xff] %v6451_v30  ;;  %v6456_v18 = vld [vmem:[%s7062_s2 + $0x40] sm:$0xff]  ;;  %v6461_v10 = vld [vmem:[%s7062_s2 + $0x48] sm:$0xff] }
 0x3e0   :  { %7842 = vst [vmem:[#allocation21_spill] sm:$0xff] %v6456_v18 }
 0x3e1   :  { %3190 = vtanh.f32 %v6116_v31  ;;  %7843 = vst [vmem:[#allocation22_spill] sm:$0xff] %v6461_v10 }
 0x3e2   :  { %7844 = vst [vmem:[#allocation23_spill] sm:$0xff] %v6468_v23 }
 0x3e3   :  { %7845 = vst [vmem:[#allocation14_spill] sm:$0xff] %v6473_v19 }
 0x3e7   :  { %v3191_v37 = vpop.eup %3190 }
 0x3e8   :  { %v2017_v38 = vmul.f32 %v3191_v37, %v2011_v22  ;;  %v6478_v22 = vld [vmem:[%s7062_s2] sm:$0xff]  ;;  %v6485_v37 = vld [vmem:[%s7062_s2 + $0x8] sm:$0xff] }
 0x3e9   :  { %7846 = vst [vmem:[#allocation15_spill] sm:$0xff] %v6478_v22 }
 0x3ea   :  { %2168 = vmatmul.f32.vlgmr.msra.gmra.mxu0 %v2017_v38  ;;  %2018 = vst [vmem:[#allocation4 + $0x4] sm:$0x1] %v2017_v38  ;;  %2188 = vmatmul.f32.vlgmr.msra.gmra.mxu1 %v2017_v38 }
 0x3eb   :  { %2019 = vst [vmem:[#allocation3 + $0x2] sm:$0x2] %v2017_v38  ;;  %2208 = vmatmul.f32.vlgmr.msra.gmra.mxu2 %v2017_v38  ;;  %2228 = vmatmul.f32.vlgmr.msra.gmra.mxu3 %v2017_v38 }
 0x3ec   :  { %2510 = vmatpush.msra.mxu0 %v6122_v32  ;;  %2530 = vmatpush.msra.mxu1 %v6127_v39  ;;  %7847 = vst [vmem:[#allocation26_spill] sm:$0xff] %v6485_v37 }
 0x3ed   :  { %2550 = vmatpush.msra.mxu2 %v6132_v40  ;;  %2570 = vmatpush.msra.mxu3 %v6139_v41 }
 0x3ee   :  { %2511 = vmatpush.msra.mxu0 %v6146_v42  ;;  %2531 = vmatpush.msra.mxu1 %v6151_v13 }
 0x3ef   :  { %2551 = vmatpush.msra.mxu2 %v6156_v43  ;;  %2571 = vmatpush.msra.mxu3 %v6163_v21 }
 0x3f0   :  { %2512 = vmatpush.msra.mxu0 %v6168_v44  ;;  %2532 = vmatpush.msra.mxu1 %v6173_v45 }
 0x3f1   :  { %2552 = vmatpush.msra.mxu2 %v6180_v6  ;;  %2572 = vmatpush.msra.mxu3 %v6185_v46 }
 0x3f2   :  { %2248 = vmatmul.f32.vlgmr.msrb.gmra.mxu0 %v2017_v38  ;;  %2268 = vmatmul.f32.vlgmr.msrb.gmra.mxu1 %v2017_v38 }
 0x3f3   :  { %2288 = vmatmul.f32.vlgmr.msrb.gmra.mxu2 %v2017_v38  ;;  %2308 = vmatmul.f32.vlgmr.msrb.gmra.mxu3 %v2017_v38  ;;  %v6490_v38 = vld [vmem:[%s7062_s2 + $0x10] sm:$0xff] }
 0x3f4   :  { %2513 = vmatpush.msra.mxu0 %v6194_v14  ;;  %2533 = vmatpush.msra.mxu1 %v6199_v47  ;;  %7848 = vst [vmem:[#allocation27_spill] sm:$0xff] %v6490_v38 }
 0x3f5   :  { %2553 = vmatpush.msra.mxu2 %v6204_v48  ;;  %2573 = vmatpush.msra.mxu3 %v6211_v49 }
 0x3f6   :  { %2514 = vmatpush.msra.mxu0 %v6218_v50  ;;  %2534 = vmatpush.msra.mxu1 %v6223_v51 }
 0x3f7   :  { %2554 = vmatpush.msra.mxu2 %v6228_v52  ;;  %2574 = vmatpush.msra.mxu3 %v6235_v53 }
 0x3f8   :  { %2515 = vmatpush.msra.mxu0 %v6242_v54  ;;  %2535 = vmatpush.msra.mxu1 %v6247_v55 }
 0x3f9   :  { %2555 = vmatpush.msra.mxu2 %v6252_v56  ;;  %2575 = vmatpush.msra.mxu3 %v6259_v24 }
 0x3fa   :  { %2516 = vmatpush.msra.mxu0 %v6266_v57  ;;  %2536 = vmatpush.msra.mxu1 %v6271_v58 }
 0x3fb   :  { %2556 = vmatpush.msra.mxu2 %v6276_v26  ;;  %2576 = vmatpush.msra.mxu3 %v6283_v59 }
 0x3fc   :  { %2517 = vmatpush.msra.mxu0 %v6290_v60  ;;  %2537 = vmatpush.msra.mxu1 %v6295_v61 }
 0x3fd   :  { %2557 = vmatpush.msra.mxu2 %v6300_v62  ;;  %2577 = vmatpush.msra.mxu3 %v6307_v63 }
 0x3fe   :  { %2518 = vmatpush.msra.mxu0 %v6314_v0  ;;  %2538 = vmatpush.msra.mxu1 %v6319_v1 }
 0x3ff   :  { %2558 = vmatpush.msra.mxu2 %v6324_v2  ;;  %2578 = vmatpush.msra.mxu3 %v6331_v3 }
 0x400   :  { %2519 = vmatpush.msra.mxu0 %v6338_v4  ;;  %2539 = vmatpush.msra.mxu1 %v6343_v5 }
 0x401   :  { %2559 = vmatpush.msra.mxu2 %v6348_v7  ;;  %2579 = vmatpush.msra.mxu3 %v6355_v8 }
 0x402   :  { %2520 = vmatpush.msra.mxu0 %v6362_v17  ;;  %2540 = vmatpush.msra.mxu1 %v6367_v11 }
 0x403   :  { %2560 = vmatpush.msra.mxu2 %v6372_v15  ;;  %2580 = vmatpush.msra.mxu3 %v6379_v33 }
 0x404   :  { %2521 = vmatpush.msra.mxu0 %v6386_v16  ;;  %2541 = vmatpush.msra.mxu1 %v6391_v9 }
 0x405   :  { %2561 = vmatpush.msra.mxu2 %v6396_v35  ;;  %2581 = vmatpush.msra.mxu3 %v6403_v29  ;;  %v6855_v29 = vld [vmem:[%s7062_s2 + $0x68] sm:$0xff] }
 0x406   :  { %2522 = vmatpush.msra.mxu0 %v6410_v34  ;;  %2542 = vmatpush.msra.mxu1 %v6415_v36  ;;  %7907 = vst [vmem:[#allocation82_spill] sm:$0xff] %v6855_v29 }
 0x407   :  { %2562 = vmatpush.msra.mxu2 %v6420_v20  ;;  %2582 = vmatpush.msra.mxu3 %v6427_v27 }
 0x408   :  { %2523 = vmatpush.msra.mxu0 %v6434_v12  ;;  %2543 = vmatpush.msra.mxu1 %v6439_v25 }
 0x409   :  { %2563 = vmatpush.msra.mxu2 %v6444_v28  ;;  %2583 = vmatpush.msra.mxu3 %v6451_v30  ;;  %v6495_v30 = vld [vmem:[%s7062_s2 + $0x18] sm:$0xff] }
 0x40a   :  { %2524 = vmatpush.msra.mxu0 %v6456_v18  ;;  %2544 = vmatpush.msra.mxu1 %v6461_v10  ;;  %7849 = vst [vmem:[#allocation18_spill] sm:$0xff] %v6495_v30  ;;  %v6502_v10 = vld [vmem:[%s7062_s2 + $0x3e0] sm:$0xff]  ;;  %v6507_v18 = vld [vmem:[%s7062_s2 + $0x3e8] sm:$0xff] }
 0x40b   :  { %2564 = vmatpush.msra.mxu2 %v6468_v23  ;;  %2584 = vmatpush.msra.mxu3 %v6473_v19  ;;  %7850 = vst [vmem:[#allocation19_spill] sm:$0xff] %v6502_v10  ;;  %v6518_v19 = vld [vmem:[%s7062_s2 + $0x3f0] sm:$0xff]  ;;  %v6523_v23 = vld [vmem:[%s7062_s2 + $0x3f8] sm:$0xff] }
 0x40c   :  { %7851 = vst [vmem:[#allocation30_spill] sm:$0xff] %v6507_v18  ;;  %2525 = vmatpush.msra.mxu0 %v6478_v22  ;;  %2545 = vmatpush.msra.mxu1 %v6485_v37  ;;  %v6530_v22 = vld [vmem:[%s7062_s2 + $0x3a0] sm:$0xff]  ;;  %v6535_v37 = vld [vmem:[%s7062_s2 + $0x3a8] sm:$0xff] }
 0x40d   :  { %7852 = vst [vmem:[#allocation31_spill] sm:$0xff] %v6518_v19  ;;  %2565 = vmatpush.msra.mxu2 %v6490_v38  ;;  %2585 = vmatpush.msra.mxu3 %v6495_v30  ;;  %v6542_v38 = vld [vmem:[%s7062_s2 + $0x3b0] sm:$0xff]  ;;  %v6547_v30 = vld [vmem:[%s7062_s2 + $0x3b8] sm:$0xff] }
 0x40e   :  { %7853 = vst [vmem:[#allocation24_spill] sm:$0xff] %v6523_v23  ;;  %2590 = vmatpush.msrb.mxu0 %v6502_v10  ;;  %2610 = vmatpush.msrb.mxu1 %v6507_v18  ;;  %v6554_v10 = vld [vmem:[%s7062_s2 + $0x360] sm:$0xff]  ;;  %v6559_v18 = vld [vmem:[%s7062_s2 + $0x368] sm:$0xff] }
 0x40f   :  { %7854 = vst [vmem:[#allocation25_spill] sm:$0xff] %v6530_v22  ;;  %2630 = vmatpush.msrb.mxu2 %v6518_v19  ;;  %2650 = vmatpush.msrb.mxu3 %v6523_v23  ;;  %v6566_v19 = vld [vmem:[%s7062_s2 + $0x370] sm:$0xff]  ;;  %v6571_v23 = vld [vmem:[%s7062_s2 + $0x378] sm:$0xff] }
 0x410   :  { %7855 = vst [vmem:[#allocation34_spill] sm:$0xff] %v6535_v37  ;;  %2591 = vmatpush.msrb.mxu0 %v6530_v22  ;;  %2611 = vmatpush.msrb.mxu1 %v6535_v37  ;;  %v6578_v22 = vld [vmem:[%s7062_s2 + $0x320] sm:$0xff]  ;;  %v6583_v37 = vld [vmem:[%s7062_s2 + $0x328] sm:$0xff] }
 0x411   :  { %7856 = vst [vmem:[#allocation35_spill] sm:$0xff] %v6542_v38  ;;  %2631 = vmatpush.msrb.mxu2 %v6542_v38  ;;  %2651 = vmatpush.msrb.mxu3 %v6547_v30  ;;  %v6590_v38 = vld [vmem:[%s7062_s2 + $0x330] sm:$0xff] }
 0x412   :  { %7857 = vst [vmem:[#allocation28_spill] sm:$0xff] %v6547_v30  ;;  %2592 = vmatpush.msrb.mxu0 %v6554_v10  ;;  %2612 = vmatpush.msrb.mxu1 %v6559_v18  ;;  %v6595_v30 = vld [vmem:[%s7062_s2 + $0x338] sm:$0xff] }
 0x413   :  { %7858 = vst [vmem:[#allocation29_spill] sm:$0xff] %v6554_v10  ;;  %2632 = vmatpush.msrb.mxu2 %v6566_v19  ;;  %2652 = vmatpush.msrb.mxu3 %v6571_v23  ;;  %v6607_v10 = vld [vmem:[%s7062_s2 + $0x2e8] sm:$0xff] }
 0x414   :  { %7859 = vst [vmem:[#allocation38_spill] sm:$0xff] %v6559_v18  ;;  %v6602_v18 = vld [vmem:[%s7062_s2 + $0x2e0] sm:$0xff]  ;;  %2593 = vmatpush.msrb.mxu0 %v6578_v22  ;;  %2613 = vmatpush.msrb.mxu1 %v6583_v37 }
 0x415   :  { %7860 = vst [vmem:[#allocation39_spill] sm:$0xff] %v6566_v19  ;;  %v6619_v19 = vld [vmem:[%s7062_s2 + $0x2f8] sm:$0xff]  ;;  %2633 = vmatpush.msrb.mxu2 %v6590_v38  ;;  %2653 = vmatpush.msrb.mxu3 %v6595_v30 }
 0x416   :  { %7861 = vst [vmem:[#allocation32_spill] sm:$0xff] %v6571_v23  ;;  %v6614_v23 = vld [vmem:[%s7062_s2 + $0x2f0] sm:$0xff]  ;;  %2594 = vmatpush.msrb.mxu0 %v6602_v18  ;;  %2614 = vmatpush.msrb.mxu1 %v6607_v10 }
 0x417   :  { %7862 = vst [vmem:[#allocation33_spill] sm:$0xff] %v6578_v22  ;;  %v6626_v22 = vld [vmem:[%s7062_s2 + $0x2a0] sm:$0xff]  ;;  %2634 = vmatpush.msrb.mxu2 %v6614_v23  ;;  %2654 = vmatpush.msrb.mxu3 %v6619_v19 }
 0x418   :  { %7863 = vst [vmem:[#allocation42_spill] sm:$0xff] %v6583_v37  ;;  %v6631_v37 = vld [vmem:[%s7062_s2 + $0x2a8] sm:$0xff]  ;;  %2595 = vmatpush.msrb.mxu0 %v6626_v22 }
 0x419   :  { %7864 = vst [vmem:[#allocation43_spill] sm:$0xff] %v6590_v38  ;;  %2615 = vmatpush.msrb.mxu1 %v6631_v37 }
 0x41a   :  { %7865 = vst [vmem:[#allocation36_spill] sm:$0xff] %v6595_v30  ;;  %v6643_v30 = vld [vmem:[%s7062_s2 + $0x2b8] sm:$0xff] }
 0x41b   :  { %7866 = vst [vmem:[#allocation37_spill] sm:$0xff] %v6602_v18  ;;  %2655 = vmatpush.msrb.mxu3 %v6643_v30 }
 0x41c   :  { %7867 = vst [vmem:[#allocation46_spill] sm:$0xff] %v6607_v10  ;;  %v6655_v10 = vld [vmem:[%s7062_s2 + $0x268] sm:$0xff] }
 0x41d   :  { %7868 = vst [vmem:[#allocation47_spill] sm:$0xff] %v6614_v23  ;;  %v6662_v23 = vld [vmem:[%s7062_s2 + $0x270] sm:$0xff]  ;;  %2616 = vmatpush.msrb.mxu1 %v6655_v10 }
 0x41e   :  { %7869 = vst [vmem:[#allocation40_spill] sm:$0xff] %v6619_v19  ;;  %v6667_v19 = vld [vmem:[%s7062_s2 + $0x278] sm:$0xff] }
 0x41f   :  { %7870 = vst [vmem:[#allocation41_spill] sm:$0xff] %v6626_v22  ;;  %v6679_v22 = vld [vmem:[%s7062_s2 + $0x228] sm:$0xff]  ;;  %2656 = vmatpush.msrb.mxu3 %v6667_v19 }
 0x420   :  { %7871 = vst [vmem:[#allocation50_spill] sm:$0xff] %v6631_v37  ;;  %v6674_v37 = vld [vmem:[%s7062_s2 + $0x220] sm:$0xff]  ;;  %2617 = vmatpush.msrb.mxu1 %v6679_v22 }
 0x421   :  { %7873 = vst [vmem:[#allocation44_spill] sm:$0xff] %v6643_v30 }
 0x422   :  { %7875 = vst [vmem:[#allocation54_spill] sm:$0xff] %v6655_v10  ;;  %v6699_v10 = vld [vmem:[%s7062_s2 + $0x1e0] sm:$0xff] }
 0x423   :  { %7876 = vst [vmem:[#allocation55_spill] sm:$0xff] %v6662_v23 }
 0x424   :  { %7877 = vst [vmem:[#allocation48_spill] sm:$0xff] %v6667_v19  ;;  %v6716_v19 = vld [vmem:[%s7062_s2 + $0x1f8] sm:$0xff] }
 0x425   :  { %7878 = vst [vmem:[#allocation49_spill] sm:$0xff] %v6674_v37 }
 0x426   :  { %7879 = vst [vmem:[#allocation58_spill] sm:$0xff] %v6679_v22  ;;  %v6729_v22 = vld [vmem:[%s7062_s2 + $0x1a8] sm:$0xff] }
 0x427   :  { %7882 = vst [vmem:[#allocation53_spill] sm:$0xff] %v6699_v10 }
 0x428   :  { %7885 = vst [vmem:[#allocation56_spill] sm:$0xff] %v6716_v19 }
 0x429   :  { %7887 = vst [vmem:[#allocation66_spill] sm:$0xff] %v6729_v22 }
 0x467   :  { %v6509_v28 = vpop.f32.mrf.mxu0  ;;  %v6511_v25 = vpop.f32.mrf.mxu1 }
 0x468   :  { %v2316_v30 = vrot.slane %v6511_v25, 7  ;;  %v6711_v25 = vld [vmem:[%s7062_s2 + $0x1f0] sm:$0xff] }
 0x469   :  { %7884 = vst [vmem:[#allocation63_spill] sm:$0xff] %v6711_v25 }
 0x46e   :  { %v2209_v12 = vpop.f32.mrf.mxu2  ;;  %v2229_v27 = vpop.f32.mrf.mxu3 }
 0x46f   :  { %v2249_v20 = vpop.f32.mrf.mxu0  ;;  %v2269_v36 = vpop.f32.mrf.mxu1  ;;  %v2317_v18 = vrot.slane %v2209_v12, 6  ;;  %v2318_v38 = vrot.slane %v2229_v27, 5  ;;  %v6686_v27 = vld [vmem:[%s7062_s2 + $0x230] sm:$0xff]  ;;  %v6691_v12 = vld [vmem:[%s7062_s2 + $0x238] sm:$0xff] }
 0x470   :  { %2328 = vst [vmem:[#allocation1] sm:$0xff] %v2249_v20  ;;  %v6638_v20 = vld [vmem:[%s7062_s2 + $0x2b0] sm:$0xff]  ;;  %2657 = vmatpush.msrb.mxu3 %v6691_v12 }
 0x471   :  { %2329 = vst [vmem:[#allocation1 + $0x9] sm:$0xff] %v2269_v36  ;;  %v6650_v36 = vld [vmem:[%s7062_s2 + $0x260] sm:$0xff]  ;;  %2635 = vmatpush.msrb.mxu2 %v6638_v20 }
 0x472   :  { %7872 = vst [vmem:[#allocation51_spill] sm:$0xff] %v6638_v20  ;;  %2596 = vmatpush.msrb.mxu0 %v6650_v36  ;;  %2658 = vmatpush.msrb.mxu3 %v6716_v19  ;;  %v2023_v19 = vld [vmem:[#allocation2 + $0x22] ss:$8 sm:$0xf] }
 0x473   :  { %7874 = vst [vmem:[#allocation45_spill] sm:$0xff] %v6650_v36  ;;  %2636 = vmatpush.msrb.mxu2 %v6662_v23  ;;  %v6704_v36 = vld [vmem:[%s7062_s2 + $0x1e8] sm:$0xff]  ;;  %v2320_v23 = vsel %vm528_vm1, %v2317_v18, %v2318_v38  ;;  %v6741_v18 = vld [vmem:[%s7062_s2 + $0x1b8] sm:$0xff]  ;;  %v2319_v38 = vsel %vm526_vm2, %v6509_v28, %v2316_v30  ;;  %v6763_v28 = vld [vmem:[%s7062_s2 + $0x170] sm:$0xff] }
 0x474   :  { %7880 = vst [vmem:[#allocation59_spill] sm:$0xff] %v6686_v27  ;;  %2597 = vmatpush.msrb.mxu0 %v6674_v37  ;;  %2618 = vmatpush.msrb.mxu1 %v6704_v36  ;;  %v6768_v30 = vld [vmem:[%s7062_s2 + $0x178] sm:$0xff]  ;;  %v6850_v37 = vld [vmem:[%s7062_s2 + $0x60] sm:$0xff] }
 0x475   :  { %7881 = vst [vmem:[#allocation52_spill] sm:$0xff] %v6691_v12  ;;  %2637 = vmatpush.msrb.mxu2 %v6686_v27  ;;  %v2321_v12 = vsel %vm530_vm3, %v2319_v38, %v2320_v23  ;;  %2659 = vmatpush.msrb.mxu3 %v6741_v18  ;;  %v6775_v23 = vld [vmem:[%s7062_s2 + $0x120] sm:$0xff]  ;;  %v6780_v38 = vld [vmem:[%s7062_s2 + $0x128] sm:$0xff] }
 0x476   :  { %v2289_v20 = vpop.f32.mrf.mxu2  ;;  %v2309_v34 = vpop.f32.mrf.mxu3  ;;  %7883 = vst [vmem:[#allocation62_spill] sm:$0xff] %v6704_v36  ;;  %2598 = vmatpush.msrb.mxu0 %v6699_v10  ;;  %v6750_v36 = vld [vmem:[%s7062_s2 + $0x160] sm:$0xff]  ;;  %v6755_v10 = vld [vmem:[%s7062_s2 + $0x168] sm:$0xff]  ;;  %2619 = vmatpush.msrb.mxu1 %v6729_v22 }
 0x477   :  { %2330 = vst [vmem:[#allocation1 + $0x12] sm:$0xff] %v2289_v20  ;;  %v6724_v20 = vld [vmem:[%s7062_s2 + $0x1a0] sm:$0xff]  ;;  %2638 = vmatpush.msrb.mxu2 %v6711_v25  ;;  %2660 = vmatpush.msrb.mxu3 %v6768_v30 }
 0x478   :  { %2331 = vst [vmem:[#allocation1 + $0x1b] sm:$0xff] %v2309_v34  ;;  %v6736_v34 = vld [vmem:[%s7062_s2 + $0x1b0] sm:$0xff]  ;;  %2599 = vmatpush.msrb.mxu0 %v6724_v20  ;;  %2620 = vmatpush.msrb.mxu1 %v6755_v10 }
 0x479   :  { %7886 = vst [vmem:[#allocation57_spill] sm:$0xff] %v6724_v20  ;;  %2639 = vmatpush.msrb.mxu2 %v6736_v34  ;;  %v2021_v22 = vld [vmem:[#allocation2 + $0x5] ss:$8 sm:$0xf] }
 0x47a   :  { %7888 = vst [vmem:[#allocation67_spill] sm:$0xff] %v6736_v34  ;;  %2600 = vmatpush.msrb.mxu0 %v6750_v36  ;;  %v6787_v34 = vld [vmem:[%s7062_s2 + $0x130] sm:$0xff]  ;;  %v2323_v20 = vadd.f32 %v2321_v12, %v2021_v22  ;;  %2621 = vmatpush.msrb.mxu1 %v6780_v38  ;;  %v6808_v22 = vld [vmem:[%s7062_s2 + $0xe8] sm:$0xff] }
 0x47b   :  { %7889 = vst [vmem:[#allocation60_spill] sm:$0xff] %v6741_v18  ;;  %v6792_v18 = vld [vmem:[%s7062_s2 + $0x138] sm:$0xff]  ;;  %2640 = vmatpush.msrb.mxu2 %v6763_v28  ;;  %v6813_v12 = vld [vmem:[%s7062_s2 + $0xf0] sm:$0xff] }
 0x47c   :  { %7890 = vst [vmem:[#allocation61_spill] sm:$0xff] %v6750_v36  ;;  %2601 = vmatpush.msrb.mxu0 %v6775_v23  ;;  %2661 = vmatpush.msrb.mxu3 %v6792_v18  ;;  %v6803_v36 = vld [vmem:[%s7062_s2 + $0xe0] sm:$0xff]  ;;  %v2340_v35 = vperm.slane %v2323_v20, 3 }
 0x47d   :  { %7891 = vst [vmem:[#allocation64_spill] sm:$0xff] %v6755_v10  ;;  %2641 = vmatpush.msrb.mxu2 %v6787_v34  ;;  %2622 = vmatpush.msrb.mxu1 %v6808_v22 }
 0x47e   :  { %7892 = vst [vmem:[#allocation65_spill] sm:$0xff] %v6763_v28  ;;  %2602 = vmatpush.msrb.mxu0 %v6803_v36 }
 0x47f   :  { %7893 = vst [vmem:[#allocation68_spill] sm:$0xff] %v6768_v30  ;;  %v2333_v25 = vld [vmem:[#allocation1 + $0x1] ss:$9 sm:$0xff]  ;;  %2642 = vmatpush.msrb.mxu2 %v6813_v12 }
 0x480   :  { %7894 = vst [vmem:[#allocation69_spill] sm:$0xff] %v6775_v23  ;;  %v2335_v10 = vadd.f32 %v2333_v25, %v2023_v19  ;;  %v2337_v19 = vperm.slane %v2323_v20, 0  ;;  %v2338_v25 = vperm.slane %v2323_v20, 1  ;;  %v6825_v23 = vld [vmem:[%s7062_s2 + $0xa0] sm:$0xff]  ;;  %v6842_v30 = vld [vmem:[%s7062_s2 + $0xb8] sm:$0xff] }
 0x481   :  { %7895 = vst [vmem:[#allocation70_spill] sm:$0xff] %v6780_v38  ;;  %2603 = vmatpush.msrb.mxu0 %v6825_v23 }
 0x482   :  { %7896 = vst [vmem:[#allocation71_spill] sm:$0xff] %v6787_v34  ;;  %v2346_v34 = vperm.slane %v2335_v10, 0  ;;  %v2347_v38 = vperm.slane %v2335_v10, 1  ;;  %v2349_v28 = vperm.slane %v2335_v10, 3  ;;  %v2348_v27 = vperm.slane %v2335_v10, 2  ;;  %v6860_v10 = vld [vmem:[%s7062_s2 + $0x70] sm:$0xff] }
 0x483   :  { %7897 = vst [vmem:[#allocation72_spill] sm:$0xff] %v6792_v18  ;;  %v6820_v18 = vld [vmem:[%s7062_s2 + $0xf8] sm:$0xff]  ;;  %2604 = vmatpush.msrb.mxu0 %v6850_v37 }
 0x484   :  { %7898 = vst [vmem:[#allocation73_spill] sm:$0xff] %v6803_v36  ;;  %2662 = vmatpush.msrb.mxu3 %v6820_v18  ;;  %v6832_v36 = vld [vmem:[%s7062_s2 + $0xa8] sm:$0xff] }
 0x485   :  { %7899 = vst [vmem:[#allocation74_spill] sm:$0xff] %v6808_v22  ;;  %v6837_v22 = vld [vmem:[%s7062_s2 + $0xb0] sm:$0xff]  ;;  %2623 = vmatpush.msrb.mxu1 %v6832_v36 }
 0x486   :  { %7900 = vst [vmem:[#allocation75_spill] sm:$0xff] %v6813_v12  ;;  %v2354_v12 = vsel %vm526_vm2, %v2337_v19, %v2346_v34  ;;  %2643 = vmatpush.msrb.mxu2 %v6837_v22  ;;  %2663 = vmatpush.msrb.mxu3 %v6842_v30 }
 0x487   :  { %7901 = vst [vmem:[#allocation76_spill] sm:$0xff] %v6820_v18  ;;  %v2355_v18 = vsel %vm526_vm2, %v2338_v25, %v2347_v38  ;;  %v2358_v34 = vmul.f32 0.5, %v2354_v12  ;;  %v6867_v38 = vld [vmem:[%s7062_s2 + $0x78] sm:$0xff]  ;;  %v6872_v25 = vld [vmem:[%s7062_s2 + $0x20] sm:$0xff]  ;;  %v6884_v12 = vld [vmem:[%s7062_s2 + $0x30] sm:$0xff]  ;;  %2624 = vmatpush.msrb.mxu1 %v6855_v29 }
 0x488   :  { %7902 = vst [vmem:[#allocation77_spill] sm:$0xff] %v6825_v23  ;;  %v2359_v19 = vmul.f32 0.5, %v2355_v18  ;;  %v2339_v23 = vperm.slane %v2323_v20, 2  ;;  %v6879_v18 = vld [vmem:[%s7062_s2 + $0x28] sm:$0xff]  ;;  %2644 = vmatpush.msrb.mxu2 %v6860_v10  ;;  %v6891_v20 = vld [vmem:[%s7062_s2 + $0x38] sm:$0xff]  ;;  %2664 = vmatpush.msrb.mxu3 %v6867_v38 }
 0x489   :  { %7903 = vst [vmem:[#allocation78_spill] sm:$0xff] %v6832_v36  ;;  %3192 = vtanh.f32 %v2358_v34  ;;  %2605 = vmatpush.msrb.mxu0 %v6872_v25  ;;  %2625 = vmatpush.msrb.mxu1 %v6879_v18 }
 0x48a   :  { %7904 = vst [vmem:[#allocation79_spill] sm:$0xff] %v6837_v22  ;;  %3194 = vtanh.f32 %v2359_v19  ;;  %2645 = vmatpush.msrb.mxu2 %v6884_v12  ;;  %2665 = vmatpush.msrb.mxu3 %v6891_v20 }
 0x48b   :  { %7905 = vst [vmem:[#allocation80_spill] sm:$0xff] %v6842_v30  ;;  %v2357_v30 = vsel %vm526_vm2, %v2340_v35, %v2349_v28 }
 0x48c   :  { %7906 = vst [vmem:[#allocation81_spill] sm:$0xff] %v6850_v37  ;;  %v2356_v37 = vsel %vm526_vm2, %v2339_v23, %v2348_v27  ;;  %3196 = vtanh.f32 %v2357_v30 }
 0x48d   :  { %7908 = vst [vmem:[#allocation83_spill] sm:$0xff] %v6860_v10  ;;  %v2360_v34 = vmul.f32 0.5, %v2356_v37 }
 0x48e   :  { %7909 = vst [vmem:[#allocation84_spill] sm:$0xff] %v6867_v38 }
 0x48f   :  { %7910 = vst [vmem:[#allocation85_spill] sm:$0xff] %v6872_v25  ;;  %v3193_v10 = vpop.eup %3192  ;;  %3198 = vtanh.f32 %v2360_v34  ;;  %v7967_v34 = vld [vmem:[#allocation57_spill] sm:$0xff] }
 0x490   :  { %7911 = vst [vmem:[#allocation86_spill] sm:$0xff] %v6884_v12  ;;  %v3195_v29 = vpop.eup %3194  ;;  %v2364_v22 = vmul.f32 0.5, %v3193_v10  ;;  %v7962_v10 = vld [vmem:[#allocation52_spill] sm:$0xff] }
 0x491   :  { %7912 = vst [vmem:[#allocation87_spill] sm:$0xff] %v6891_v20  ;;  %v2365_v27 = vmul.f32 0.5, %v3195_v29  ;;  %v7960_v29 = vld [vmem:[#allocation58_spill] sm:$0xff] }
 0x492   :  { %v2367_v23 = vadd.f32 0.5, %v2364_v22  ;;  %v3197_v35 = vpop.eup %3196  ;;  %v7961_v22 = vld [vmem:[#allocation59_spill] sm:$0xff] }
 0x493   :  { %v2368_v28 = vadd.f32 0.5, %v2365_v27  ;;  %v7968_v27 = vld [vmem:[#allocation66_spill] sm:$0xff] }
 0x494   :  { %v2372_v19 = vmul.f32 %v3197_v35, %v2367_v23  ;;  %v7969_v23 = vld [vmem:[#allocation67_spill] sm:$0xff]  ;;  %v7970_v35 = vld [vmem:[#allocation60_spill] sm:$0xff] }
 0x495   :  { %v2371_v38 = vmul.f32 %v2368_v28, %v6116_v31  ;;  %v3199_v25 = vpop.eup %3198  ;;  %v7913_v31 = vld [vmem:[#allocation7_spill] sm:$0xff]  ;;  %v7971_v28 = vld [vmem:[#allocation61_spill] sm:$0xff] }
 0x496   :  { %v2366_v12 = vmul.f32 0.5, %v3199_v25  ;;  %v7964_v25 = vld [vmem:[#allocation62_spill] sm:$0xff] }
 0x497   :  { %v6901_v36 = vadd.f32 %v2372_v19, %v2371_v38  ;;  %v7963_v38 = vld [vmem:[#allocation53_spill] sm:$0xff]  ;;  %v7972_v19 = vld [vmem:[#allocation64_spill] sm:$0xff] }
 0x498   :  { %v2369_v20 = vadd.f32 0.5, %v2366_v12  ;;  %v7965_v12 = vld [vmem:[#allocation63_spill] sm:$0xff] }
 0x499   :  { %3200 = vtanh.f32 %v6901_v36 }
 0x49f   :  { %v3201_v37 = vpop.eup %3200 }
 0x4a0   :  { %v2375_v30 = vmul.f32 %v3201_v37, %v2369_v20  ;;  %v7966_v20 = vld [vmem:[#allocation56_spill] sm:$0xff]  ;;  %v7973_v37 = vld [vmem:[#allocation65_spill] sm:$0xff] }
 0x4a2   :  { %2526 = vmatmul.f32.vlgmr.msra.gmra.mxu0 %v2375_v30  ;;  %2376 = vst [vmem:[#allocation4 + $0x5] sm:$0x1] %v2375_v30  ;;  %2546 = vmatmul.f32.vlgmr.msra.gmra.mxu1 %v2375_v30 }
 0x4a3   :  { %2377 = vst [vmem:[#allocation3 + $0x1] sm:$0x2] %v2375_v30  ;;  %2566 = vmatmul.f32.vlgmr.msra.gmra.mxu2 %v2375_v30  ;;  %2586 = vmatmul.f32.vlgmr.msra.gmra.mxu3 %v2375_v30 }
 0x4a4   :  { %2868 = vmatpush.msra.mxu0 %v6122_v32  ;;  %2888 = vmatpush.msra.mxu1 %v6127_v39  ;;  %v7914_v32 = vld [vmem:[#allocation12_spill] sm:$0xff]  ;;  %v7915_v39 = vld [vmem:[#allocation13_spill] sm:$0xff] }
 0x4a5   :  { %2908 = vmatpush.msra.mxu2 %v6132_v40  ;;  %2928 = vmatpush.msra.mxu3 %v6139_v41  ;;  %v7916_v40 = vld [vmem:[#allocation8_spill] sm:$0xff]  ;;  %v7917_v41 = vld [vmem:[#allocation9_spill] sm:$0xff] }
 0x4a6   :  { %2869 = vmatpush.msra.mxu0 %v6146_v42  ;;  %2889 = vmatpush.msra.mxu1 %v6151_v13  ;;  %v7918_v42 = vld [vmem:[#allocation16_spill] sm:$0xff]  ;;  %v7919_v13 = vld [vmem:[#allocation17_spill] sm:$0xff] }
 0x4a7   :  { %2909 = vmatpush.msra.mxu2 %v6156_v43  ;;  %2929 = vmatpush.msra.mxu3 %v6163_v21  ;;  %v7920_v43 = vld [vmem:[#allocation10_spill] sm:$0xff]  ;;  %v7921_v21 = vld [vmem:[#allocation11_spill] sm:$0xff] }
 0x4a8   :  { %2870 = vmatpush.msra.mxu0 %v6168_v44  ;;  %2890 = vmatpush.msra.mxu1 %v6173_v45  ;;  %v7922_v44 = vld [vmem:[#allocation20_spill] sm:$0xff]  ;;  %v7923_v45 = vld [vmem:[#allocation21_spill] sm:$0xff] }
 0x4a9   :  { %2910 = vmatpush.msra.mxu2 %v6180_v6  ;;  %2930 = vmatpush.msra.mxu3 %v6185_v46  ;;  %v7924_v6 = vld [vmem:[#allocation22_spill] sm:$0xff]  ;;  %v7925_v46 = vld [vmem:[#allocation23_spill] sm:$0xff] }
 0x4aa   :  { %2606 = vmatmul.f32.vlgmr.msrb.gmra.mxu0 %v2375_v30  ;;  %2626 = vmatmul.f32.vlgmr.msrb.gmra.mxu1 %v2375_v30 }
 0x4ab   :  { %2646 = vmatmul.f32.vlgmr.msrb.gmra.mxu2 %v2375_v30  ;;  %2666 = vmatmul.f32.vlgmr.msrb.gmra.mxu3 %v2375_v30  ;;  %v7974_v30 = vld [vmem:[#allocation68_spill] sm:$0xff] }
 0x4ac   :  { %2871 = vmatpush.msra.mxu0 %v6194_v14  ;;  %2891 = vmatpush.msra.mxu1 %v6199_v47  ;;  %v7926_v14 = vld [vmem:[#allocation14_spill] sm:$0xff]  ;;  %v7927_v47 = vld [vmem:[#allocation15_spill] sm:$0xff] }
 0x4ad   :  { %2911 = vmatpush.msra.mxu2 %v6204_v48  ;;  %2931 = vmatpush.msra.mxu3 %v6211_v49  ;;  %v7928_v48 = vld [vmem:[#allocation26_spill] sm:$0xff]  ;;  %v7929_v49 = vld [vmem:[#allocation27_spill] sm:$0xff] }
 0x4ae   :  { %2872 = vmatpush.msra.mxu0 %v6218_v50  ;;  %2892 = vmatpush.msra.mxu1 %v6223_v51  ;;  %v7930_v50 = vld [vmem:[#allocation18_spill] sm:$0xff]  ;;  %v7931_v51 = vld [vmem:[#allocation19_spill] sm:$0xff] }
 0x4af   :  { %2912 = vmatpush.msra.mxu2 %v6228_v52  ;;  %2932 = vmatpush.msra.mxu3 %v6235_v53  ;;  %v7932_v52 = vld [vmem:[#allocation30_spill] sm:$0xff]  ;;  %v7933_v53 = vld [vmem:[#allocation31_spill] sm:$0xff] }
 0x4b0   :  { %2873 = vmatpush.msra.mxu0 %v6242_v54  ;;  %2893 = vmatpush.msra.mxu1 %v6247_v55  ;;  %v7934_v54 = vld [vmem:[#allocation24_spill] sm:$0xff]  ;;  %v7935_v55 = vld [vmem:[#allocation25_spill] sm:$0xff] }
 0x4b1   :  { %2913 = vmatpush.msra.mxu2 %v6252_v56  ;;  %2933 = vmatpush.msra.mxu3 %v6259_v24  ;;  %v7936_v56 = vld [vmem:[#allocation34_spill] sm:$0xff]  ;;  %v7937_v24 = vld [vmem:[#allocation35_spill] sm:$0xff] }
 0x4b2   :  { %2874 = vmatpush.msra.mxu0 %v6266_v57  ;;  %2894 = vmatpush.msra.mxu1 %v6271_v58  ;;  %v7938_v57 = vld [vmem:[#allocation28_spill] sm:$0xff]  ;;  %v7939_v58 = vld [vmem:[#allocation29_spill] sm:$0xff] }
 0x4b3   :  { %2914 = vmatpush.msra.mxu2 %v6276_v26  ;;  %2934 = vmatpush.msra.mxu3 %v6283_v59  ;;  %v7940_v26 = vld [vmem:[#allocation38_spill] sm:$0xff]  ;;  %v7941_v59 = vld [vmem:[#allocation39_spill] sm:$0xff] }
 0x4b4   :  { %2875 = vmatpush.msra.mxu0 %v6290_v60  ;;  %2895 = vmatpush.msra.mxu1 %v6295_v61  ;;  %v7942_v60 = vld [vmem:[#allocation32_spill] sm:$0xff]  ;;  %v7943_v61 = vld [vmem:[#allocation33_spill] sm:$0xff] }
 0x4b5   :  { %2915 = vmatpush.msra.mxu2 %v6300_v62  ;;  %2935 = vmatpush.msra.mxu3 %v6307_v63  ;;  %v7944_v62 = vld [vmem:[#allocation42_spill] sm:$0xff]  ;;  %v7945_v63 = vld [vmem:[#allocation43_spill] sm:$0xff] }
 0x4b6   :  { %2876 = vmatpush.msra.mxu0 %v6314_v0  ;;  %2896 = vmatpush.msra.mxu1 %v6319_v1  ;;  %v7946_v0 = vld [vmem:[#allocation36_spill] sm:$0xff]  ;;  %v7947_v1 = vld [vmem:[#allocation37_spill] sm:$0xff] }
 0x4b7   :  { %2916 = vmatpush.msra.mxu2 %v6324_v2  ;;  %2936 = vmatpush.msra.mxu3 %v6331_v3  ;;  %v7948_v2 = vld [vmem:[#allocation46_spill] sm:$0xff]  ;;  %v7949_v3 = vld [vmem:[#allocation47_spill] sm:$0xff] }
 0x4b8   :  { %2877 = vmatpush.msra.mxu0 %v6338_v4  ;;  %2897 = vmatpush.msra.mxu1 %v6343_v5  ;;  %v7950_v4 = vld [vmem:[#allocation40_spill] sm:$0xff]  ;;  %v7951_v5 = vld [vmem:[#allocation41_spill] sm:$0xff] }
 0x4b9   :  { %2917 = vmatpush.msra.mxu2 %v6348_v7  ;;  %2937 = vmatpush.msra.mxu3 %v6355_v8  ;;  %v7952_v7 = vld [vmem:[#allocation50_spill] sm:$0xff]  ;;  %v7953_v8 = vld [vmem:[#allocation51_spill] sm:$0xff] }
 0x4ba   :  { %2878 = vmatpush.msra.mxu0 %v6362_v17  ;;  %2898 = vmatpush.msra.mxu1 %v6367_v11  ;;  %v7954_v17 = vld [vmem:[#allocation44_spill] sm:$0xff]  ;;  %v7955_v11 = vld [vmem:[#allocation45_spill] sm:$0xff] }
 0x4bb   :  { %2918 = vmatpush.msra.mxu2 %v6372_v15  ;;  %2938 = vmatpush.msra.mxu3 %v6379_v33  ;;  %v7956_v15 = vld [vmem:[#allocation54_spill] sm:$0xff]  ;;  %v7957_v33 = vld [vmem:[#allocation55_spill] sm:$0xff] }
 0x4bc   :  { %2879 = vmatpush.msra.mxu0 %v6386_v16  ;;  %2899 = vmatpush.msra.mxu1 %v6391_v9  ;;  %v7958_v16 = vld [vmem:[#allocation48_spill] sm:$0xff]  ;;  %v7959_v9 = vld [vmem:[#allocation49_spill] sm:$0xff] }
 0x4bd   :  { %2919 = vmatpush.msra.mxu2 %v7913_v31  ;;  %2939 = vmatpush.msra.mxu3 %v7914_v32  ;;  %v7975_v31 = vld [vmem:[#allocation69_spill] sm:$0xff]  ;;  %v7976_v32 = vld [vmem:[#allocation70_spill] sm:$0xff] }
 0x4be   :  { %2880 = vmatpush.msra.mxu0 %v7915_v39  ;;  %2900 = vmatpush.msra.mxu1 %v7916_v40  ;;  %v7977_v39 = vld [vmem:[#allocation71_spill] sm:$0xff]  ;;  %v7978_v40 = vld [vmem:[#allocation72_spill] sm:$0xff] }
 0x4bf   :  { %2920 = vmatpush.msra.mxu2 %v7917_v41  ;;  %2940 = vmatpush.msra.mxu3 %v7918_v42  ;;  %v7979_v41 = vld [vmem:[#allocation73_spill] sm:$0xff]  ;;  %v7980_v42 = vld [vmem:[#allocation74_spill] sm:$0xff] }
 0x4c0   :  { %2881 = vmatpush.msra.mxu0 %v7919_v13  ;;  %2901 = vmatpush.msra.mxu1 %v7920_v43  ;;  %v7981_v13 = vld [vmem:[#allocation75_spill] sm:$0xff]  ;;  %v7982_v43 = vld [vmem:[#allocation76_spill] sm:$0xff] }
 0x4c1   :  { %2921 = vmatpush.msra.mxu2 %v7921_v21  ;;  %2941 = vmatpush.msra.mxu3 %v7922_v44  ;;  %v7983_v21 = vld [vmem:[#allocation77_spill] sm:$0xff]  ;;  %v7984_v44 = vld [vmem:[#allocation78_spill] sm:$0xff] }
 0x4c2   :  { %2882 = vmatpush.msra.mxu0 %v7923_v45  ;;  %2902 = vmatpush.msra.mxu1 %v7924_v6  ;;  %v7985_v45 = vld [vmem:[#allocation79_spill] sm:$0xff]  ;;  %v7986_v6 = vld [vmem:[#allocation80_spill] sm:$0xff] }
 0x4c3   :  { %2922 = vmatpush.msra.mxu2 %v7925_v46  ;;  %2942 = vmatpush.msra.mxu3 %v7926_v14  ;;  %v7987_v46 = vld [vmem:[#allocation81_spill] sm:$0xff]  ;;  %v7988_v14 = vld [vmem:[#allocation82_spill] sm:$0xff] }
 0x4c4   :  { %2883 = vmatpush.msra.mxu0 %v7927_v47  ;;  %2903 = vmatpush.msra.mxu1 %v7928_v48  ;;  %v7989_v47 = vld [vmem:[#allocation83_spill] sm:$0xff]  ;;  %v7990_v48 = vld [vmem:[#allocation84_spill] sm:$0xff] }
 0x4c5   :  { %2923 = vmatpush.msra.mxu2 %v7929_v49  ;;  %2943 = vmatpush.msra.mxu3 %v7930_v50  ;;  %v7991_v49 = vld [vmem:[#allocation85_spill] sm:$0xff]  ;;  %v7992_v50 = vld [vmem:[#allocation86_spill] sm:$0xff] }
 0x4c6   :  { %2948 = vmatpush.msrb.mxu0 %v7931_v51  ;;  %2968 = vmatpush.msrb.mxu1 %v7932_v52  ;;  %v7993_v51 = vld [vmem:[#allocation87_spill] sm:$0xff] }
 0x4c7   :  { %2988 = vmatpush.msrb.mxu2 %v7933_v53  ;;  %3008 = vmatpush.msrb.mxu3 %v7934_v54 }
 0x4c8   :  { %2949 = vmatpush.msrb.mxu0 %v7935_v55  ;;  %2969 = vmatpush.msrb.mxu1 %v7936_v56 }
 0x4c9   :  { %2989 = vmatpush.msrb.mxu2 %v7937_v24  ;;  %3009 = vmatpush.msrb.mxu3 %v7938_v57 }
 0x4ca   :  { %2950 = vmatpush.msrb.mxu0 %v7939_v58  ;;  %2970 = vmatpush.msrb.mxu1 %v7940_v26 }
 0x4cb   :  { %2990 = vmatpush.msrb.mxu2 %v7941_v59  ;;  %3010 = vmatpush.msrb.mxu3 %v7942_v60 }
 0x4cc   :  { %2951 = vmatpush.msrb.mxu0 %v7943_v61  ;;  %2971 = vmatpush.msrb.mxu1 %v7944_v62 }
 0x4cd   :  { %2991 = vmatpush.msrb.mxu2 %v7945_v63  ;;  %3011 = vmatpush.msrb.mxu3 %v7946_v0  ;;  %v2379_v63 = vld [vmem:[#allocation2 + $0x6] ss:$8 sm:$0xf] }
 0x4ce   :  { %2952 = vmatpush.msrb.mxu0 %v7947_v1  ;;  %2972 = vmatpush.msrb.mxu1 %v7948_v2  ;;  %v2381_v1 = vld [vmem:[#allocation2 + $0x21] ss:$8 sm:$0xf] }
 0x4cf   :  { %2992 = vmatpush.msrb.mxu2 %v7949_v3  ;;  %3012 = vmatpush.msrb.mxu3 %v7950_v4 }
 0x4d0   :  { %2953 = vmatpush.msrb.mxu0 %v7951_v5  ;;  %2973 = vmatpush.msrb.mxu1 %v7952_v7 }
 0x4d1   :  { %2993 = vmatpush.msrb.mxu2 %v7953_v8  ;;  %3013 = vmatpush.msrb.mxu3 %v7954_v17 }
 0x4d2   :  { %2954 = vmatpush.msrb.mxu0 %v7955_v11  ;;  %2974 = vmatpush.msrb.mxu1 %v7956_v15 }
 0x4d3   :  { %2994 = vmatpush.msrb.mxu2 %v7957_v33  ;;  %3014 = vmatpush.msrb.mxu3 %v7958_v16 }
 0x4d4   :  { %2955 = vmatpush.msrb.mxu0 %v7959_v9  ;;  %2975 = vmatpush.msrb.mxu1 %v7960_v29 }
 0x4d5   :  { %2995 = vmatpush.msrb.mxu2 %v7961_v22  ;;  %3015 = vmatpush.msrb.mxu3 %v7962_v10 }
 0x4d6   :  { %2956 = vmatpush.msrb.mxu0 %v7963_v38  ;;  %2976 = vmatpush.msrb.mxu1 %v7964_v25 }
 0x4d7   :  { %2996 = vmatpush.msrb.mxu2 %v7965_v12  ;;  %3016 = vmatpush.msrb.mxu3 %v7966_v20 }
 0x4d8   :  { %2957 = vmatpush.msrb.mxu0 %v7967_v34  ;;  %2977 = vmatpush.msrb.mxu1 %v7968_v27 }
 0x4d9   :  { %2997 = vmatpush.msrb.mxu2 %v7969_v23  ;;  %3017 = vmatpush.msrb.mxu3 %v7970_v35 }
 0x4da   :  { %2958 = vmatpush.msrb.mxu0 %v7971_v28  ;;  %2978 = vmatpush.msrb.mxu1 %v7972_v19 }
 0x4db   :  { %2998 = vmatpush.msrb.mxu2 %v7973_v37  ;;  %3018 = vmatpush.msrb.mxu3 %v7974_v30 }
 0x4dc   :  { %2959 = vmatpush.msrb.mxu0 %v7975_v31  ;;  %2979 = vmatpush.msrb.mxu1 %v7976_v32 }
 0x4dd   :  { %2999 = vmatpush.msrb.mxu2 %v7977_v39  ;;  %3019 = vmatpush.msrb.mxu3 %v7978_v40 }
 0x4de   :  { %2960 = vmatpush.msrb.mxu0 %v7979_v41  ;;  %2980 = vmatpush.msrb.mxu1 %v7980_v42 }
 0x4df   :  { %3000 = vmatpush.msrb.mxu2 %v7981_v13  ;;  %3020 = vmatpush.msrb.mxu3 %v7982_v43 }
 0x4e0   :  { %2961 = vmatpush.msrb.mxu0 %v7983_v21  ;;  %2981 = vmatpush.msrb.mxu1 %v7984_v44 }
 0x4e1   :  { %3001 = vmatpush.msrb.mxu2 %v7985_v45  ;;  %3021 = vmatpush.msrb.mxu3 %v7986_v6 }
 0x4e2   :  { %2962 = vmatpush.msrb.mxu0 %v7987_v46  ;;  %2982 = vmatpush.msrb.mxu1 %v7988_v14 }
 0x4e3   :  { %3002 = vmatpush.msrb.mxu2 %v7989_v47  ;;  %3022 = vmatpush.msrb.mxu3 %v7990_v48 }
 0x4e4   :  { %2963 = vmatpush.msrb.mxu0 %v7991_v49  ;;  %2983 = vmatpush.msrb.mxu1 %v6879_v18 }
 0x4e5   :  { %3003 = vmatpush.msrb.mxu2 %v7992_v50  ;;  %3023 = vmatpush.msrb.mxu3 %v7993_v51  ;;  %v2737_v51 = vld [vmem:[#allocation2 + $0x7] ss:$8 sm:$0xf] }
 0x51f   :  { %v2527_v52 = vpop.f32.mrf.mxu0  ;;  %v2547_v53 = vpop.f32.mrf.mxu1 }
 0x520   :  { %v2674_v26 = vrot.slane %v2547_v53, 7  ;;  %v2739_v53 = vld [vmem:[#allocation2 + $0x20] ss:$8 sm:$0xf] }
 0x522   :  { %v2677_v61 = vsel %vm526_vm2, %v2527_v52, %v2674_v26 }
 0x526   :  { %v2567_v54 = vpop.f32.mrf.mxu2  ;;  %v2587_v55 = vpop.f32.mrf.mxu3 }
 0x527   :  { %v2607_v56 = vpop.f32.mrf.mxu0  ;;  %v2627_v24 = vpop.f32.mrf.mxu1  ;;  %v2675_v57 = vrot.slane %v2567_v54, 6  ;;  %v2676_v58 = vrot.slane %v2587_v55, 5 }
 0x528   :  { %2686 = vst [vmem:[#allocation1] sm:$0xff] %v2607_v56 }
 0x529   :  { %2687 = vst [vmem:[#allocation1 + $0x9] sm:$0xff] %v2627_v24  ;;  %v2678_v18 = vsel %vm528_vm1, %v2675_v57, %v2676_v58 }
 0x52a   :  { %v2679_v62 = vsel %vm530_vm3, %v2677_v61, %v2678_v18 }
 0x52b   :  { %v2681_v0 = vadd.f32 %v2679_v62, %v2379_v63 }
 0x52d   :  { %v2695_v4 = vperm.slane %v2681_v0, 0  ;;  %v2696_v5 = vperm.slane %v2681_v0, 1  ;;  %v2697_v29 = vperm.slane %v2681_v0, 2  ;;  %v2698_v22 = vperm.slane %v2681_v0, 3 }
 0x52e   :  { %v2647_v59 = vpop.f32.mrf.mxu2  ;;  %v2667_v60 = vpop.f32.mrf.mxu3 }
 0x52f   :  { %2688 = vst [vmem:[#allocation1 + $0x12] sm:$0xff] %v2647_v59 }
 0x530   :  { %2689 = vst [vmem:[#allocation1 + $0x1b] sm:$0xff] %v2667_v60 }
 0x537   :  { %v2691_v2 = vld [vmem:[#allocation1 + $0x1] ss:$9 sm:$0xff] }
 0x538   :  { %v2693_v3 = vadd.f32 %v2691_v2, %v2381_v1 }
 0x53a   :  { %v2704_v7 = vperm.slane %v2693_v3, 0  ;;  %v2705_v8 = vperm.slane %v2693_v3, 1  ;;  %v2707_v17 = vperm.slane %v2693_v3, 3  ;;  %v2706_v11 = vperm.slane %v2693_v3, 2 }
 0x53c   :  { %v2712_v15 = vsel %vm526_vm2, %v2695_v4, %v2704_v7  ;;  %v2713_v33 = vsel %vm526_vm2, %v2696_v5, %v2705_v8  ;;  %v2715_v10 = vsel %vm526_vm2, %v2698_v22, %v2707_v17  ;;  %v2714_v38 = vsel %vm526_vm2, %v2697_v29, %v2706_v11 }
 0x53d   :  { %v2716_v16 = vmul.f32 0.5, %v2712_v15  ;;  %v2717_v9 = vmul.f32 0.5, %v2713_v33  ;;  %v2718_v25 = vmul.f32 0.5, %v2714_v38 }
 0x53f   :  { %3202 = vtanh.f32 %v2716_v16 }
 0x540   :  { %3204 = vtanh.f32 %v2717_v9 }
 0x541   :  { %3206 = vtanh.f32 %v2715_v10 }
 0x542   :  { %3208 = vtanh.f32 %v2718_v25 }
 0x545   :  { %v3203_v12 = vpop.eup %3202 }
 0x546   :  { %v3205_v20 = vpop.eup %3204  ;;  %v2722_v34 = vmul.f32 0.5, %v3203_v12 }
 0x547   :  { %v2723_v27 = vmul.f32 0.5, %v3205_v20  ;;  %v3207_v35 = vpop.eup %3206 }
 0x548   :  { %v2725_v23 = vadd.f32 0.5, %v2722_v34  ;;  %v3209_v30 = vpop.eup %3208 }
 0x549   :  { %v2726_v28 = vadd.f32 0.5, %v2723_v27  ;;  %v2724_v32 = vmul.f32 0.5, %v3209_v30 }
 0x54a   :  { %v2730_v19 = vmul.f32 %v3207_v35, %v2725_v23 }
 0x54b   :  { %v2729_v37 = vmul.f32 %v2726_v28, %v6901_v36  ;;  %v2727_v39 = vadd.f32 0.5, %v2724_v32 }
 0x54d   :  { %v7040_v31 = vadd.f32 %v2730_v19, %v2729_v37 }
 0x54f   :  { %3210 = vtanh.f32 %v7040_v31 }
 0x555   :  { %v3211_v40 = vpop.eup %3210 }
 0x556   :  { %v2733_v41 = vmul.f32 %v3211_v40, %v2727_v39 }
 0x558   :  { %2884 = vmatmul.f32.vlgmr.msra.gmra.mxu0 %v2733_v41  ;;  %2734 = vst [vmem:[#allocation4 + $0x6] sm:$0x1] %v2733_v41  ;;  %2904 = vmatmul.f32.vlgmr.msra.gmra.mxu1 %v2733_v41 }
 0x559   :  { %2735 = vst [vmem:[#allocation3] sm:$0x2] %v2733_v41  ;;  %2924 = vmatmul.f32.vlgmr.msra.gmra.mxu2 %v2733_v41  ;;  %2944 = vmatmul.f32.vlgmr.msra.gmra.mxu3 %v2733_v41 }
 0x560   :  { %2964 = vmatmul.f32.vlgmr.msrb.gmra.mxu0 %v2733_v41  ;;  %2984 = vmatmul.f32.vlgmr.msrb.gmra.mxu1 %v2733_v41 }
 0x561   :  { %3004 = vmatmul.f32.vlgmr.msrb.gmra.mxu2 %v2733_v41  ;;  %3024 = vmatmul.f32.vlgmr.msrb.gmra.mxu3 %v2733_v41 }
 0x5d5   :  { %v2885_v36 = vpop.f32.mrf.mxu0  ;;  %v2905_v42 = vpop.f32.mrf.mxu1 }
 0x5d6   :  { %v3032_v46 = vrot.slane %v2905_v42, 7 }
 0x5d8   :  { %v3035_v49 = vsel %vm526_vm2, %v2885_v36, %v3032_v46 }
 0x5dc   :  { %v2925_v13 = vpop.f32.mrf.mxu2  ;;  %v2945_v43 = vpop.f32.mrf.mxu3 }
 0x5dd   :  { %v2965_v21 = vpop.f32.mrf.mxu0  ;;  %v2985_v44 = vpop.f32.mrf.mxu1  ;;  %v3033_v45 = vrot.slane %v2925_v13, 6  ;;  %v3034_v6 = vrot.slane %v2945_v43, 5 }
 0x5de   :  { %3044 = vst [vmem:[#allocation1] sm:$0xff] %v2965_v21 }
 0x5df   :  { %3045 = vst [vmem:[#allocation1 + $0x9] sm:$0xff] %v2985_v44  ;;  %v3036_v48 = vsel %vm528_vm1, %v3033_v45, %v3034_v6 }
 0x5e0   :  { %v3037_v50 = vsel %vm530_vm3, %v3035_v49, %v3036_v48 }
 0x5e1   :  { %v3039_v52 = vadd.f32 %v3037_v50, %v2737_v51 }
 0x5e3   :  { %v3053_v56 = vperm.slane %v3039_v52, 0  ;;  %v3054_v24 = vperm.slane %v3039_v52, 1  ;;  %v3055_v63 = vperm.slane %v3039_v52, 2  ;;  %v3056_v0 = vperm.slane %v3039_v52, 3 }
 0x5e4   :  { %v3005_v14 = vpop.f32.mrf.mxu2  ;;  %v3025_v47 = vpop.f32.mrf.mxu3 }
 0x5e5   :  { %3046 = vst [vmem:[#allocation1 + $0x12] sm:$0xff] %v3005_v14 }
 0x5e6   :  { %3047 = vst [vmem:[#allocation1 + $0x1b] sm:$0xff] %v3025_v47 }
 0x5ed   :  { %v3049_v54 = vld [vmem:[#allocation1 + $0x1] ss:$9 sm:$0xff] }
 0x5ee   :  { %v3051_v55 = vadd.f32 %v3049_v54, %v2739_v53 }
 0x5f0   :  { %v3062_v57 = vperm.slane %v3051_v55, 0  ;;  %v3063_v58 = vperm.slane %v3051_v55, 1  ;;  %v3065_v26 = vperm.slane %v3051_v55, 3  ;;  %v3064_v59 = vperm.slane %v3051_v55, 2 }
 0x5f2   :  { %v3070_v60 = vsel %vm526_vm2, %v3053_v56, %v3062_v57  ;;  %v3071_v18 = vsel %vm526_vm2, %v3054_v24, %v3063_v58  ;;  %v3072_v1 = vsel %vm526_vm2, %v3055_v63, %v3064_v59  ;;  %v3073_v2 = vsel %vm526_vm2, %v3056_v0, %v3065_v26 }
 0x5f3   :  { %v3074_v61 = vmul.f32 0.5, %v3070_v60  ;;  %v3075_v62 = vmul.f32 0.5, %v3071_v18  ;;  %v3076_v3 = vmul.f32 0.5, %v3072_v1 }
 0x5f5   :  { %3212 = vtanh.f32 %v3074_v61 }
 0x5f6   :  { %3214 = vtanh.f32 %v3075_v62 }
 0x5f7   :  { %3216 = vtanh.f32 %v3073_v2 }
 0x5f8   :  { %3218 = vtanh.f32 %v3076_v3 }
 0x5fb   :  { %v3213_v4 = vpop.eup %3212 }
 0x5fc   :  { %v3215_v5 = vpop.eup %3214  ;;  %v3080_v7 = vmul.f32 0.5, %v3213_v4 }
 0x5fd   :  { %v3081_v8 = vmul.f32 0.5, %v3215_v5  ;;  %v3217_v11 = vpop.eup %3216 }
 0x5fe   :  { %v3083_v17 = vadd.f32 0.5, %v3080_v7  ;;  %v3219_v9 = vpop.eup %3218 }
 0x5ff   :  { %v3084_v15 = vadd.f32 0.5, %v3081_v8  ;;  %v3082_v10 = vmul.f32 0.5, %v3219_v9 }
 0x600   :  { %v3088_v33 = vmul.f32 %v3217_v11, %v3083_v17 }
 0x601   :  { %v3087_v16 = vmul.f32 %v3084_v15, %v7040_v31  ;;  %v3085_v25 = vadd.f32 0.5, %v3082_v10 }
 0x603   :  { %v3089_v29 = vadd.f32 %v3088_v33, %v3087_v16 }
 0x605   :  { %3220 = vtanh.f32 %v3089_v29  ;;  %v3104_v22 = vrot.slane %v3089_v29, 1 }
 0x607   :  { %v3106_v38 = vadd.f32 %v3104_v22, %v3089_v29 }
 0x609   :  { %3107 = vst [vmem:[%s7066_s6] sm:$0x1] %v3106_v38 }
 0x60b   :  { %v3221_v12 = vpop.eup %3220 }
 0x60c   :  { %v3091_v20 = vmul.f32 %v3221_v12, %v3085_v25 }
 0x60e   :  { %3092 = vst [vmem:[#allocation4 + $0x7] sm:$0x1] %v3091_v20  ;;  %v3099_v34 = vrot.slane %v3091_v20, 1 }
 0x60f   :  { %3093 = vst [vmem:[#allocation3 - $0x1] sm:$0x2] %v3091_v20 }
 0x610   :  { %v3101_v27 = vadd.f32 %v3099_v34, %v3091_v20 }
 0x612   :  { %3102 = vst [vmem:[%s7065_s5] sm:$0x1] %v3101_v27 }
 0x615   :  { %v3094_v23 = vld [vmem:[#allocation4] sm:$0xff] }
 0x616   :  { %v3095_v35 = vld [vmem:[#allocation3] sm:$0xff] }
 0x617   :  { %v3096_v28 = vadd.f32 %v3095_v35, %v3094_v23 }
 0x619   :  { %3097 = vst [vmem:[#allocation4] sm:$0xff] %v3096_v28 }
 0x61a   :  { %3118 = dma.vmem_to_hbm [thread:$0]  %s3114_s19, 128, %s3116_s22, [#allocation5]  }
 0x61b   :  { %3246 = dma.done.wait [#allocation5], 128  }
 0x61c   :  { %3247 = vsyncadd [#allocation5], 4294967168 }
 0x61d   :  { %3131 = vsyncpa [#allocation5], 1 }

</bundles_post_ra>
